<compile_context>
chip_gen: v7x
topology: tpu7x:2x2x1
jax: 0.10.0
libtpu: 0.0.40
codegen_flags: <defaults>
</compile_context>

<pallas_src>
import functools

import jax
import jax.numpy as jnp
from jax import lax
from jax.experimental import pallas as pl
from jax.experimental.pallas import tpu as pltpu

BN_EPS = 1e-5
_LANE = 128


def _round_up(x, m):
    return -(-x // m) * m


def _padded_vmem_bytes(shape, dtype):
    """VMEM footprint of one block with lane/sublane padding applied."""
    itemsize = jnp.dtype(dtype).itemsize
    dims = list(shape)
    if dims:
        dims[-1] = _round_up(dims[-1], _LANE)
    if len(dims) >= 2:
        dims[-2] = _round_up(dims[-2], 32 // itemsize)
    n = 1
    for d in dims:
        n *= d
    return n * itemsize


def _vmem_limit(in_blocks, out_blocks, scratch_blocks):
    need = 0
    for shp, dt in in_blocks + out_blocks:
        need += 2 * _padded_vmem_bytes(shp, dt)   # double-buffered by the pipeline
    for shp, dt in scratch_blocks:
        need += _padded_vmem_bytes(shp, dt)
    need += 2 * 2**20                             # compiler-internal headroom
    # stay inside v7x's 64 MiB per-TC VMEM; fine for v5e/v6e as well.
    return int(min(max(need, 16 * 2**20), 48 * 2**20))


def _conv_stats_kernel(x_ref, w1_ref, w3_ref, mask_ref, y_ref, st_ref, acc_ref,
                       *, Wp, C1P):
    """Pass 1: fused convs + per-image per-channel sum / sum-of-squares.

    x_ref    : (Hp*Wp, Cin)   one padded image, flattened spatial rows
    w1_ref   : (Cin, C1P)     1x1 weights, zero-padded to 128 lanes
    w3_ref   : (9, Cin, C3P)  3x3 tap weights, zero-padded to 128 lanes
    mask_ref : (R, 1) f32     1.0 for valid output rows (wpos < W), else 0.0
    y_ref    : (R, C1P+C3P)   pre-BN activations (f32), lane-dense
    st_ref   : (2, C1P+C3P)   row 0 = sum, row 1 = sum of squares (masked)
    acc_ref  : (R, C1P+C3P)   f32 VMEM accumulator scratch
    """
    R, CPAD = acc_ref.shape

    # 1x1 branch: single centre-tap matmul into lane slice [0, C1P).
    centre = Wp + 1
    acc_ref[:, 0:C1P] = jnp.dot(x_ref[pl.ds(centre, R), :], w1_ref[...],
                                preferred_element_type=jnp.float32)

    # 3x3 branch: 9 row-offset tap matmuls into lane slice [C1P, CPAD).
    for tap in range(9):
        dy, dx = divmod(tap, 3)
        off = dy * Wp + dx
        contrib = jnp.dot(x_ref[pl.ds(off, R), :], w3_ref[tap],
                          preferred_element_type=jnp.float32)
        if tap == 0:
            acc_ref[:, C1P:CPAD] = contrib
        else:
            acc_ref[:, C1P:CPAD] += contrib

    a = acc_ref[...]
    y_ref[...] = a                                   # single lane-dense store

    am = a * mask_ref[...]                           # drop right-halo junk rows
    st_ref[0:1, :] = jnp.sum(am, axis=0, keepdims=True)
    st_ref[1:2, :] = jnp.sum(am * a, axis=0, keepdims=True)


def _bn_relu_kernel(y_ref, st_ref, o_ref, *, inv_count, eps):
    """Pass 2: BatchNorm(affine=False) with batch stats + ReLU (lane-dense)."""
    s1 = st_ref[0:1, :]
    s2 = st_ref[1:2, :]
    m = s1 * inv_count
    v = jnp.maximum(s2 * inv_count - m * m, 0.0)
    r = lax.rsqrt(v + eps)
    o_ref[...] = jnp.maximum((y_ref[...] - m) * r, 0.0).astype(o_ref.dtype)


@jax.jit
def inception_forward(x_nchw, w1_oihw, b1, w3_oihw, b3):
    """x_nchw: (N, Cin, H, W) -> (N, Ch1+Ch3, H, W).

    b1 / b3 mirror the PyTorch module's parameters but are unused: with
    BatchNorm2d(affine=False) on batch statistics a constant per-channel bias
    is exactly removed by the mean subtraction.
    """
    del b1, b3
    N, Cin, H, W = x_nchw.shape
    Ch1 = w1_oihw.shape[0]
    Ch3 = w3_oihw.shape[0]
    cdt = x_nchw.dtype                            # respect caller dtype (bf16 ok)

    C1P = _round_up(Ch1, _LANE)
    C3P = _round_up(Ch3, _LANE)
    CPAD = C1P + C3P
    Hp, Wp = H + 3, W + 2                         # pad H by (1,2), W by (1,1)
    HpWp = Hp * Wp
    R = H * Wp                                    # rows computed per image

    # ---- wrapper glue (layout plumbing only) ----
    x = jnp.transpose(x_nchw, (0, 2, 3, 1))                            # NHWC
    # TODO(synk): at scale, drop this pad and fill the halo in-kernel instead.
    xpad = jnp.pad(x, ((0, 0), (1, 2), (1, 1), (0, 0))).astype(cdt)
    xflat = xpad.reshape(N, HpWp, Cin)

    w1p = jnp.zeros((Cin, C1P), cdt).at[:, :Ch1].set(
        jnp.transpose(w1_oihw[:, :, 0, 0], (1, 0)).astype(cdt))
    w3p = jnp.zeros((9, Cin, C3P), cdt).at[:, :, :Ch3].set(
        jnp.transpose(w3_oihw, (2, 3, 1, 0)).reshape(9, Cin, Ch3).astype(cdt))

    mask = (jnp.arange(R) % Wp < W).astype(jnp.float32).reshape(R, 1)

    # ---- pass 1: conv + per-image partial BN statistics ----
    limit1 = _vmem_limit(
        in_blocks=[((HpWp, Cin), cdt), ((Cin, C1P), cdt),
                   ((9, Cin, C3P), cdt), ((R, 1), jnp.float32)],
        out_blocks=[((R, CPAD), jnp.float32), ((2, CPAD), jnp.float32)],
        scratch_blocks=[((R, CPAD), jnp.float32)])

    y_pre, stats_n = pl.pallas_call(
        functools.partial(_conv_stats_kernel, Wp=Wp, C1P=C1P),
        out_shape=(jax.ShapeDtypeStruct((N, R, CPAD), jnp.float32),
                   jax.ShapeDtypeStruct((N, 2, CPAD), jnp.float32)),
        grid=(N,),
        in_specs=[
            pl.BlockSpec((None, HpWp, Cin), lambda n: (n, 0, 0)),
            pl.BlockSpec((Cin, C1P), lambda n: (0, 0)),
            pl.BlockSpec((9, Cin, C3P), lambda n: (0, 0, 0)),
            pl.BlockSpec((R, 1), lambda n: (0, 0)),
        ],
        out_specs=[
            pl.BlockSpec((None, R, CPAD), lambda n: (n, 0, 0)),
            pl.BlockSpec((None, 2, CPAD), lambda n: (n, 0, 0)),
        ],
        scratch_shapes=[pltpu.VMEM((R, CPAD), jnp.float32)],
        compiler_params=pltpu.CompilerParams(
            dimension_semantics=("parallel",), vmem_limit_bytes=limit1),
    )(xflat, w1p, w3p, mask)

    # tiny cross-image stats combine (2 x CPAD floats per image)
    stats = jnp.sum(stats_n, axis=0)                                   # (2, CPAD)

    # ---- pass 2: normalize + ReLU ----
    limit2 = _vmem_limit(
        in_blocks=[((R, CPAD), jnp.float32), ((2, CPAD), jnp.float32)],
        out_blocks=[((R, CPAD), cdt)],
        scratch_blocks=[])

    z = pl.pallas_call(
        functools.partial(_bn_relu_kernel,
                          inv_count=1.0 / float(N * H * W), eps=BN_EPS),
        out_shape=jax.ShapeDtypeStruct((N, R, CPAD), cdt),
        grid=(N,),
        in_specs=[
            pl.BlockSpec((None, R, CPAD), lambda n: (n, 0, 0)),
            pl.BlockSpec((2, CPAD), lambda n: (0, 0)),
        ],
        out_specs=pl.BlockSpec((None, R, CPAD), lambda n: (n, 0, 0)),
        compiler_params=pltpu.CompilerParams(
            dimension_semantics=("parallel",), vmem_limit_bytes=limit2),
    )(y_pre, stats)

    # ---- wrapper glue: drop junk columns / pad channels, back to NCHW ----
    z = z.reshape(N, H, Wp, CPAD)[:, :, :W, :]
    out = jnp.concatenate([z[..., :Ch1], z[..., C1P:C1P + Ch3]], axis=-1)
    return jnp.transpose(out, (0, 3, 1, 2))


def _reference_forward(x_nchw, w1_oihw, b1, w3_oihw, b3):
    """Pure-JAX reference mirroring the PyTorch module (for sanity check)."""
    def conv_bn_relu(x, w, b, pad):
        y = lax.conv_general_dilated(
            x, w, window_strides=(1, 1), padding=[(pad, pad), (pad, pad)],
            dimension_numbers=("NCHW", "OIHW", "NCHW"))
        y = y + b.reshape(1, -1, 1, 1)
        m = jnp.mean(y, axis=(0, 2, 3), keepdims=True)
        v = jnp.mean((y - m) ** 2, axis=(0, 2, 3), keepdims=True)
        return jnp.maximum((y - m) * lax.rsqrt(v + BN_EPS), 0.0)

    c1 = conv_bn_relu(x_nchw, w1_oihw, b1, pad=0)
    c3 = conv_bn_relu(x_nchw, w3_oihw, b3, pad=1)
    return jnp.concatenate([c1, c3], axis=1)


if __name__ == "__main__":
    # small shapes: N=2, C_in=4, H=W=16, Ch1=8, Ch3=8
    N, Cin, H, W = 2, 4, 16, 16
    Ch1, Ch3 = 8, 8

    key = jax.random.PRNGKey(0)
    k = jax.random.split(key, 5)
    x = jax.random.normal(k[0], (N, Cin, H, W), jnp.float32)
    # synthetic parameters in PyTorch Conv2d weight layout (OIHW)
    w1 = jax.random.normal(k[1], (Ch1, Cin, 1, 1), jnp.float32) * 0.5
    b1 = jax.random.normal(k[2], (Ch1,), jnp.float32) * 0.1
    w3 = jax.random.normal(k[3], (Ch3, Cin, 3, 3), jnp.float32) * 0.2
    b3 = jax.random.normal(k[4], (Ch3,), jnp.float32) * 0.1

    # ---- f32 path: tight check against the XLA reference ----
    out = jax.block_until_ready(inception_forward(x, w1, b1, w3, b3))
    ref = _reference_forward(x, w1, b1, w3, b3)
    assert out.shape == (N, Ch1 + Ch3, H, W), out.shape
    assert jnp.allclose(out, ref, atol=1e-3, rtol=1e-3), \
        float(jnp.max(jnp.abs(out - ref)))

    # ---- bf16 path: kernel runs in the caller's dtype (looser tolerance) ----
    xb = x.astype(jnp.bfloat16)
    out_b = jax.block_until_ready(inception_forward(xb, w1, b1, w3, b3))
    ref_b = _reference_forward(
        xb.astype(jnp.float32),
        w1.astype(jnp.bfloat16).astype(jnp.float32), b1,
        w3.astype(jnp.bfloat16).astype(jnp.float32), b3)
    assert out_b.dtype == jnp.bfloat16
    assert jnp.allclose(out_b.astype(jnp.float32), ref_b, atol=6e-2, rtol=6e-2), \
        float(jnp.max(jnp.abs(out_b.astype(jnp.float32) - ref_b)))

    print("KERNEL_OK")
</pallas_src>

<mosaic_0001>
module attributes {stable_mosaic.version = 11 : i64} {
  func.func @_conv_stats_kernel(%arg0: i32, %arg1: memref<1x342x4xf32, #tpu.memory_space<vmem>>, %arg2: memref<4x128xf32, #tpu.memory_space<vmem>>, %arg3: memref<9x4x128xf32, #tpu.memory_space<vmem>>, %arg4: memref<288x1xf32, #tpu.memory_space<vmem>>, %arg5: memref<1x288x256xf32, #tpu.memory_space<vmem>>, %arg6: memref<1x2x256xf32, #tpu.memory_space<vmem>>, %arg7: memref<288x256xf32, #tpu.memory_space<vmem>>) attributes {dimension_semantics = [#tpu.dimension_semantics<parallel>], iteration_bounds = array<i64: 2>, scalar_prefetch = 0 : i64, scratch_operands = 1 : i64, tpu.core_type = #tpu.core_type<tc>, window_params = [{transform_indices = @transform_0, window_bounds = array<i64: 1, 342, 4>}, {pipeline_mode = #tpu.pipeline_mode<synchronous>, transform_indices = @transform_1, window_bounds = array<i64: 4, 128>}, {pipeline_mode = #tpu.pipeline_mode<synchronous>, transform_indices = @transform_2, window_bounds = array<i64: 9, 4, 128>}, {pipeline_mode = #tpu.pipeline_mode<synchronous>, transform_indices = @transform_3, window_bounds = array<i64: 288, 1>}, {transform_indices = @transform_4, window_bounds = array<i64: 1, 288, 256>}, {transform_indices = @transform_5, window_bounds = array<i64: 1, 2, 256>}]} {
    %c0 = arith.constant 0 : index
    %c19 = arith.constant 19 : index
    %c0_0 = arith.constant 0 : index
    %0 = vector.load %arg1[%c0, %c19, %c0_0] : memref<1x342x4xf32, #tpu.memory_space<vmem>>, vector<1x288x4xf32>
    %1 = vector.shape_cast %0 : vector<1x288x4xf32> to vector<288x4xf32>
    %c0_1 = arith.constant 0 : index
    %c0_2 = arith.constant 0 : index
    %2 = vector.load %arg2[%c0_1, %c0_2] : memref<4x128xf32, #tpu.memory_space<vmem>>, vector<4x128xf32>
    %cst = arith.constant dense<0.000000e+00> : vector<288x128xf32>
    %3 = tpu.matmul %1, %2, %cst {dimension_numbers = #tpu.dot_dimension_numbers<[1], [0], [0], [1], [0, 0, 1, 1], [], []>} : vector<288x4xf32>, vector<4x128xf32>, vector<288x128xf32> -> vector<288x128xf32>
    %c0_3 = arith.constant 0 : index
    %c0_4 = arith.constant 0 : index
    %4 = vector.load %arg7[%c0_3, %c0_4] : memref<288x256xf32, #tpu.memory_space<vmem>>, vector<288x128xf32>
    tpu.vector_store %arg7[%c0_3, %c0_4], %3 {strides = array<i32>} : memref<288x256xf32, #tpu.memory_space<vmem>>, vector<288x128xf32>,
    %c0_5 = arith.constant 0 : index
    %c0_6 = arith.constant 0 : index
    %c0_7 = arith.constant 0 : index
    %5 = vector.load %arg1[%c0_5, %c0_6, %c0_7] : memref<1x342x4xf32, #tpu.memory_space<vmem>>, vector<1x288x4xf32>
    %6 = vector.shape_cast %5 : vector<1x288x4xf32> to vector<288x4xf32>
    %c0_8 = arith.constant 0 : index
    %c0_9 = arith.constant 0 : index
    %c0_10 = arith.constant 0 : index
    %7 = vector.load %arg3[%c0_8, %c0_9, %c0_10] : memref<9x4x128xf32, #tpu.memory_space<vmem>>, vector<1x4x128xf32>
    %8 = vector.shape_cast %7 : vector<1x4x128xf32> to vector<4x128xf32>
    %cst_11 = arith.constant dense<0.000000e+00> : vector<288x128xf32>
    %9 = tpu.matmul %6, %8, %cst_11 {dimension_numbers = #tpu.dot_dimension_numbers<[1], [0], [0], [1], [0, 0, 1, 1], [], []>} : vector<288x4xf32>, vector<4x128xf32>, vector<288x128xf32> -> vector<288x128xf32>
    %c0_12 = arith.constant 0 : index
    %c128 = arith.constant 128 : index
    %10 = vector.load %arg7[%c0_12, %c128] : memref<288x256xf32, #tpu.memory_space<vmem>>, vector<288x128xf32>
    tpu.vector_store %arg7[%c0_12, %c128], %9 {strides = array<i32>} : memref<288x256xf32, #tpu.memory_space<vmem>>, vector<288x128xf32>,
    %c0_13 = arith.constant 0 : index
    %c1 = arith.constant 1 : index
    %c0_14 = arith.constant 0 : index
    %11 = vector.load %arg1[%c0_13, %c1, %c0_14] : memref<1x342x4xf32, #tpu.memory_space<vmem>>, vector<1x288x4xf32>
    %12 = vector.shape_cast %11 : vector<1x288x4xf32> to vector<288x4xf32>
    %c1_15 = arith.constant 1 : index
    %c0_16 = arith.constant 0 : index
    %c0_17 = arith.constant 0 : index
    %13 = vector.load %arg3[%c1_15, %c0_16, %c0_17] : memref<9x4x128xf32, #tpu.memory_space<vmem>>, vector<1x4x128xf32>
    %14 = vector.shape_cast %13 : vector<1x4x128xf32> to vector<4x128xf32>
    %cst_18 = arith.constant dense<0.000000e+00> : vector<288x128xf32>
    %15 = tpu.matmul %12, %14, %cst_18 {dimension_numbers = #tpu.dot_dimension_numbers<[1], [0], [0], [1], [0, 0, 1, 1], [], []>} : vector<288x4xf32>, vector<4x128xf32>, vector<288x128xf32> -> vector<288x128xf32>
    %c0_19 = arith.constant 0 : index
    %c128_20 = arith.constant 128 : index
    %16 = vector.load %arg7[%c0_19, %c128_20] : memref<288x256xf32, #tpu.memory_space<vmem>>, vector<288x128xf32>
    %17 = arith.addf %16, %15 : vector<288x128xf32>
    %c0_21 = arith.constant 0 : index
    %c128_22 = arith.constant 128 : index
    %18 = vector.load %arg7[%c0_21, %c128_22] : memref<288x256xf32, #tpu.memory_space<vmem>>, vector<288x128xf32>
    tpu.vector_store %arg7[%c0_21, %c128_22], %17 {strides = array<i32>} : memref<288x256xf32, #tpu.memory_space<vmem>>, vector<288x128xf32>,
    %c0_23 = arith.constant 0 : index
    %c2 = arith.constant 2 : index
    %c0_24 = arith.constant 0 : index
    %19 = vector.load %arg1[%c0_23, %c2, %c0_24] : memref<1x342x4xf32, #tpu.memory_space<vmem>>, vector<1x288x4xf32>
    %20 = vector.shape_cast %19 : vector<1x288x4xf32> to vector<288x4xf32>
    %c2_25 = arith.constant 2 : index
    %c0_26 = arith.constant 0 : index
    %c0_27 = arith.constant 0 : index
    %21 = vector.load %arg3[%c2_25, %c0_26, %c0_27] : memref<9x4x128xf32, #tpu.memory_space<vmem>>, vector<1x4x128xf32>
    %22 = vector.shape_cast %21 : vector<1x4x128xf32> to vector<4x128xf32>
    %cst_28 = arith.constant dense<0.000000e+00> : vector<288x128xf32>
    %23 = tpu.matmul %20, %22, %cst_28 {dimension_numbers = #tpu.dot_dimension_numbers<[1], [0], [0], [1], [0, 0, 1, 1], [], []>} : vector<288x4xf32>, vector<4x128xf32>, vector<288x128xf32> -> vector<288x128xf32>
    %c0_29 = arith.constant 0 : index
    %c128_30 = arith.constant 128 : index
    %24 = vector.load %arg7[%c0_29, %c128_30] : memref<288x256xf32, #tpu.memory_space<vmem>>, vector<288x128xf32>
    %25 = arith.addf %24, %23 : vector<288x128xf32>
    %c0_31 = arith.constant 0 : index
    %c128_32 = arith.constant 128 : index
    %26 = vector.load %arg7[%c0_31, %c128_32] : memref<288x256xf32, #tpu.memory_space<vmem>>, vector<288x128xf32>
    tpu.vector_store %arg7[%c0_31, %c128_32], %25 {strides = array<i32>} : memref<288x256xf32, #tpu.memory_space<vmem>>, vector<288x128xf32>,
    %c0_33 = arith.constant 0 : index
    %c18 = arith.constant 18 : index
    %c0_34 = arith.constant 0 : index
    %27 = vector.load %arg1[%c0_33, %c18, %c0_34] : memref<1x342x4xf32, #tpu.memory_space<vmem>>, vector<1x288x4xf32>
    %28 = vector.shape_cast %27 : vector<1x288x4xf32> to vector<288x4xf32>
    %c3 = arith.constant 3 : index
    %c0_35 = arith.constant 0 : index
    %c0_36 = arith.constant 0 : index
    %29 = vector.load %arg3[%c3, %c0_35, %c0_36] : memref<9x4x128xf32, #tpu.memory_space<vmem>>, vector<1x4x128xf32>
    %30 = vector.shape_cast %29 : vector<1x4x128xf32> to vector<4x128xf32>
    %cst_37 = arith.constant dense<0.000000e+00> : vector<288x128xf32>
    %31 = tpu.matmul %28, %30, %cst_37 {dimension_numbers = #tpu.dot_dimension_numbers<[1], [0], [0], [1], [0, 0, 1, 1], [], []>} : vector<288x4xf32>, vector<4x128xf32>, vector<288x128xf32> -> vector<288x128xf32>
    %c0_38 = arith.constant 0 : index
    %c128_39 = arith.constant 128 : index
    %32 = vector.load %arg7[%c0_38, %c128_39] : memref<288x256xf32, #tpu.memory_space<vmem>>, vector<288x128xf32>
    %33 = arith.addf %32, %31 : vector<288x128xf32>
    %c0_40 = arith.constant 0 : index
    %c128_41 = arith.constant 128 : index
    %34 = vector.load %arg7[%c0_40, %c128_41] : memref<288x256xf32, #tpu.memory_space<vmem>>, vector<288x128xf32>
    tpu.vector_store %arg7[%c0_40, %c128_41], %33 {strides = array<i32>} : memref<288x256xf32, #tpu.memory_space<vmem>>, vector<288x128xf32>,
    %c0_42 = arith.constant 0 : index
    %c19_43 = arith.constant 19 : index
    %c0_44 = arith.constant 0 : index
    %35 = vector.load %arg1[%c0_42, %c19_43, %c0_44] : memref<1x342x4xf32, #tpu.memory_space<vmem>>, vector<1x288x4xf32>
    %36 = vector.shape_cast %35 : vector<1x288x4xf32> to vector<288x4xf32>
    %c4 = arith.constant 4 : index
    %c0_45 = arith.constant 0 : index
    %c0_46 = arith.constant 0 : index
    %37 = vector.load %arg3[%c4, %c0_45, %c0_46] : memref<9x4x128xf32, #tpu.memory_space<vmem>>, vector<1x4x128xf32>
    %38 = vector.shape_cast %37 : vector<1x4x128xf32> to vector<4x128xf32>
    %cst_47 = arith.constant dense<0.000000e+00> : vector<288x128xf32>
    %39 = tpu.matmul %36, %38, %cst_47 {dimension_numbers = #tpu.dot_dimension_numbers<[1], [0], [0], [1], [0, 0, 1, 1], [], []>} : vector<288x4xf32>, vector<4x128xf32>, vector<288x128xf32> -> vector<288x128xf32>
    %c0_48 = arith.constant 0 : index
    %c128_49 = arith.constant 128 : index
    %40 = vector.load %arg7[%c0_48, %c128_49] : memref<288x256xf32, #tpu.memory_space<vmem>>, vector<288x128xf32>
    %41 = arith.addf %40, %39 : vector<288x128xf32>
    %c0_50 = arith.constant 0 : index
    %c128_51 = arith.constant 128 : index
    %42 = vector.load %arg7[%c0_50, %c128_51] : memref<288x256xf32, #tpu.memory_space<vmem>>, vector<288x128xf32>
    tpu.vector_store %arg7[%c0_50, %c128_51], %41 {strides = array<i32>} : memref<288x256xf32, #tpu.memory_space<vmem>>, vector<288x128xf32>,
    %c0_52 = arith.constant 0 : index
    %c20 = arith.constant 20 : index
    %c0_53 = arith.constant 0 : index
    %43 = vector.load %arg1[%c0_52, %c20, %c0_53] : memref<1x342x4xf32, #tpu.memory_space<vmem>>, vector<1x288x4xf32>
    %44 = vector.shape_cast %43 : vector<1x288x4xf32> to vector<288x4xf32>
    %c5 = arith.constant 5 : index
    %c0_54 = arith.constant 0 : index
    %c0_55 = arith.constant 0 : index
    %45 = vector.load %arg3[%c5, %c0_54, %c0_55] : memref<9x4x128xf32, #tpu.memory_space<vmem>>, vector<1x4x128xf32>
    %46 = vector.shape_cast %45 : vector<1x4x128xf32> to vector<4x128xf32>
    %cst_56 = arith.constant dense<0.000000e+00> : vector<288x128xf32>
    %47 = tpu.matmul %44, %46, %cst_56 {dimension_numbers = #tpu.dot_dimension_numbers<[1], [0], [0], [1], [0, 0, 1, 1], [], []>} : vector<288x4xf32>, vector<4x128xf32>, vector<288x128xf32> -> vector<288x128xf32>
    %c0_57 = arith.constant 0 : index
    %c128_58 = arith.constant 128 : index
    %48 = vector.load %arg7[%c0_57, %c128_58] : memref<288x256xf32, #tpu.memory_space<vmem>>, vector<288x128xf32>
    %49 = arith.addf %48, %47 : vector<288x128xf32>
    %c0_59 = arith.constant 0 : index
    %c128_60 = arith.constant 128 : index
    %50 = vector.load %arg7[%c0_59, %c128_60] : memref<288x256xf32, #tpu.memory_space<vmem>>, vector<288x128xf32>
    tpu.vector_store %arg7[%c0_59, %c128_60], %49 {strides = array<i32>} : memref<288x256xf32, #tpu.memory_space<vmem>>, vector<288x128xf32>,
    %c0_61 = arith.constant 0 : index
    %c36 = arith.constant 36 : index
    %c0_62 = arith.constant 0 : index
    %51 = vector.load %arg1[%c0_61, %c36, %c0_62] : memref<1x342x4xf32, #tpu.memory_space<vmem>>, vector<1x288x4xf32>
    %52 = vector.shape_cast %51 : vector<1x288x4xf32> to vector<288x4xf32>
    %c6 = arith.constant 6 : index
    %c0_63 = arith.constant 0 : index
    %c0_64 = arith.constant 0 : index
    %53 = vector.load %arg3[%c6, %c0_63, %c0_64] : memref<9x4x128xf32, #tpu.memory_space<vmem>>, vector<1x4x128xf32>
    %54 = vector.shape_cast %53 : vector<1x4x128xf32> to vector<4x128xf32>
    %cst_65 = arith.constant dense<0.000000e+00> : vector<288x128xf32>
    %55 = tpu.matmul %52, %54, %cst_65 {dimension_numbers = #tpu.dot_dimension_numbers<[1], [0], [0], [1], [0, 0, 1, 1], [], []>} : vector<288x4xf32>, vector<4x128xf32>, vector<288x128xf32> -> vector<288x128xf32>
    %c0_66 = arith.constant 0 : index
    %c128_67 = arith.constant 128 : index
    %56 = vector.load %arg7[%c0_66, %c128_67] : memref<288x256xf32, #tpu.memory_space<vmem>>, vector<288x128xf32>
    %57 = arith.addf %56, %55 : vector<288x128xf32>
    %c0_68 = arith.constant 0 : index
    %c128_69 = arith.constant 128 : index
    %58 = vector.load %arg7[%c0_68, %c128_69] : memref<288x256xf32, #tpu.memory_space<vmem>>, vector<288x128xf32>
    tpu.vector_store %arg7[%c0_68, %c128_69], %57 {strides = array<i32>} : memref<288x256xf32, #tpu.memory_space<vmem>>, vector<288x128xf32>,
    %c0_70 = arith.constant 0 : index
    %c37 = arith.constant 37 : index
    %c0_71 = arith.constant 0 : index
    %59 = vector.load %arg1[%c0_70, %c37, %c0_71] : memref<1x342x4xf32, #tpu.memory_space<vmem>>, vector<1x288x4xf32>
    %60 = vector.shape_cast %59 : vector<1x288x4xf32> to vector<288x4xf32>
    %c7 = arith.constant 7 : index
    %c0_72 = arith.constant 0 : index
    %c0_73 = arith.constant 0 : index
    %61 = vector.load %arg3[%c7, %c0_72, %c0_73] : memref<9x4x128xf32, #tpu.memory_space<vmem>>, vector<1x4x128xf32>
    %62 = vector.shape_cast %61 : vector<1x4x128xf32> to vector<4x128xf32>
    %cst_74 = arith.constant dense<0.000000e+00> : vector<288x128xf32>
    %63 = tpu.matmul %60, %62, %cst_74 {dimension_numbers = #tpu.dot_dimension_numbers<[1], [0], [0], [1], [0, 0, 1, 1], [], []>} : vector<288x4xf32>, vector<4x128xf32>, vector<288x128xf32> -> vector<288x128xf32>
    %c0_75 = arith.constant 0 : index
    %c128_76 = arith.constant 128 : index
    %64 = vector.load %arg7[%c0_75, %c128_76] : memref<288x256xf32, #tpu.memory_space<vmem>>, vector<288x128xf32>
    %65 = arith.addf %64, %63 : vector<288x128xf32>
    %c0_77 = arith.constant 0 : index
    %c128_78 = arith.constant 128 : index
    %66 = vector.load %arg7[%c0_77, %c128_78] : memref<288x256xf32, #tpu.memory_space<vmem>>, vector<288x128xf32>
    tpu.vector_store %arg7[%c0_77, %c128_78], %65 {strides = array<i32>} : memref<288x256xf32, #tpu.memory_space<vmem>>, vector<288x128xf32>,
    %c0_79 = arith.constant 0 : index
    %c38 = arith.constant 38 : index
    %c0_80 = arith.constant 0 : index
    %67 = vector.load %arg1[%c0_79, %c38, %c0_80] : memref<1x342x4xf32, #tpu.memory_space<vmem>>, vector<1x288x4xf32>
    %68 = vector.shape_cast %67 : vector<1x288x4xf32> to vector<288x4xf32>
    %c8 = arith.constant 8 : index
    %c0_81 = arith.constant 0 : index
    %c0_82 = arith.constant 0 : index
    %69 = vector.load %arg3[%c8, %c0_81, %c0_82] : memref<9x4x128xf32, #tpu.memory_space<vmem>>, vector<1x4x128xf32>
    %70 = vector.shape_cast %69 : vector<1x4x128xf32> to vector<4x128xf32>
    %cst_83 = arith.constant dense<0.000000e+00> : vector<288x128xf32>
    %71 = tpu.matmul %68, %70, %cst_83 {dimension_numbers = #tpu.dot_dimension_numbers<[1], [0], [0], [1], [0, 0, 1, 1], [], []>} : vector<288x4xf32>, vector<4x128xf32>, vector<288x128xf32> -> vector<288x128xf32>
    %c0_84 = arith.constant 0 : index
    %c128_85 = arith.constant 128 : index
    %72 = vector.load %arg7[%c0_84, %c128_85] : memref<288x256xf32, #tpu.memory_space<vmem>>, vector<288x128xf32>
    %73 = arith.addf %72, %71 : vector<288x128xf32>
    %c0_86 = arith.constant 0 : index
    %c128_87 = arith.constant 128 : index
    %74 = vector.load %arg7[%c0_86, %c128_87] : memref<288x256xf32, #tpu.memory_space<vmem>>, vector<288x128xf32>
    tpu.vector_store %arg7[%c0_86, %c128_87], %73 {strides = array<i32>} : memref<288x256xf32, #tpu.memory_space<vmem>>, vector<288x128xf32>,
    %c0_88 = arith.constant 0 : index
    %c0_89 = arith.constant 0 : index
    %75 = vector.load %arg7[%c0_88, %c0_89] : memref<288x256xf32, #tpu.memory_space<vmem>>, vector<288x256xf32>
    %c0_90 = arith.constant 0 : index
    %c0_91 = arith.constant 0 : index
    %c0_92 = arith.constant 0 : index
    %76 = vector.load %arg5[%c0_90, %c0_91, %c0_92] : memref<1x288x256xf32, #tpu.memory_space<vmem>>, vector<1x288x256xf32>
    %77 = vector.shape_cast %76 : vector<1x288x256xf32> to vector<288x256xf32>
    %78 = vector.shape_cast %75 : vector<288x256xf32> to vector<1x288x256xf32>
    tpu.vector_store %arg5[%c0_90, %c0_91, %c0_92], %78 {strides = array<i32>} : memref<1x288x256xf32, #tpu.memory_space<vmem>>, vector<1x288x256xf32>,
    %c0_93 = arith.constant 0 : index
    %c0_94 = arith.constant 0 : index
    %79 = vector.load %arg4[%c0_93, %c0_94] : memref<288x1xf32, #tpu.memory_space<vmem>>, vector<288x1xf32>
    %80 = vector.broadcast %79 : vector<288x1xf32> to vector<288x256xf32>
    %81 = arith.mulf %75, %80 : vector<288x256xf32>
    %cst_95 = arith.constant dense<0.000000e+00> : vector<256xf32>
    %82 = vector.multi_reduction <add>, %81, %cst_95 [0] : vector<288x256xf32> to vector<256xf32>
    %83 = vector.shape_cast %82 : vector<256xf32> to vector<1x256xf32>
    %c0_96 = arith.constant 0 : index
    %c0_97 = arith.constant 0 : index
    %c0_98 = arith.constant 0 : index
    %84 = vector.load %arg6[%c0_96, %c0_97, %c0_98] : memref<1x2x256xf32, #tpu.memory_space<vmem>>, vector<1x1x256xf32>
    %85 = vector.shape_cast %84 : vector<1x1x256xf32> to vector<1x256xf32>
    %86 = vector.shape_cast %83 : vector<1x256xf32> to vector<1x1x256xf32>
    tpu.vector_store %arg6[%c0_96, %c0_97, %c0_98], %86 {strides = array<i32>} : memref<1x2x256xf32, #tpu.memory_space<vmem>>, vector<1x1x256xf32>,
    %87 = arith.mulf %81, %75 : vector<288x256xf32>
    %cst_99 = arith.constant dense<0.000000e+00> : vector<256xf32>
    %88 = vector.multi_reduction <add>, %87, %cst_99 [0] : vector<288x256xf32> to vector<256xf32>
    %89 = vector.shape_cast %88 : vector<256xf32> to vector<1x256xf32>
    %c0_100 = arith.constant 0 : index
    %c1_101 = arith.constant 1 : index
    %c0_102 = arith.constant 0 : index
    %90 = vector.load %arg6[%c0_100, %c1_101, %c0_102] : memref<1x2x256xf32, #tpu.memory_space<vmem>>, vector<1x1x256xf32>
    %91 = vector.shape_cast %90 : vector<1x1x256xf32> to vector<1x256xf32>
    %92 = vector.shape_cast %89 : vector<1x256xf32> to vector<1x1x256xf32>
    tpu.vector_store %arg6[%c0_100, %c1_101, %c0_102], %92 {strides = array<i32>} : memref<1x2x256xf32, #tpu.memory_space<vmem>>, vector<1x1x256xf32>,
    return
  }
  func.func @transform_0(%arg0: i32) -> (i32, i32, i32) {
    %c0_i32 = arith.constant 0 : i32
    %c0_i32_0 = arith.constant 0 : i32
    %c0_i32_1 = arith.constant 0 : i32
    return %arg0, %c0_i32, %c0_i32_0 : i32, i32, i32
  }
  func.func @transform_1(%arg0: i32) -> (i32, i32) {
    %c0_i32 = arith.constant 0 : i32
    %c0_i32_0 = arith.constant 0 : i32
    %c0_i32_1 = arith.constant 0 : i32
    return %c0_i32, %c0_i32_0 : i32, i32
  }
  func.func @transform_2(%arg0: i32) -> (i32, i32, i32) {
    %c0_i32 = arith.constant 0 : i32
    %c0_i32_0 = arith.constant 0 : i32
    %c0_i32_1 = arith.constant 0 : i32
    %c0_i32_2 = arith.constant 0 : i32
    return %c0_i32, %c0_i32_0, %c0_i32_1 : i32, i32, i32
  }
  func.func @transform_3(%arg0: i32) -> (i32, i32) {
    %c0_i32 = arith.constant 0 : i32
    %c0_i32_0 = arith.constant 0 : i32
    %c0_i32_1 = arith.constant 0 : i32
    return %c0_i32, %c0_i32_0 : i32, i32
  }
  func.func @transform_4(%arg0: i32) -> (i32, i32, i32) {
    %c0_i32 = arith.constant 0 : i32
    %c0_i32_0 = arith.constant 0 : i32
    %c0_i32_1 = arith.constant 0 : i32
    return %arg0, %c0_i32, %c0_i32_0 : i32, i32, i32
  }
  func.func @transform_5(%arg0: i32) -> (i32, i32, i32) {
    %c0_i32 = arith.constant 0 : i32
    %c0_i32_0 = arith.constant 0 : i32
    %c0_i32_1 = arith.constant 0 : i32
    return %arg0, %c0_i32, %c0_i32_0 : i32, i32, i32
  }
}

module attributes {stable_mosaic.version = 11 : i64} {
  func.func @_bn_relu_kernel(%arg0: i32, %arg1: memref<1x288x256xf32, #tpu.memory_space<vmem>>, %arg2: memref<2x256xf32, #tpu.memory_space<vmem>>, %arg3: memref<1x288x256xf32, #tpu.memory_space<vmem>>) attributes {dimension_semantics = [#tpu.dimension_semantics<parallel>], iteration_bounds = array<i64: 2>, scalar_prefetch = 0 : i64, scratch_operands = 0 : i64, tpu.core_type = #tpu.core_type<tc>, window_params = [{transform_indices = @transform_0, window_bounds = array<i64: 1, 288, 256>}, {pipeline_mode = #tpu.pipeline_mode<synchronous>, transform_indices = @transform_1, window_bounds = array<i64: 2, 256>}, {transform_indices = @transform_2, window_bounds = array<i64: 1, 288, 256>}]} {
    %c0 = arith.constant 0 : index
    %c0_0 = arith.constant 0 : index
    %0 = vector.load %arg2[%c0, %c0_0] : memref<2x256xf32, #tpu.memory_space<vmem>>, vector<1x256xf32>
    %c1 = arith.constant 1 : index
    %c0_1 = arith.constant 0 : index
    %1 = vector.load %arg2[%c1, %c0_1] : memref<2x256xf32, #tpu.memory_space<vmem>>, vector<1x256xf32>
    %cst = arith.constant 0.001953125 : f32
    %2 = vector.broadcast %cst : f32 to vector<1x256xf32>
    %3 = arith.mulf %0, %2 : vector<1x256xf32>
    %cst_2 = arith.constant 0.001953125 : f32
    %4 = vector.broadcast %cst_2 : f32 to vector<1x256xf32>
    %5 = arith.mulf %1, %4 : vector<1x256xf32>
    %6 = arith.mulf %3, %3 : vector<1x256xf32>
    %7 = arith.subf %5, %6 : vector<1x256xf32>
    %cst_3 = arith.constant 0.000000e+00 : f32
    %8 = vector.broadcast %cst_3 : f32 to vector<1x256xf32>
    %9 = arith.maximumf %7, %8 : vector<1x256xf32>
    %cst_4 = arith.constant 9.99999974E-6 : f32
    %10 = vector.broadcast %cst_4 : f32 to vector<1x256xf32>
    %11 = arith.addf %9, %10 : vector<1x256xf32>
    %12 = math.rsqrt %11 : vector<1x256xf32>
    %c0_5 = arith.constant 0 : index
    %c0_6 = arith.constant 0 : index
    %c0_7 = arith.constant 0 : index
    %13 = vector.load %arg1[%c0_5, %c0_6, %c0_7] : memref<1x288x256xf32, #tpu.memory_space<vmem>>, vector<1x288x256xf32>
    %14 = vector.shape_cast %13 : vector<1x288x256xf32> to vector<288x256xf32>
    %15 = vector.broadcast %3 : vector<1x256xf32> to vector<288x256xf32>
    %16 = arith.subf %14, %15 : vector<288x256xf32>
    %17 = vector.broadcast %12 : vector<1x256xf32> to vector<288x256xf32>
    %18 = arith.mulf %16, %17 : vector<288x256xf32>
    %cst_8 = arith.constant 0.000000e+00 : f32
    %19 = vector.broadcast %cst_8 : f32 to vector<288x256xf32>
    %20 = arith.maximumf %18, %19 : vector<288x256xf32>
    %c0_9 = arith.constant 0 : index
    %c0_10 = arith.constant 0 : index
    %c0_11 = arith.constant 0 : index
    %21 = vector.load %arg3[%c0_9, %c0_10, %c0_11] : memref<1x288x256xf32, #tpu.memory_space<vmem>>, vector<1x288x256xf32>
    %22 = vector.shape_cast %21 : vector<1x288x256xf32> to vector<288x256xf32>
    %23 = vector.shape_cast %20 : vector<288x256xf32> to vector<1x288x256xf32>
    tpu.vector_store %arg3[%c0_9, %c0_10, %c0_11], %23 {strides = array<i32>} : memref<1x288x256xf32, #tpu.memory_space<vmem>>, vector<1x288x256xf32>,
    return
  }
  func.func @transform_0(%arg0: i32) -> (i32, i32, i32) {
    %c0_i32 = arith.constant 0 : i32
    %c0_i32_0 = arith.constant 0 : i32
    %c0_i32_1 = arith.constant 0 : i32
    return %arg0, %c0_i32, %c0_i32_0 : i32, i32, i32
  }
  func.func @transform_1(%arg0: i32) -> (i32, i32) {
    %c0_i32 = arith.constant 0 : i32
    %c0_i32_0 = arith.constant 0 : i32
    %c0_i32_1 = arith.constant 0 : i32
    return %c0_i32, %c0_i32_0 : i32, i32
  }
  func.func @transform_2(%arg0: i32) -> (i32, i32, i32) {
    %c0_i32 = arith.constant 0 : i32
    %c0_i32_0 = arith.constant 0 : i32
    %c0_i32_1 = arith.constant 0 : i32
    return %arg0, %c0_i32, %c0_i32_0 : i32, i32, i32
  }
}

</mosaic_0001>

<bundles_post_ra>
// kernel: inception_forward.3
= control target key start
LH: loop header
LB: loop body
LE: loop exit
PB: predicated region body
PF: predicated region fallthrough
CT: control target
= control target key end

     0   :  { %s635_s9 = smov 0   ;;  %s1265_s0 = inlined_call_operand.vmem [shape: f32[2,288,256], index: 0, kind: input, shape index: {}]   ;;  %s1266_s1 = inlined_call_operand.vmem [shape: f32[2,256], index: 1, kind: input, shape index: {}]   ;;  %s1267_s2 = inlined_call_operand.vmem [shape: f32[2,288,256], index: 2, kind: output, shape index: {}]  }
   0x1 LB: > { %s591_s10 = sadd.s32 4294967295, %s618_s9   ;;  %p595_p0 = scmp.ge.s32.totalorder %s618_s9, 1  ;;  %s618_s9 = sphi %s635_s9, %s12_s9  }
   0x2   : > { %p112_p1 = scmp.lt.s32.totalorder %s618_s9, 3 }
   0x4   : > { %p113_p2 = pnand %p595_p0, %p112_p1 }
   0x5   : > { %p134_p3 = scmp.lt.s32.totalorder (!%p113_p2), %s591_s10, 1  ;;  %v144_v0 = vld [vmem:[%s1266_s1] ss:$2 sm:$0x3] (!%p113_p2)  ;;  %v227_v1 = vlaneseq (!%p113_p2) }
   0x6   : > { %116 = sbr.rel (%p113_p2) target bundleno = 87 (0x57), region = 28  ;;  %v598_v2 = vld [vmem:[%s1266_s1 + $0x1] ss:$2 sm:$0x3] (!%p113_p2)  ;;  %v147_v3 = vmul.f32 (!%p113_p2), 0.001953125, %v144_v0 }
   0x7   : > { %v148_v4 = vmul.f32 (!%p113_p2), 0.001953125, %v598_v2  ;;  %v651_v5 = vshrl.u32 (!%p113_p2), %v227_v1, 7 }
   0x8   : > { %v149_v6 = vmul.f32 (!%p113_p2), %v147_v3, %v147_v3 }
   0x9   : > { %v229_v7 = vsub.s32 (!%p113_p2), 0, %v651_v5  ;;  %v233_v8 = vsub.s32 (!%p113_p2), 1, %v651_v5 }
   0xa   : > { %v150_v9 = vsub.f32 (!%p113_p2), %v148_v4, %v149_v6 }
   0xb   : > { %v668_v12 = vrot.slane (!%p113_p2), %v147_v3, %v229_v7  ;;  %v675_v14 = vrot.slane (!%p113_p2), %v147_v3, %v233_v8 }
   0xc   : > { %v151_v10 = vmax.f32 (!%p113_p2), %v150_v9, 0.0 }
   0xd   : > { %s1311_s10 = smov (!%p134_p3, %s591_s10), 1 }
   0xe   : > { %s601_s15 = smul.u32 576, %s1311_s10  ;;  %v152_v19 = vadd.f32 1e-05, %v151_v10 }
  0x10   : > { %s661_s18 = scalar_lea.vmem %s1265_s0, %s601_s15  ;;  %610 = vrsqrt.f32 %v152_v19  ;;  %s940_s21 = scalar_lea.vmem %s1267_s2, %s601_s15 }
  0x11   : > { %v664_v11 = vld [vmem:[%s661_s18] sm:$0xff]  ;;  %v671_v13 = vld [vmem:[%s661_s18 + $0x8] sm:$0xff]  ;;  %v678_v15 = vld [vmem:[%s661_s18 + $0x10] sm:$0xff] }
  0x12   : > { %v681_v16 = vld [vmem:[%s661_s18 + $0x18] sm:$0xff]  ;;  %v684_v17 = vld [vmem:[%s661_s18 + $0x20] sm:$0xff]  ;;  %v687_v18 = vld [vmem:[%s661_s18 + $0x28] sm:$0xff]  ;;  %v237_v26 = vsub.f32 %v664_v11, %v668_v12  ;;  %v238_v27 = vsub.f32 %v671_v13, %v675_v14  ;;  %v239_v31 = vsub.f32 %v678_v15, %v668_v12 }
  0x13   : > { %v690_v20 = vld [vmem:[%s661_s18 + $0x30] sm:$0xff]  ;;  %v693_v21 = vld [vmem:[%s661_s18 + $0x38] sm:$0xff]  ;;  %v696_v22 = vld [vmem:[%s661_s18 + $0x40] sm:$0xff]  ;;  %v240_v32 = vsub.f32 %v681_v16, %v675_v14  ;;  %v241_v33 = vsub.f32 %v684_v17, %v668_v12  ;;  %v242_v34 = vsub.f32 %v687_v18, %v675_v14 }
  0x14   : > { %v699_v23 = vld [vmem:[%s661_s18 + $0x48] sm:$0xff]  ;;  %v702_v24 = vld [vmem:[%s661_s18 + $0x50] sm:$0xff]  ;;  %v705_v25 = vld [vmem:[%s661_s18 + $0x58] sm:$0xff]  ;;  %v1268_v15 = vsub.f32 %v690_v20, %v668_v12  ;;  %v1270_v20 = vsub.f32 %v696_v22, %v668_v12 }
  0x15   : > { %v712_v28 = vld [vmem:[%s661_s18 + $0x60] sm:$0xff]  ;;  %v715_v29 = vld [vmem:[%s661_s18 + $0x68] sm:$0xff]  ;;  %v718_v30 = vld [vmem:[%s661_s18 + $0x70] sm:$0xff] }
  0x16   : > { %v729_v35 = vld [vmem:[%s661_s18 + $0x78] sm:$0xff]  ;;  %v732_v36 = vld [vmem:[%s661_s18 + $0x80] sm:$0xff]  ;;  %v735_v37 = vld [vmem:[%s661_s18 + $0x88] sm:$0xff]  ;;  %v1274_v22 = vsub.f32 %v712_v28, %v668_v12 }
  0x17   : > { %v746_v42 = vld [vmem:[%s661_s18 + $0x90] sm:$0xff]  ;;  %v749_v43 = vld [vmem:[%s661_s18 + $0x98] sm:$0xff]  ;;  %v752_v44 = vld [vmem:[%s661_s18 + $0xa0] sm:$0xff] }
  0x18   : > { %v763_v49 = vld [vmem:[%s661_s18 + $0xa8] sm:$0xff]  ;;  %v766_v50 = vld [vmem:[%s661_s18 + $0xb0] sm:$0xff]  ;;  %v769_v51 = vld [vmem:[%s661_s18 + $0xb8] sm:$0xff] }
  0x19   : > { %v780_v56 = vld [vmem:[%s661_s18 + $0xc0] sm:$0xff]  ;;  %v783_v57 = vld [vmem:[%s661_s18 + $0xc8] sm:$0xff]  ;;  %v786_v58 = vld [vmem:[%s661_s18 + $0xd0] sm:$0xff] }
  0x1a   : > { %v797_v63 = vld [vmem:[%s661_s18 + $0xd8] sm:$0xff]  ;;  %v800_v0 = vld [vmem:[%s661_s18 + $0xe0] sm:$0xff]  ;;  %v803_v1 = vld [vmem:[%s661_s18 + $0xe8] sm:$0xff]  ;;  %v611_v47 = vpop.eup %610 }
  0x1b   : > { %v814_v9 = vld [vmem:[%s661_s18 + $0xf0] sm:$0xff]  ;;  %v817_v10 = vld [vmem:[%s661_s18 + $0xf8] sm:$0xff]  ;;  %v820_v19 = vld [vmem:[%s661_s18 + $0x100] sm:$0xff]  ;;  %v892_v40 = vrot.slane %v611_v47, %v229_v7  ;;  %v896_v3 = vrot.slane %v611_v47, %v233_v8 }
  0x1c   : > { %v831_v62 = vld [vmem:[%s661_s18 + $0x108] sm:$0xff]  ;;  %v834_v61 = vld [vmem:[%s661_s18 + $0x110] sm:$0xff]  ;;  %v837_v60 = vld [vmem:[%s661_s18 + $0x118] sm:$0xff] }
  0x1d   : > { %v848_v59 = vld [vmem:[%s661_s18 + $0x120] sm:$0xff]  ;;  %v851_v55 = vld [vmem:[%s661_s18 + $0x128] sm:$0xff]  ;;  %v854_v54 = vld [vmem:[%s661_s18 + $0x130] sm:$0xff]  ;;  %v320_v6 = vmul.f32 %v892_v40, %v237_v26  ;;  %v321_v4 = vmul.f32 %v896_v3, %v238_v27  ;;  %v322_v5 = vmul.f32 %v892_v40, %v239_v31  ;;  %v323_v47 = vmul.f32 %v896_v3, %v240_v32 }
  0x1e   : > { %v865_v53 = vld [vmem:[%s661_s18 + $0x138] sm:$0xff]  ;;  %v868_v52 = vld [vmem:[%s661_s18 + $0x140] sm:$0xff]  ;;  %v871_v48 = vld [vmem:[%s661_s18 + $0x148] sm:$0xff]  ;;  %v324_v11 = vmul.f32 %v892_v40, %v241_v33  ;;  %v325_v13 = vmul.f32 %v896_v3, %v242_v34  ;;  %v326_v16 = vmul.f32 %v892_v40, %v1268_v15  ;;  %v1269_v26 = vsub.f32 %v693_v21, %v675_v14 }
  0x1f   : > { %v882_v46 = vld [vmem:[%s661_s18 + $0x150] sm:$0xff]  ;;  %v885_v45 = vld [vmem:[%s661_s18 + $0x158] sm:$0xff]  ;;  %v888_v41 = vld [vmem:[%s661_s18 + $0x160] sm:$0xff]  ;;  %v392_v27 = vmax.f32 %v320_v6, 0.0  ;;  %v393_v31 = vmax.f32 %v321_v4, 0.0  ;;  %v394_v32 = vmax.f32 %v322_v5, 0.0  ;;  %v328_v21 = vmul.f32 %v892_v40, %v1270_v20 }
  0x20   : > { %v903_v2 = vld [vmem:[%s661_s18 + $0x168] sm:$0xff]  ;;  %v906_v39 = vld [vmem:[%s661_s18 + $0x170] sm:$0xff]  ;;  %v909_v38 = vld [vmem:[%s661_s18 + $0x178] sm:$0xff]  ;;  %v327_v17 = vmul.f32 %v896_v3, %v1269_v26  ;;  %v395_v33 = vmax.f32 %v323_v47, 0.0  ;;  %v396_v18 = vmax.f32 %v324_v11, 0.0  ;;  %v397_v34 = vmax.f32 %v325_v13, 0.0 }
  0x21   : > { %v398_v8 = vmax.f32 %v326_v16, 0.0  ;;  %464 = vst [vmem:[%s940_s21] sm:$0xff] %v392_v27  ;;  %465 = vst [vmem:[%s940_s21 + $0x8] sm:$0xff] %v393_v31  ;;  %v1271_v4 = vsub.f32 %v699_v23, %v675_v14  ;;  %v1272_v5 = vsub.f32 %v702_v24, %v668_v12  ;;  %v1273_v11 = vsub.f32 %v705_v25, %v675_v14 }
  0x22   : > { %v399_v7 = vmax.f32 %v327_v17, 0.0  ;;  %466 = vst [vmem:[%s940_s21 + $0x10] sm:$0xff] %v394_v32  ;;  %467 = vst [vmem:[%s940_s21 + $0x18] sm:$0xff] %v395_v33  ;;  %v332_v23 = vmul.f32 %v892_v40, %v1274_v22  ;;  %v1275_v24 = vsub.f32 %v715_v29, %v675_v14  ;;  %v1276_v15 = vsub.f32 %v718_v30, %v668_v12 }
  0x23   : > { %v329_v6 = vmul.f32 %v896_v3, %v1271_v4  ;;  %v330_v47 = vmul.f32 %v892_v40, %v1272_v5  ;;  %v331_v13 = vmul.f32 %v896_v3, %v1273_v11  ;;  %468 = vst [vmem:[%s940_s21 + $0x20] sm:$0xff] %v396_v18  ;;  %469 = vst [vmem:[%s940_s21 + $0x28] sm:$0xff] %v397_v34  ;;  %v400_v26 = vmax.f32 %v328_v21, 0.0 }
  0x24   : > { %470 = vst [vmem:[%s940_s21 + $0x30] sm:$0xff] %v398_v8  ;;  %471 = vst [vmem:[%s940_s21 + $0x38] sm:$0xff] %v399_v7  ;;  %v333_v25 = vmul.f32 %v896_v3, %v1275_v24  ;;  %v334_v16 = vmul.f32 %v892_v40, %v1276_v15  ;;  %v1277_v8 = vsub.f32 %v729_v35, %v675_v14  ;;  %v404_v29 = vmax.f32 %v332_v23, 0.0 }
  0x25   : > { %v401_v28 = vmax.f32 %v329_v6, 0.0  ;;  %v402_v17 = vmax.f32 %v330_v47, 0.0  ;;  %v403_v27 = vmax.f32 %v331_v13, 0.0  ;;  %472 = vst [vmem:[%s940_s21 + $0x40] sm:$0xff] %v400_v26  ;;  %v1278_v30 = vsub.f32 %v732_v36, %v668_v12 }
  0x26   : > { %v335_v7 = vmul.f32 %v896_v3, %v1277_v8  ;;  %v405_v31 = vmax.f32 %v333_v25, 0.0  ;;  %v406_v32 = vmax.f32 %v334_v16, 0.0  ;;  %v1279_v18 = vsub.f32 %v735_v37, %v675_v14  ;;  %476 = vst [vmem:[%s940_s21 + $0x60] sm:$0xff] %v404_v29 }
  0x27   : > { %473 = vst [vmem:[%s940_s21 + $0x48] sm:$0xff] %v401_v28  ;;  %474 = vst [vmem:[%s940_s21 + $0x50] sm:$0xff] %v402_v17  ;;  %v336_v35 = vmul.f32 %v892_v40, %v1278_v30  ;;  %v1280_v20 = vsub.f32 %v746_v42, %v668_v12  ;;  %v1281_v4 = vsub.f32 %v749_v43, %v675_v14 }
  0x28   : > { %v407_v33 = vmax.f32 %v335_v7, 0.0  ;;  %475 = vst [vmem:[%s940_s21 + $0x58] sm:$0xff] %v403_v27  ;;  %v337_v34 = vmul.f32 %v896_v3, %v1279_v18  ;;  %477 = vst [vmem:[%s940_s21 + $0x68] sm:$0xff] %v405_v31  ;;  %v1282_v36 = vsub.f32 %v752_v44, %v668_v12  ;;  %v1283_v42 = vsub.f32 %v763_v49, %v675_v14 }
  0x29   : > { %v338_v21 = vmul.f32 %v892_v40, %v1280_v20  ;;  %v339_v6 = vmul.f32 %v896_v3, %v1281_v4  ;;  %478 = vst [vmem:[%s940_s21 + $0x70] sm:$0xff] %v406_v32  ;;  %v1284_v5 = vsub.f32 %v766_v50, %v668_v12  ;;  %v1285_v11 = vsub.f32 %v769_v51, %v675_v14 }
  0x2a   : > { %479 = vst [vmem:[%s940_s21 + $0x78] sm:$0xff] %v407_v33  ;;  %v340_v37 = vmul.f32 %v892_v40, %v1282_v36  ;;  %v341_v43 = vmul.f32 %v896_v3, %v1283_v42  ;;  %v408_v22 = vmax.f32 %v336_v35, 0.0  ;;  %v409_v44 = vmax.f32 %v337_v34, 0.0 }
  0x2b   : > { %v342_v47 = vmul.f32 %v892_v40, %v1284_v5  ;;  %v343_v13 = vmul.f32 %v896_v3, %v1285_v11  ;;  %v410_v23 = vmax.f32 %v338_v21, 0.0  ;;  %v411_v24 = vmax.f32 %v339_v6, 0.0 }
  0x2c   : > { %v412_v49 = vmax.f32 %v340_v37, 0.0  ;;  %v413_v25 = vmax.f32 %v341_v43, 0.0  ;;  %480 = vst [vmem:[%s940_s21 + $0x80] sm:$0xff] %v408_v22  ;;  %481 = vst [vmem:[%s940_s21 + $0x88] sm:$0xff] %v409_v44  ;;  %v1286_v50 = vsub.f32 %v780_v56, %v668_v12  ;;  %v1287_v8 = vsub.f32 %v783_v57, %v675_v14 }
  0x2d   : > { %v414_v15 = vmax.f32 %v342_v47, 0.0  ;;  %v415_v16 = vmax.f32 %v343_v13, 0.0  ;;  %482 = vst [vmem:[%s940_s21 + $0x90] sm:$0xff] %v410_v23  ;;  %483 = vst [vmem:[%s940_s21 + $0x98] sm:$0xff] %v411_v24  ;;  %v1288_v26 = vsub.f32 %v786_v58, %v668_v12  ;;  %v1289_v17 = vsub.f32 %v797_v63, %v675_v14 }
  0x2e   : > { %v344_v51 = vmul.f32 %v892_v40, %v1286_v50  ;;  %v345_v7 = vmul.f32 %v896_v3, %v1287_v8  ;;  %484 = vst [vmem:[%s940_s21 + $0xa0] sm:$0xff] %v412_v49  ;;  %485 = vst [vmem:[%s940_s21 + $0xa8] sm:$0xff] %v413_v25  ;;  %v1290_v56 = vsub.f32 %v800_v0, %v668_v12 }
  0x2f   : > { %v346_v28 = vmul.f32 %v892_v40, %v1288_v26  ;;  %v347_v27 = vmul.f32 %v896_v3, %v1289_v17  ;;  %486 = vst [vmem:[%s940_s21 + $0xb0] sm:$0xff] %v414_v15  ;;  %487 = vst [vmem:[%s940_s21 + $0xb8] sm:$0xff] %v415_v16  ;;  %v1291_v58 = vsub.f32 %v803_v1, %v675_v14  ;;  %v203_v26 = vld [vmem:[%s661_s18 + $0x188] sm:$0xff] }
  0x30   : > { %v348_v57 = vmul.f32 %v892_v40, %v1290_v56  ;;  %v1292_v29 = vsub.f32 %v814_v9, %v668_v12  ;;  %v1293_v32 = vsub.f32 %v817_v10, %v675_v14  ;;  %v416_v30 = vmax.f32 %v344_v51, 0.0 }
  0x31   : > { %v349_v63 = vmul.f32 %v896_v3, %v1291_v58  ;;  %v417_v0 = vmax.f32 %v345_v7, 0.0  ;;  %v418_v35 = vmax.f32 %v346_v28, 0.0  ;;  %v419_v18 = vmax.f32 %v347_v27, 0.0  ;;  %v202_v7 = vld [vmem:[%s661_s18 + $0x180] sm:$0xff]  ;;  %v204_v28 = vld [vmem:[%s661_s18 + $0x190] sm:$0xff] }
  0x32   : > { %v350_v31 = vmul.f32 %v892_v40, %v1292_v29  ;;  %v351_v33 = vmul.f32 %v896_v3, %v1293_v32  ;;  %v420_v1 = vmax.f32 %v348_v57, 0.0  ;;  %488 = vst [vmem:[%s940_s21 + $0xc0] sm:$0xff] %v416_v30  ;;  %v1294_v9 = vsub.f32 %v820_v19, %v668_v12  ;;  %v207_v29 = vld [vmem:[%s661_s18 + $0x1a8] sm:$0xff]  ;;  %v209_v30 = vld [vmem:[%s661_s18 + $0x1b8] sm:$0xff] }
  0x33   : > { %v421_v34 = vmax.f32 %v349_v63, 0.0  ;;  %489 = vst [vmem:[%s940_s21 + $0xc8] sm:$0xff] %v417_v0  ;;  %490 = vst [vmem:[%s940_s21 + $0xd0] sm:$0xff] %v418_v35  ;;  %v1295_v4 = vsub.f32 %v831_v62, %v675_v14  ;;  %v1296_v36 = vsub.f32 %v834_v61, %v668_v12  ;;  %v1297_v42 = vsub.f32 %v837_v60, %v675_v14  ;;  %v206_v63 = vld [vmem:[%s661_s18 + $0x1a0] sm:$0xff] }
  0x34   : > { %v422_v20 = vmax.f32 %v350_v31, 0.0  ;;  %v423_v21 = vmax.f32 %v351_v33, 0.0  ;;  %491 = vst [vmem:[%s940_s21 + $0xd8] sm:$0xff] %v419_v18  ;;  %v352_v10 = vmul.f32 %v892_v40, %v1294_v9  ;;  %492 = vst [vmem:[%s940_s21 + $0xe0] sm:$0xff] %v420_v1  ;;  %v1298_v62 = vsub.f32 %v848_v59, %v668_v12 }
  0x35   : > { %v353_v6 = vmul.f32 %v896_v3, %v1295_v4  ;;  %v354_v37 = vmul.f32 %v892_v40, %v1296_v36  ;;  %v355_v43 = vmul.f32 %v896_v3, %v1297_v42  ;;  %493 = vst [vmem:[%s940_s21 + $0xe8] sm:$0xff] %v421_v34  ;;  %v1299_v19 = vsub.f32 %v851_v55, %v675_v14 }
  0x36   : > { %494 = vst [vmem:[%s940_s21 + $0xf0] sm:$0xff] %v422_v20  ;;  %495 = vst [vmem:[%s940_s21 + $0xf8] sm:$0xff] %v423_v21  ;;  %v356_v61 = vmul.f32 %v892_v40, %v1298_v62  ;;  %v1300_v5 = vsub.f32 %v854_v54, %v668_v12  ;;  %v1301_v11 = vsub.f32 %v865_v53, %v675_v14  ;;  %v424_v22 = vmax.f32 %v352_v10, 0.0  ;;  %v210_v62 = vld [vmem:[%s661_s18 + $0x1c0] sm:$0xff] }
  0x37   : > { %v357_v60 = vmul.f32 %v896_v3, %v1299_v19  ;;  %v425_v59 = vmax.f32 %v353_v6, 0.0  ;;  %v426_v44 = vmax.f32 %v354_v37, 0.0  ;;  %v427_v23 = vmax.f32 %v355_v43, 0.0  ;;  %v212_v19 = vld [vmem:[%s661_s18 + $0x1d0] sm:$0xff] }
  0x38   : > { %v358_v47 = vmul.f32 %v892_v40, %v1300_v5  ;;  %v359_v13 = vmul.f32 %v896_v3, %v1301_v11  ;;  %v428_v55 = vmax.f32 %v356_v61, 0.0  ;;  %496 = vst [vmem:[%s940_s21 + $0x100] sm:$0xff] %v424_v22  ;;  %v1302_v53 = vsub.f32 %v868_v52, %v668_v12  ;;  %v211_v61 = vld [vmem:[%s661_s18 + $0x1c8] sm:$0xff]  ;;  %v214_v22 = vld [vmem:[%s661_s18 + $0x1e0] sm:$0xff] }
  0x39   : > { %v429_v24 = vmax.f32 %v357_v60, 0.0  ;;  %497 = vst [vmem:[%s940_s21 + $0x108] sm:$0xff] %v425_v59  ;;  %498 = vst [vmem:[%s940_s21 + $0x110] sm:$0xff] %v426_v44  ;;  %v1303_v15 = vsub.f32 %v871_v48, %v675_v14  ;;  %v1304_v50 = vsub.f32 %v882_v46, %v668_v12  ;;  %v1305_v8 = vsub.f32 %v885_v45, %v675_v14  ;;  %v215_v59 = vld [vmem:[%s661_s18 + $0x1e8] sm:$0xff] }
  0x3a   : > { %v430_v54 = vmax.f32 %v358_v47, 0.0  ;;  %v431_v49 = vmax.f32 %v359_v13, 0.0  ;;  %499 = vst [vmem:[%s940_s21 + $0x118] sm:$0xff] %v427_v23  ;;  %v360_v25 = vmul.f32 %v892_v40, %v1302_v53  ;;  %500 = vst [vmem:[%s940_s21 + $0x120] sm:$0xff] %v428_v55  ;;  %v1306_v46 = vsub.f32 %v888_v41, %v668_v12  ;;  %v205_v41 = vld [vmem:[%s661_s18 + $0x198] sm:$0xff] }
  0x3b   : > { %v361_v16 = vmul.f32 %v896_v3, %v1303_v15  ;;  %v362_v51 = vmul.f32 %v892_v40, %v1304_v50  ;;  %v363_v52 = vmul.f32 %v896_v3, %v1305_v8  ;;  %501 = vst [vmem:[%s940_s21 + $0x128] sm:$0xff] %v429_v24  ;;  %v1307_v17 = vsub.f32 %v903_v2, %v675_v14  ;;  %v213_v13 = vld [vmem:[%s661_s18 + $0x1d8] sm:$0xff] }
  0x3c   : > { %502 = vst [vmem:[%s940_s21 + $0x130] sm:$0xff] %v430_v54  ;;  %503 = vst [vmem:[%s940_s21 + $0x138] sm:$0xff] %v431_v49  ;;  %v364_v48 = vmul.f32 %v892_v40, %v1306_v46  ;;  %v1308_v27 = vsub.f32 %v906_v39, %v668_v12  ;;  %v1309_v57 = vsub.f32 %v909_v38, %v675_v14  ;;  %v432_v2 = vmax.f32 %v360_v25, 0.0  ;;  %v208_v39 = vld [vmem:[%s661_s18 + $0x1b0] sm:$0xff]  ;;  %v217_v49 = vld [vmem:[%s661_s18 + $0x1f8] sm:$0xff] }
  0x3d   : > { %v365_v45 = vmul.f32 %v896_v3, %v1307_v17  ;;  %v433_v31 = vmax.f32 %v361_v16, 0.0  ;;  %v434_v32 = vmax.f32 %v362_v51, 0.0  ;;  %v435_v33 = vmax.f32 %v363_v52, 0.0  ;;  %v216_v54 = vld [vmem:[%s661_s18 + $0x1f0] sm:$0xff] }
  0x3e   : > { %v366_v56 = vmul.f32 %v892_v40, %v1308_v27  ;;  %v367_v58 = vmul.f32 %v896_v3, %v1309_v57  ;;  %v436_v0 = vmax.f32 %v364_v48, 0.0  ;;  %504 = vst [vmem:[%s940_s21 + $0x140] sm:$0xff] %v432_v2  ;;  %v285_v1 = vsub.f32 %v202_v7, %v668_v12  ;;  %v219_v57 = vld [vmem:[%s661_s18 + $0x208] sm:$0xff] }
  0x3f   : > { %v437_v38 = vmax.f32 %v365_v45, 0.0  ;;  %505 = vst [vmem:[%s940_s21 + $0x148] sm:$0xff] %v433_v31  ;;  %506 = vst [vmem:[%s940_s21 + $0x150] sm:$0xff] %v434_v32  ;;  %v286_v34 = vsub.f32 %v203_v26, %v675_v14  ;;  %v287_v20 = vsub.f32 %v204_v28, %v668_v12  ;;  %v288_v21 = vsub.f32 %v205_v41, %v675_v14  ;;  %v221_v31 = vld [vmem:[%s661_s18 + $0x218] sm:$0xff]  ;;  %v222_v32 = vld [vmem:[%s661_s18 + $0x220] sm:$0xff] }
  0x40   : > { %v438_v35 = vmax.f32 %v366_v56, 0.0  ;;  %v439_v18 = vmax.f32 %v367_v58, 0.0  ;;  %507 = vst [vmem:[%s940_s21 + $0x158] sm:$0xff] %v435_v33  ;;  %508 = vst [vmem:[%s940_s21 + $0x160] sm:$0xff] %v436_v0  ;;  %v289_v9 = vsub.f32 %v206_v63, %v668_v12  ;;  %v290_v10 = vsub.f32 %v207_v29, %v675_v14  ;;  %v218_v56 = vld [vmem:[%s661_s18 + $0x200] sm:$0xff]  ;;  %v220_v58 = vld [vmem:[%s661_s18 + $0x210] sm:$0xff] }
  0x41   : > { %509 = vst [vmem:[%s940_s21 + $0x168] sm:$0xff] %v437_v38  ;;  %v291_v4 = vsub.f32 %v208_v39, %v668_v12  ;;  %v292_v6 = vsub.f32 %v209_v30, %v675_v14  ;;  %v368_v36 = vmul.f32 %v892_v40, %v285_v1  ;;  %v369_v37 = vmul.f32 %v896_v3, %v286_v34  ;;  %v223_v33 = vld [vmem:[%s661_s18 + $0x228] sm:$0xff] }
  0x42   : > { %510 = vst [vmem:[%s940_s21 + $0x170] sm:$0xff] %v438_v35  ;;  %511 = vst [vmem:[%s940_s21 + $0x178] sm:$0xff] %v439_v18  ;;  %v370_v42 = vmul.f32 %v892_v40, %v287_v20  ;;  %v371_v43 = vmul.f32 %v896_v3, %v288_v21  ;;  %v372_v60 = vmul.f32 %v892_v40, %v289_v9  ;;  %v224_v35 = vld [vmem:[%s661_s18 + $0x230] sm:$0xff]  ;;  %v225_v18 = vld [vmem:[%s661_s18 + $0x238] sm:$0xff] }
  0x43   : > { %v373_v5 = vmul.f32 %v896_v3, %v290_v10  ;;  %v374_v47 = vmul.f32 %v892_v40, %v291_v4  ;;  %v375_v11 = vmul.f32 %v896_v3, %v292_v6  ;;  %v440_v44 = vmax.f32 %v368_v36, 0.0 }
  0x44   : > { %v441_v23 = vmax.f32 %v369_v37, 0.0  ;;  %v442_v55 = vmax.f32 %v370_v42, 0.0  ;;  %v443_v24 = vmax.f32 %v371_v43, 0.0  ;;  %v444_v53 = vmax.f32 %v372_v60, 0.0 }
  0x45   : > { %v445_v25 = vmax.f32 %v373_v5, 0.0  ;;  %v446_v15 = vmax.f32 %v374_v47, 0.0  ;;  %v447_v16 = vmax.f32 %v375_v11, 0.0  ;;  %512 = vst [vmem:[%s940_s21 + $0x180] sm:$0xff] %v440_v44  ;;  %v293_v50 = vsub.f32 %v210_v62, %v668_v12 }
  0x46   : > { %513 = vst [vmem:[%s940_s21 + $0x188] sm:$0xff] %v441_v23  ;;  %514 = vst [vmem:[%s940_s21 + $0x190] sm:$0xff] %v442_v55  ;;  %v294_v51 = vsub.f32 %v211_v61, %v675_v14  ;;  %v295_v8 = vsub.f32 %v212_v19, %v668_v12  ;;  %v296_v52 = vsub.f32 %v213_v13, %v675_v14 }
  0x47   : > { %515 = vst [vmem:[%s940_s21 + $0x198] sm:$0xff] %v443_v24  ;;  %516 = vst [vmem:[%s940_s21 + $0x1a0] sm:$0xff] %v444_v53  ;;  %v297_v7 = vsub.f32 %v214_v22, %v668_v12  ;;  %v298_v26 = vsub.f32 %v215_v59, %v675_v14  ;;  %v299_v28 = vsub.f32 %v216_v54, %v668_v12 }
  0x48   : > { %517 = vst [vmem:[%s940_s21 + $0x1a8] sm:$0xff] %v445_v25  ;;  %518 = vst [vmem:[%s940_s21 + $0x1b0] sm:$0xff] %v446_v15  ;;  %v300_v46 = vsub.f32 %v217_v49, %v675_v14  ;;  %v376_v48 = vmul.f32 %v892_v40, %v293_v50  ;;  %v377_v17 = vmul.f32 %v896_v3, %v294_v51 }
  0x49   : > { %519 = vst [vmem:[%s940_s21 + $0x1b8] sm:$0xff] %v447_v16  ;;  %v378_v45 = vmul.f32 %v892_v40, %v295_v8  ;;  %v379_v27 = vmul.f32 %v896_v3, %v296_v52  ;;  %v380_v41 = vmul.f32 %v892_v40, %v297_v7  ;;  %v381_v63 = vmul.f32 %v896_v3, %v298_v26 }
  0x4a   : > { %v382_v29 = vmul.f32 %v892_v40, %v299_v28  ;;  %v383_v2 = vmul.f32 %v896_v3, %v300_v46  ;;  %v448_v39 = vmax.f32 %v376_v48, 0.0  ;;  %v449_v30 = vmax.f32 %v377_v17, 0.0 }
  0x4b   : > { %v450_v0 = vmax.f32 %v378_v45, 0.0  ;;  %v451_v38 = vmax.f32 %v379_v27, 0.0  ;;  %v452_v1 = vmax.f32 %v380_v41, 0.0  ;;  %v453_v34 = vmax.f32 %v381_v63, 0.0 }
  0x4c   : > { %v454_v20 = vmax.f32 %v382_v29, 0.0  ;;  %v455_v21 = vmax.f32 %v383_v2, 0.0  ;;  %520 = vst [vmem:[%s940_s21 + $0x1c0] sm:$0xff] %v448_v39  ;;  %521 = vst [vmem:[%s940_s21 + $0x1c8] sm:$0xff] %v449_v30  ;;  %v301_v9 = vsub.f32 %v218_v56, %v668_v12  ;;  %v302_v10 = vsub.f32 %v219_v57, %v675_v14 }
  0x4d   : > { %522 = vst [vmem:[%s940_s21 + $0x1d0] sm:$0xff] %v450_v0  ;;  %523 = vst [vmem:[%s940_s21 + $0x1d8] sm:$0xff] %v451_v38  ;;  %v303_v4 = vsub.f32 %v220_v58, %v668_v12  ;;  %v304_v6 = vsub.f32 %v221_v31, %v675_v14  ;;  %v305_v36 = vsub.f32 %v222_v32, %v668_v12 }
  0x4e   : > { %524 = vst [vmem:[%s940_s21 + $0x1e0] sm:$0xff] %v452_v1  ;;  %525 = vst [vmem:[%s940_s21 + $0x1e8] sm:$0xff] %v453_v34  ;;  %v306_v37 = vsub.f32 %v223_v33, %v675_v14  ;;  %v307_v42 = vsub.f32 %v224_v35, %v668_v12  ;;  %v308_v43 = vsub.f32 %v225_v18, %v675_v14 }
  0x4f   : > { %526 = vst [vmem:[%s940_s21 + $0x1f0] sm:$0xff] %v454_v20  ;;  %527 = vst [vmem:[%s940_s21 + $0x1f8] sm:$0xff] %v455_v21  ;;  %v384_v62 = vmul.f32 %v892_v40, %v301_v9  ;;  %v385_v61 = vmul.f32 %v896_v3, %v302_v10  ;;  %v386_v19 = vmul.f32 %v892_v40, %v303_v4 }
  0x50   : > { %v387_v60 = vmul.f32 %v896_v3, %v304_v6  ;;  %v388_v5 = vmul.f32 %v892_v40, %v305_v36  ;;  %v389_v47 = vmul.f32 %v896_v3, %v306_v37  ;;  %v390_v12 = vmul.f32 %v892_v40, %v307_v42 }
  0x51   : > { %v391_v14 = vmul.f32 %v896_v3, %v308_v43  ;;  %v456_v11 = vmax.f32 %v384_v62, 0.0  ;;  %v457_v13 = vmax.f32 %v385_v61, 0.0  ;;  %v458_v22 = vmax.f32 %v386_v19, 0.0 }
  0x52   : > { %v459_v59 = vmax.f32 %v387_v60, 0.0  ;;  %v460_v44 = vmax.f32 %v388_v5, 0.0  ;;  %v461_v23 = vmax.f32 %v389_v47, 0.0  ;;  %v462_v55 = vmax.f32 %v390_v12, 0.0 }
  0x53   : > { %v463_v24 = vmax.f32 %v391_v14, 0.0  ;;  %528 = vst [vmem:[%s940_s21 + $0x200] sm:$0xff] %v456_v11  ;;  %529 = vst [vmem:[%s940_s21 + $0x208] sm:$0xff] %v457_v13 }
  0x54   : > { %530 = vst [vmem:[%s940_s21 + $0x210] sm:$0xff] %v458_v22  ;;  %531 = vst [vmem:[%s940_s21 + $0x218] sm:$0xff] %v459_v59 }
  0x55   : > { %532 = vst [vmem:[%s940_s21 + $0x220] sm:$0xff] %v460_v44  ;;  %533 = vst [vmem:[%s940_s21 + $0x228] sm:$0xff] %v461_v23 }
  0x56   : > { %534 = vst [vmem:[%s940_s21 + $0x230] sm:$0xff] %v462_v55  ;;  %535 = vst [vmem:[%s940_s21 + $0x238] sm:$0xff] %v463_v24 }
  0x57 PF: > { %s12_s9 = sadd.s32 1, %s618_s9  }
  0x58   : > { %p9_p4 = scmp.ge.s32.totalorder %s12_s9, 4  }
  0x5a   :  { %11 = sbr.rel (!%p9_p4) target bundleno = 1 (0x1), region = 59 }

// kernel: inception_forward.2
= control target key start
LH: loop header
LB: loop body
LE: loop exit
PB: predicated region body
PF: predicated region fallthrough
CT: control target
= control target key end

     0   :  { %s7576_s18 = smov 0   ;;  %s8899_s0 = inlined_call_operand.vmem [shape: f32[2,342,4], index: 0, kind: input, shape index: {}]   ;;  %s8900_s1 = inlined_call_operand.vmem [shape: f32[4,128], index: 1, kind: input, shape index: {}]   ;;  %s8901_s2 = inlined_call_operand.vmem [shape: f32[9,4,128], index: 2, kind: input, shape index: {}]   ;;  %s8902_s3 = inlined_call_operand.vmem [shape: f32[288,1], index: 3, kind: input, shape index: {}]   ;;  %s8903_s4 = inlined_call_operand.vmem [shape: f32[2,288,256], index: 4, kind: output, shape index: {0}]   ;;  %s8904_s5 = inlined_call_operand.vmem [shape: f32[2,2,256], index: 5, kind: output, shape index: {1}]  }
   0x1 LB: > { %s5913_s19 = sadd.s32 4294967295, %s7542_s18   ;;  %p5917_p0 = scmp.ge.s32.totalorder %s7542_s18, 1  ;;  %s7542_s18 = sphi %s7576_s18, %s16_s18  }
   0x2   : > { %p190_p1 = scmp.lt.s32.totalorder %s7542_s18, 3 }
   0x4   : > { %p191_p2 = pnand %p5917_p0, %p190_p1 }
   0x6   : > { %194 = sbr.rel (%p191_p2) target bundleno = 619 (0x26b), region = 36 }
   0xd   : > { %v274_v0 = vld [vmem:[%s8900_s1] sm:$0xf]  ;;  %vm384_vm0 = vcmask 1043456   ;;  %v6110_v1 = vld [vmem:[%s8901_s2 + $0x10] sm:$0xf]  ;;  %p223_p3 = scmp.lt.s32.totalorder %s5913_s19, 1 }
   0xe   : > { %6674 = vmatprep.subr.msk.mxu0 %vm384_vm0, %v274_v0  ;;  %6954 = vmatprep.subr.msk.mxu1 %vm384_vm0, %v6110_v1  ;;  %v705_v2 = vld [vmem:[%s8901_s2] sm:$0xf]  ;;  %v6148_v3 = vld [vmem:[%s8901_s2 + $0x14] sm:$0xf]  ;;  %v7544_v6 = vmov 0   ;;  %vm275_vm1 = vcmask 31744  }
   0xf   : > { %6675 = vmatpush3.msk.msra.mxu0 %vm384_vm0, %v274_v0  ;;  %6955 = vmatpush3.msk.msra.mxu1 %vm384_vm0, %v6110_v1  ;;  %s8975_s19 = smov (!%p223_p3, %s5913_s19), 1  ;;  %v5258_v4 = vld [vmem:[%s8902_s3] sm:$0xff]  ;;  %v5260_v5 = vld [vmem:[%s8902_s3 + $0x10] sm:$0xff]  ;;  %v7631_v11 = vld [vmem:[%s8901_s2 + $0x18] sm:$0xf] }
  0x10   : > { %6730 = vmatprep.subr.msk.mxu0 %vm384_vm0, %v705_v2  ;;  %7010 = vmatprep.subr.msk.mxu1 %vm384_vm0, %v6148_v3  ;;  %s7522_s7 = smul.u32 344, %s8975_s19  ;;  %v7626_v10 = vld [vmem:[%s8901_s2 + $0x4] sm:$0xf]  ;;  %v5259_v14 = vld [vmem:[%s8902_s3 + $0x8] sm:$0xff]  ;;  %v5261_v15 = vld [vmem:[%s8902_s3 + $0x18] sm:$0xff] }
  0x11   : > { %7534 = vset.pattern.permute.xlu0 %v7544_v6  ;;  %7535 = vset.pattern.permute.xlu1 %v7544_v6  ;;  %v5263_v18 = vld [vmem:[%s8902_s3 + $0x28] sm:$0xff]  ;;  %v5262_v19 = vld [vmem:[%s8902_s3 + $0x20] sm:$0xff]  ;;  %v5265_v22 = vld [vmem:[%s8902_s3 + $0x38] sm:$0xff]  ;;  %s7523_s27 = smul.u32 576, %s8975_s19 }
  0x12   : > { %5296 = vperm.xlu0 %7534, %v5258_v4   ;;  %5306 = vperm.xlu1 %7535, %v5260_v5   ;;  %s7614_s10 = scalar_lea.vmem %s8899_s0, %s7522_s7  ;;  %v5264_v23 = vld [vmem:[%s8902_s3 + $0x30] sm:$0xff]  ;;  %v5267_v26 = vld [vmem:[%s8902_s3 + $0x48] sm:$0xff]  ;;  %v5266_v27 = vld [vmem:[%s8902_s3 + $0x40] sm:$0xff] }
  0x13   : > { %v238_v7 = vld [vmem:[%s7614_s10 + $0x13] sm:$0xff]  ;;  %v239_v8 = vld [vmem:[%s7614_s10 + $0x1b] sm:$0xff]  ;;  %v240_v9 = vld [vmem:[%s7614_s10 + $0x23] sm:$0xff]  ;;  %s8290_s30 = scalar_lea.vmem %s8903_s4, %s7523_s27 }
  0x14   : > { %6676 = vmatprep.mubr.msk.f32.mxu0 %vm275_vm1, %v238_v7  ;;  %6956 = vmatprep.mubr.msk.f32.mxu1 %vm275_vm1, %v238_v7  ;;  %v241_v12 = vld [vmem:[%s7614_s10 + $0x2b] sm:$0xff]  ;;  %v242_v13 = vld [vmem:[%s7614_s10 + $0x33] sm:$0xff]  ;;  %v243_v16 = vld [vmem:[%s7614_s10 + $0x3b] sm:$0xff] }
  0x15   : > { %6677 = vmatmul.mubr.msk.f32.vlgmr.msra.gmra.mrb[0].mxu0 %vm275_vm1, %v239_v8  ;;  %6957 = vmatmul.mubr.msk.f32.vlgmr.msra.gmra.mrb[0].mxu1 %vm275_vm1, %v239_v8  ;;  %v244_v17 = vld [vmem:[%s7614_s10 + $0x43] sm:$0xff]  ;;  %v245_v20 = vld [vmem:[%s7614_s10 + $0x4b] sm:$0xff]  ;;  %v246_v21 = vld [vmem:[%s7614_s10 + $0x53] sm:$0xff] }
  0x16   : > { %6731 = vmatpush3.msk.msra.mxu0 %vm384_vm0, %v705_v2  ;;  %7011 = vmatpush3.msk.msra.mxu1 %vm384_vm0, %v6148_v3  ;;  %v247_v24 = vld [vmem:[%s7614_s10 + $0x5b] sm:$0xff]  ;;  %v248_v25 = vld [vmem:[%s7614_s10 + $0x63] sm:$0xff]  ;;  %v249_v28 = vld [vmem:[%s7614_s10 + $0x6b] sm:$0xff] }
  0x17   : > { %6679 = vmatprep.mubr.msk.f32.mxu0 %vm275_vm1, %v240_v9  ;;  %6959 = vmatprep.mubr.msk.f32.mxu1 %vm275_vm1, %v240_v9  ;;  %v250_v29 = vld [vmem:[%s7614_s10 + $0x73] sm:$0xff]  ;;  %v251_v32 = vld [vmem:[%s7614_s10 + $0x7b] sm:$0xff]  ;;  %v252_v33 = vld [vmem:[%s7614_s10 + $0x83] sm:$0xff] }
  0x18   : > { %6786 = vmatprep.subr.msk.mxu0 %vm384_vm0, %v7626_v10  ;;  %7066 = vmatprep.subr.msk.mxu1 %vm384_vm0, %v7631_v11  ;;  %v5269_v30 = vld [vmem:[%s8902_s3 + $0x58] sm:$0xff]  ;;  %v5268_v31 = vld [vmem:[%s8902_s3 + $0x50] sm:$0xff]  ;;  %v5271_v34 = vld [vmem:[%s8902_s3 + $0x68] sm:$0xff] }
  0x19   : > { %6680 = vmatmul.mubr.msk.f32.gmra.mrb[2].mxu0 %vm275_vm1, %v241_v12  ;;  %6960 = vmatmul.mubr.msk.f32.gmra.mrb[2].mxu1 %vm275_vm1, %v241_v12  ;;  %v5270_v35 = vld [vmem:[%s8902_s3 + $0x60] sm:$0xff]  ;;  %v253_v36 = vld [vmem:[%s7614_s10 + $0x8b] sm:$0xff]  ;;  %v254_v37 = vld [vmem:[%s7614_s10 + $0x93] sm:$0xff] }
  0x1a   : > { %6682 = vmatprep.mubr.msk.f32.mxu0 %vm275_vm1, %v242_v13  ;;  %6962 = vmatprep.mubr.msk.f32.mxu1 %vm275_vm1, %v242_v13  ;;  %v5273_v38 = vld [vmem:[%s8902_s3 + $0x78] sm:$0xff]  ;;  %v5272_v39 = vld [vmem:[%s8902_s3 + $0x70] sm:$0xff]  ;;  %v256_v41 = vld [vmem:[%s7614_s10 + $0xa3] sm:$0xff] }
  0x1b   : > { %5301 = vperm.xlu0 %7534, %v5259_v14   ;;  %5311 = vperm.xlu1 %7535, %v5261_v15   ;;  %v255_v40 = vld [vmem:[%s7614_s10 + $0x9b] sm:$0xff]  ;;  %v5275_v42 = vld [vmem:[%s8902_s3 + $0x88] sm:$0xff]  ;;  %v258_v45 = vld [vmem:[%s7614_s10 + $0xb3] sm:$0xff] }
  0x1c   : > { %v5274_v43 = vld [vmem:[%s8902_s3 + $0x80] sm:$0xff]  ;;  %v257_v44 = vld [vmem:[%s7614_s10 + $0xab] sm:$0xff]  ;;  %v5277_v46 = vld [vmem:[%s8902_s3 + $0x98] sm:$0xff] }
  0x1d   : > { %6683 = vmatmul.mubr.msk.f32.gmra.mrb[4].mxu0 %vm275_vm1, %v243_v16  ;;  %6963 = vmatmul.mubr.msk.f32.gmra.mrb[4].mxu1 %vm275_vm1, %v243_v16  ;;  %v5276_v47 = vld [vmem:[%s8902_s3 + $0x90] sm:$0xff]  ;;  %v259_v48 = vld [vmem:[%s7614_s10 + $0xbb] sm:$0xff]  ;;  %v260_v49 = vld [vmem:[%s7614_s10 + $0xc3] sm:$0xff] }
  0x1e   : > { %6685 = vmatprep.mubr.msk.f32.mxu0 %vm275_vm1, %v244_v17  ;;  %6965 = vmatprep.mubr.msk.f32.mxu1 %vm275_vm1, %v244_v17  ;;  %v5279_v50 = vld [vmem:[%s8902_s3 + $0xa8] sm:$0xff]  ;;  %v5278_v51 = vld [vmem:[%s8902_s3 + $0xa0] sm:$0xff]  ;;  %v262_v53 = vld [vmem:[%s7614_s10 + $0xd3] sm:$0xff] }
  0x1f   : > { %5321 = vperm.xlu1 %7535, %v5263_v18   ;;  %5316 = vperm.xlu0 %7534, %v5262_v19   ;;  %v261_v52 = vld [vmem:[%s7614_s10 + $0xcb] sm:$0xff]  ;;  %v5281_v54 = vld [vmem:[%s8902_s3 + $0xb8] sm:$0xff]  ;;  %v264_v57 = vld [vmem:[%s7614_s10 + $0xe3] sm:$0xff] }
  0x20   : > { %v5280_v55 = vld [vmem:[%s8902_s3 + $0xb0] sm:$0xff]  ;;  %v263_v56 = vld [vmem:[%s7614_s10 + $0xdb] sm:$0xff]  ;;  %v5283_v58 = vld [vmem:[%s8902_s3 + $0xc8] sm:$0xff] }
  0x21   : > { %6686 = vmatmul.mubr.msk.f32.gmra.mrb[6].mxu0 %vm275_vm1, %v245_v20  ;;  %6966 = vmatmul.mubr.msk.f32.gmra.mrb[6].mxu1 %vm275_vm1, %v245_v20  ;;  %v5282_v59 = vld [vmem:[%s8902_s3 + $0xc0] sm:$0xff]  ;;  %v265_v60 = vld [vmem:[%s7614_s10 + $0xeb] sm:$0xff]  ;;  %v266_v61 = vld [vmem:[%s7614_s10 + $0xf3] sm:$0xff] }
  0x22   : > { %6688 = vmatprep.mubr.msk.f32.mxu0 %vm275_vm1, %v246_v21  ;;  %6968 = vmatprep.mubr.msk.f32.mxu1 %vm275_vm1, %v246_v21  ;;  %v5285_v62 = vld [vmem:[%s8902_s3 + $0xd8] sm:$0xff]  ;;  %v5284_v63 = vld [vmem:[%s8902_s3 + $0xd0] sm:$0xff]  ;;  %v268_v1 = vld [vmem:[%s7614_s10 + $0x103] sm:$0xff] }
  0x23   : > { %5331 = vperm.xlu1 %7535, %v5265_v22   ;;  %5326 = vperm.xlu0 %7534, %v5264_v23   ;;  %v267_v0 = vld [vmem:[%s7614_s10 + $0xfb] sm:$0xff]  ;;  %v5287_v2 = vld [vmem:[%s8902_s3 + $0xe8] sm:$0xff]  ;;  %v270_v5 = vld [vmem:[%s7614_s10 + $0x113] sm:$0xff] }
  0x24   : > { %v5286_v3 = vld [vmem:[%s8902_s3 + $0xe0] sm:$0xff]  ;;  %v269_v4 = vld [vmem:[%s7614_s10 + $0x10b] sm:$0xff]  ;;  %v5289_v6 = vld [vmem:[%s8902_s3 + $0xf8] sm:$0xff] }
  0x25   : > { %6689 = vmatmul.mubr.msk.f32.gmra.mrb[8].mxu0 %vm275_vm1, %v247_v24  ;;  %6969 = vmatmul.mubr.msk.f32.gmra.mrb[8].mxu1 %vm275_vm1, %v247_v24  ;;  %v5288_v7 = vld [vmem:[%s8902_s3 + $0xf0] sm:$0xff]  ;;  %v271_v8 = vld [vmem:[%s7614_s10 + $0x11b] sm:$0xff]  ;;  %v272_v9 = vld [vmem:[%s7614_s10 + $0x123] sm:$0xff] }
  0x26   : > { %6691 = vmatprep.mubr.msk.f32.mxu0 %vm275_vm1, %v248_v25  ;;  %6971 = vmatprep.mubr.msk.f32.mxu1 %vm275_vm1, %v248_v25  ;;  %v5291_v12 = vld [vmem:[%s8902_s3 + $0x108] sm:$0xff]  ;;  %v5290_v13 = vld [vmem:[%s8902_s3 + $0x100] sm:$0xff]  ;;  %v3106_v16 = vld [vmem:[%s7614_s10 + $0x14] sm:$0xff] }
  0x27   : > { %5341 = vperm.xlu1 %7535, %v5267_v26   ;;  %5336 = vperm.xlu0 %7534, %v5266_v27   ;;  %v273_v14 = vld [vmem:[%s7614_s10 + $0x12b] sm:$0xff]  ;;  %v669_v15 = vld [vmem:[%s7614_s10] sm:$0xff]  ;;  %v5293_v17 = vld [vmem:[%s8902_s3 + $0x118] sm:$0xff] }
  0x28   : > { %v5292_v18 = vld [vmem:[%s8902_s3 + $0x110] sm:$0xff]  ;;  %v670_v19 = vld [vmem:[%s7614_s10 + $0x8] sm:$0xff]  ;;  %v3107_v20 = vld [vmem:[%s7614_s10 + $0x1c] sm:$0xff] }
  0x29   : > { %6692 = vmatmul.mubr.msk.f32.gmra.mrb[10].mxu0 %vm275_vm1, %v249_v28  ;;  %6972 = vmatmul.mubr.msk.f32.gmra.mrb[10].mxu1 %vm275_vm1, %v249_v28  ;;  %v671_v21 = vld [vmem:[%s7614_s10 + $0x10] sm:$0xff]  ;;  %v7850_v22 = vld [vmem:[%s7614_s10 + $0x24] sm:$0xff]  ;;  %v7862_v24 = vld [vmem:[%s8901_s2 + $0x1c] sm:$0xf] }
  0x2a   : > { %6694 = vmatprep.mubr.msk.f32.mxu0 %vm275_vm1, %v250_v29  ;;  %6974 = vmatprep.mubr.msk.f32.mxu1 %vm275_vm1, %v250_v29  ;;  %v7857_v23 = vld [vmem:[%s8901_s2 + $0x8] sm:$0xf]  ;;  %v672_v25 = vld [vmem:[%s7614_s10 + $0x18] sm:$0xff]  ;;  %v7870_v26 = vld [vmem:[%s7614_s10 + $0x2c] sm:$0xff] }
  0x2b   : > { %5351 = vperm.xlu1 %7535, %v5269_v30   ;;  %5346 = vperm.xlu0 %7534, %v5268_v31   ;;  %v673_v27 = vld [vmem:[%s7614_s10 + $0x20] sm:$0xff]  ;;  %v7877_v28 = vld [vmem:[%s7614_s10 + $0x34] sm:$0xff] }
  0x2c   : > { %v675_v29 = vld [vmem:[%s7614_s10 + $0x30] sm:$0xff]  ;;  %v7895_v30 = vld [vmem:[%s7614_s10 + $0x44] sm:$0xff]  ;;  %v676_v31 = vld [vmem:[%s7614_s10 + $0x38] sm:$0xff] }
  0x2d   : > { %6695 = vmatmul.mubr.msk.f32.gmra.mrb[12].mxu0 %vm275_vm1, %v251_v32  ;;  %6975 = vmatmul.mubr.msk.f32.gmra.mrb[12].mxu1 %vm275_vm1, %v251_v32  ;;  %v7905_v32 = vld [vmem:[%s7614_s10 + $0x4c] sm:$0xff] }
  0x2e   : > { %6697 = vmatprep.mubr.msk.f32.mxu0 %vm275_vm1, %v252_v33  ;;  %6977 = vmatprep.mubr.msk.f32.mxu1 %vm275_vm1, %v252_v33  ;;  %v677_v33 = vld [vmem:[%s7614_s10 + $0x40] sm:$0xff] }
  0x2f   : > { %5361 = vperm.xlu1 %7535, %v5271_v34   ;;  %5356 = vperm.xlu0 %7534, %v5270_v35   ;;  %v7909_v34 = vld [vmem:[%s7614_s10 + $0x54] sm:$0xff]  ;;  %v678_v35 = vld [vmem:[%s7614_s10 + $0x48] sm:$0xff] }
  0x31   : > { %6698 = vmatmul.mubr.msk.f32.gmra.mrb[14].mxu0 %vm275_vm1, %v253_v36  ;;  %6978 = vmatmul.mubr.msk.f32.gmra.mrb[14].mxu1 %vm275_vm1, %v253_v36  ;;  %v7919_v36 = vld [vmem:[%s7614_s10 + $0x5c] sm:$0xff] }
  0x32   : > { %6700 = vmatprep.mubr.msk.f32.mxu0 %vm275_vm1, %v254_v37  ;;  %6980 = vmatprep.mubr.msk.f32.mxu1 %vm275_vm1, %v254_v37  ;;  %v679_v37 = vld [vmem:[%s7614_s10 + $0x50] sm:$0xff] }
  0x33   : > { %5371 = vperm.xlu1 %7535, %v5273_v38   ;;  %5366 = vperm.xlu0 %7534, %v5272_v39   ;;  %v7923_v38 = vld [vmem:[%s7614_s10 + $0x64] sm:$0xff]  ;;  %v680_v39 = vld [vmem:[%s7614_s10 + $0x58] sm:$0xff] }
  0x35   : > { %6701 = vmatmul.mubr.msk.f32.gmra.mrb[16].mxu0 %vm275_vm1, %v255_v40  ;;  %6981 = vmatmul.mubr.msk.f32.gmra.mrb[16].mxu1 %vm275_vm1, %v255_v40  ;;  %v7933_v40 = vld [vmem:[%s7614_s10 + $0x6c] sm:$0xff] }
  0x36   : > { %6703 = vmatprep.mubr.msk.f32.mxu0 %vm275_vm1, %v256_v41  ;;  %6983 = vmatprep.mubr.msk.f32.mxu1 %vm275_vm1, %v256_v41  ;;  %v681_v41 = vld [vmem:[%s7614_s10 + $0x60] sm:$0xff] }
  0x37   : > { %5381 = vperm.xlu1 %7535, %v5275_v42   ;;  %5376 = vperm.xlu0 %7534, %v5274_v43   ;;  %v7937_v42 = vld [vmem:[%s7614_s10 + $0x74] sm:$0xff]  ;;  %v682_v43 = vld [vmem:[%s7614_s10 + $0x68] sm:$0xff] }
  0x39   : > { %6704 = vmatmul.mubr.msk.f32.gmra.mrb[18].mxu0 %vm275_vm1, %v257_v44  ;;  %6984 = vmatmul.mubr.msk.f32.gmra.mrb[18].mxu1 %vm275_vm1, %v257_v44  ;;  %v7947_v44 = vld [vmem:[%s7614_s10 + $0x7c] sm:$0xff] }
  0x3a   : > { %6706 = vmatprep.mubr.msk.f32.mxu0 %vm275_vm1, %v258_v45  ;;  %6986 = vmatprep.mubr.msk.f32.mxu1 %vm275_vm1, %v258_v45  ;;  %v683_v45 = vld [vmem:[%s7614_s10 + $0x70] sm:$0xff] }
  0x3b   : > { %5391 = vperm.xlu1 %7535, %v5277_v46   ;;  %5386 = vperm.xlu0 %7534, %v5276_v47   ;;  %v7951_v46 = vld [vmem:[%s7614_s10 + $0x84] sm:$0xff]  ;;  %v684_v47 = vld [vmem:[%s7614_s10 + $0x78] sm:$0xff] }
  0x3d   : > { %6707 = vmatmul.mubr.msk.f32.gmra.mrb[20].mxu0 %vm275_vm1, %v259_v48  ;;  %6987 = vmatmul.mubr.msk.f32.gmra.mrb[20].mxu1 %vm275_vm1, %v259_v48  ;;  %v7961_v48 = vld [vmem:[%s7614_s10 + $0x8c] sm:$0xff] }
  0x3e   : > { %6709 = vmatprep.mubr.msk.f32.mxu0 %vm275_vm1, %v260_v49  ;;  %6989 = vmatprep.mubr.msk.f32.mxu1 %vm275_vm1, %v260_v49  ;;  %v685_v49 = vld [vmem:[%s7614_s10 + $0x80] sm:$0xff] }
  0x3f   : > { %5401 = vperm.xlu1 %7535, %v5279_v50   ;;  %5396 = vperm.xlu0 %7534, %v5278_v51   ;;  %v7965_v50 = vld [vmem:[%s7614_s10 + $0x94] sm:$0xff]  ;;  %v686_v51 = vld [vmem:[%s7614_s10 + $0x88] sm:$0xff] }
  0x41   : > { %6710 = vmatmul.mubr.msk.f32.gmra.mrb[22].mxu0 %vm275_vm1, %v261_v52  ;;  %6990 = vmatmul.mubr.msk.f32.gmra.mrb[22].mxu1 %vm275_vm1, %v261_v52  ;;  %v7975_v52 = vld [vmem:[%s7614_s10 + $0x9c] sm:$0xff] }
  0x42   : > { %6712 = vmatprep.mubr.msk.f32.mxu0 %vm275_vm1, %v262_v53  ;;  %6992 = vmatprep.mubr.msk.f32.mxu1 %vm275_vm1, %v262_v53  ;;  %v687_v53 = vld [vmem:[%s7614_s10 + $0x90] sm:$0xff] }
  0x43   : > { %5411 = vperm.xlu1 %7535, %v5281_v54   ;;  %5406 = vperm.xlu0 %7534, %v5280_v55   ;;  %v7979_v54 = vld [vmem:[%s7614_s10 + $0xa4] sm:$0xff]  ;;  %v688_v55 = vld [vmem:[%s7614_s10 + $0x98] sm:$0xff] }
  0x45   : > { %6713 = vmatmul.mubr.msk.f32.gmra.mrb[24].mxu0 %vm275_vm1, %v263_v56  ;;  %6993 = vmatmul.mubr.msk.f32.gmra.mrb[24].mxu1 %vm275_vm1, %v263_v56  ;;  %v7989_v56 = vld [vmem:[%s7614_s10 + $0xac] sm:$0xff] }
  0x46   : > { %6715 = vmatprep.mubr.msk.f32.mxu0 %vm275_vm1, %v264_v57  ;;  %6995 = vmatprep.mubr.msk.f32.mxu1 %vm275_vm1, %v264_v57  ;;  %v689_v57 = vld [vmem:[%s7614_s10 + $0xa0] sm:$0xff] }
  0x47   : > { %5421 = vperm.xlu1 %7535, %v5283_v58   ;;  %5416 = vperm.xlu0 %7534, %v5282_v59   ;;  %v7993_v58 = vld [vmem:[%s7614_s10 + $0xb4] sm:$0xff]  ;;  %v690_v59 = vld [vmem:[%s7614_s10 + $0xa8] sm:$0xff] }
  0x49   : > { %6716 = vmatmul.mubr.msk.f32.gmra.mrb[26].mxu0 %vm275_vm1, %v265_v60  ;;  %6996 = vmatmul.mubr.msk.f32.gmra.mrb[26].mxu1 %vm275_vm1, %v265_v60  ;;  %v8003_v60 = vld [vmem:[%s7614_s10 + $0xbc] sm:$0xff] }
  0x4a   : > { %6718 = vmatprep.mubr.msk.f32.mxu0 %vm275_vm1, %v266_v61  ;;  %6998 = vmatprep.mubr.msk.f32.mxu1 %vm275_vm1, %v266_v61  ;;  %v691_v61 = vld [vmem:[%s7614_s10 + $0xb0] sm:$0xff] }
  0x4b   : > { %5431 = vperm.xlu1 %7535, %v5285_v62   ;;  %5426 = vperm.xlu0 %7534, %v5284_v63   ;;  %v8007_v62 = vld [vmem:[%s7614_s10 + $0xc4] sm:$0xff]  ;;  %v692_v63 = vld [vmem:[%s7614_s10 + $0xb8] sm:$0xff] }
  0x4d   : > { %6719 = vmatmul.mubr.msk.f32.gmra.mrb[28].mxu0 %vm275_vm1, %v267_v0  ;;  %6999 = vmatmul.mubr.msk.f32.gmra.mrb[28].mxu1 %vm275_vm1, %v267_v0  ;;  %v8017_v0 = vld [vmem:[%s7614_s10 + $0xcc] sm:$0xff] }
  0x4e   : > { %6721 = vmatprep.mubr.msk.f32.mxu0 %vm275_vm1, %v268_v1  ;;  %7001 = vmatprep.mubr.msk.f32.mxu1 %vm275_vm1, %v268_v1  ;;  %v693_v1 = vld [vmem:[%s7614_s10 + $0xc0] sm:$0xff] }
  0x4f   : > { %5441 = vperm.xlu1 %7535, %v5287_v2   ;;  %5436 = vperm.xlu0 %7534, %v5286_v3   ;;  %v8021_v2 = vld [vmem:[%s7614_s10 + $0xd4] sm:$0xff]  ;;  %v694_v3 = vld [vmem:[%s7614_s10 + $0xc8] sm:$0xff] }
  0x51   : > { %6722 = vmatmul.mubr.msk.f32.gmra.mrb[30].mxu0 %vm275_vm1, %v269_v4  ;;  %7002 = vmatmul.mubr.msk.f32.gmra.mrb[30].mxu1 %vm275_vm1, %v269_v4  ;;  %v8031_v4 = vld [vmem:[%s7614_s10 + $0xdc] sm:$0xff] }
  0x52   : > { %6724 = vmatprep.mubr.msk.f32.mxu0 %vm275_vm1, %v270_v5  ;;  %7004 = vmatprep.mubr.msk.f32.mxu1 %vm275_vm1, %v270_v5  ;;  %v695_v5 = vld [vmem:[%s7614_s10 + $0xd0] sm:$0xff] }
  0x53   : > { %5451 = vperm.xlu1 %7535, %v5289_v6   ;;  %5446 = vperm.xlu0 %7534, %v5288_v7   ;;  %v8035_v6 = vld [vmem:[%s7614_s10 + $0xe4] sm:$0xff]  ;;  %v696_v7 = vld [vmem:[%s7614_s10 + $0xd8] sm:$0xff] }
  0x55   : > { %6725 = vmatmul.mubr.msk.f32.gmra.mrb[32].mxu0 %vm275_vm1, %v271_v8  ;;  %7005 = vmatmul.mubr.msk.f32.gmra.mrb[32].mxu1 %vm275_vm1, %v271_v8  ;;  %v8045_v8 = vld [vmem:[%s7614_s10 + $0xec] sm:$0xff] }
  0x56   : > { %6727 = vmatprep.mubr.msk.f32.mxu0 %vm275_vm1, %v272_v9  ;;  %7007 = vmatprep.mubr.msk.f32.mxu1 %vm275_vm1, %v272_v9  ;;  %v697_v9 = vld [vmem:[%s7614_s10 + $0xe0] sm:$0xff] }
  0x57   : > { %5461 = vperm.xlu1 %7535, %v5291_v12   ;;  %5456 = vperm.xlu0 %7534, %v5290_v13   ;;  %v8049_v12 = vld [vmem:[%s7614_s10 + $0xf4] sm:$0xff]  ;;  %v698_v13 = vld [vmem:[%s7614_s10 + $0xe8] sm:$0xff] }
  0x59   : > { %6728 = vmatmul.mubr.msk.f32.gmra.mrb[34].mxu0 %vm275_vm1, %v273_v14  ;;  %7008 = vmatmul.mubr.msk.f32.gmra.mrb[34].mxu1 %vm275_vm1, %v273_v14  ;;  %v8059_v14 = vld [vmem:[%s7614_s10 + $0xfc] sm:$0xff] }
  0x5a   : > { %6732 = vmatprep.mubr.msk.f32.mxu0 %vm275_vm1, %v669_v15  ;;  %7012 = vmatprep.mubr.msk.f32.mxu1 %vm275_vm1, %v3106_v16  ;;  %v699_v15 = vld [vmem:[%s7614_s10 + $0xf0] sm:$0xff]  ;;  %v8063_v16 = vld [vmem:[%s7614_s10 + $0x104] sm:$0xff] }
  0x5b   : > { %5471 = vperm.xlu1 %7535, %v5293_v17   ;;  %5466 = vperm.xlu0 %7534, %v5292_v18   ;;  %v700_v17 = vld [vmem:[%s7614_s10 + $0xf8] sm:$0xff]  ;;  %v8073_v18 = vld [vmem:[%s7614_s10 + $0x10c] sm:$0xff] }
  0x5d   : > { %6733 = vmatmul.mubr.msk.f32.vlgmr.msra.gmra.mrb[36].mxu0 %vm275_vm1, %v670_v19  ;;  %7013 = vmatmul.mubr.msk.f32.vlgmr.msra.gmra.mrb[0].mxu1 %vm275_vm1, %v3107_v20  ;;  %v701_v19 = vld [vmem:[%s7614_s10 + $0x100] sm:$0xff]  ;;  %v8077_v20 = vld [vmem:[%s7614_s10 + $0x114] sm:$0xff] }
  0x5e   : > { %6787 = vmatpush3.msk.msra.mxu0 %vm384_vm0, %v7626_v10  ;;  %7067 = vmatpush3.msk.msra.mxu1 %vm384_vm0, %v7631_v11  ;;  %v674_v10 = vld [vmem:[%s7614_s10 + $0x28] sm:$0xff]  ;;  %v7891_v11 = vld [vmem:[%s7614_s10 + $0x3c] sm:$0xff] }
  0x5f   : > { %6735 = vmatprep.mubr.msk.f32.mxu0 %vm275_vm1, %v671_v21  ;;  %7015 = vmatprep.mubr.msk.f32.mxu1 %vm275_vm1, %v7850_v22  ;;  %v702_v21 = vld [vmem:[%s7614_s10 + $0x108] sm:$0xff] }
  0x60   : > { %6842 = vmatprep.subr.msk.mxu0 %vm384_vm0, %v7857_v23  ;;  %7122 = vmatprep.subr.msk.mxu1 %vm384_vm0, %v7862_v24 }
  0x61   : > { %6736 = vmatmul.mubr.msk.f32.gmra.mrb[38].mxu0 %vm275_vm1, %v672_v25  ;;  %7016 = vmatmul.mubr.msk.f32.gmra.mrb[2].mxu1 %vm275_vm1, %v7870_v26  ;;  %v8087_v25 = vld [vmem:[%s7614_s10 + $0x11c] sm:$0xff] }
  0x62   : > { %6738 = vmatprep.mubr.msk.f32.mxu0 %vm275_vm1, %v673_v27  ;;  %7018 = vmatprep.mubr.msk.f32.mxu1 %vm275_vm1, %v7877_v28  ;;  %v703_v27 = vld [vmem:[%s7614_s10 + $0x110] sm:$0xff] }
  0x65   : > { %6739 = vmatmul.mubr.msk.f32.gmra.mrb[40].mxu0 %vm275_vm1, %v674_v10  ;;  %7019 = vmatmul.mubr.msk.f32.gmra.mrb[4].mxu1 %vm275_vm1, %v7891_v11  ;;  %v8091_v10 = vld [vmem:[%s7614_s10 + $0x124] sm:$0xff] }
  0x66   : > { %6741 = vmatprep.mubr.msk.f32.mxu0 %vm275_vm1, %v675_v29  ;;  %7021 = vmatprep.mubr.msk.f32.mxu1 %vm275_vm1, %v7895_v30  ;;  %v704_v29 = vld [vmem:[%s7614_s10 + $0x118] sm:$0xff] }
  0x69   : > { %6742 = vmatmul.mubr.msk.f32.gmra.mrb[42].mxu0 %vm275_vm1, %v676_v31  ;;  %7022 = vmatmul.mubr.msk.f32.gmra.mrb[6].mxu1 %vm275_vm1, %v7905_v32  ;;  %v8101_v31 = vld [vmem:[%s7614_s10 + $0x12c] sm:$0xff] }
  0x6a   : > { %6744 = vmatprep.mubr.msk.f32.mxu0 %vm275_vm1, %v677_v33  ;;  %7024 = vmatprep.mubr.msk.f32.mxu1 %vm275_vm1, %v7909_v34  ;;  %v1098_v33 = vld [vmem:[%s7614_s10 + $0x1] sm:$0xff] }
  0x6d   : > { %6745 = vmatmul.mubr.msk.f32.gmra.mrb[44].mxu0 %vm275_vm1, %v678_v35  ;;  %7025 = vmatmul.mubr.msk.f32.gmra.mrb[8].mxu1 %vm275_vm1, %v7919_v36  ;;  %v1099_v35 = vld [vmem:[%s7614_s10 + $0x9] sm:$0xff] }
  0x6e   : > { %6747 = vmatprep.mubr.msk.f32.mxu0 %vm275_vm1, %v679_v37  ;;  %7027 = vmatprep.mubr.msk.f32.mxu1 %vm275_vm1, %v7923_v38  ;;  %v1100_v37 = vld [vmem:[%s7614_s10 + $0x11] sm:$0xff] }
  0x71   : > { %6748 = vmatmul.mubr.msk.f32.gmra.mrb[46].mxu0 %vm275_vm1, %v680_v39  ;;  %7028 = vmatmul.mubr.msk.f32.gmra.mrb[10].mxu1 %vm275_vm1, %v7933_v40  ;;  %v8118_v39 = vld [vmem:[%s8901_s2 + $0xc] sm:$0xf] }
  0x72   : > { %6750 = vmatprep.mubr.msk.f32.mxu0 %vm275_vm1, %v681_v41  ;;  %7030 = vmatprep.mubr.msk.f32.mxu1 %vm275_vm1, %v7937_v42  ;;  %v8123_v41 = vld [vmem:[%s8901_s2 + $0x20] sm:$0xf] }
  0x75   : > { %6751 = vmatmul.mubr.msk.f32.gmra.mrb[48].mxu0 %vm275_vm1, %v682_v43  ;;  %7031 = vmatmul.mubr.msk.f32.gmra.mrb[12].mxu1 %vm275_vm1, %v7947_v44  ;;  %v1114_v43 = vld [vmem:[%s7614_s10 + $0x81] sm:$0xff] }
  0x76   : > { %6753 = vmatprep.mubr.msk.f32.mxu0 %vm275_vm1, %v683_v45  ;;  %7033 = vmatprep.mubr.msk.f32.mxu1 %vm275_vm1, %v7951_v46  ;;  %v1116_v45 = vld [vmem:[%s7614_s10 + $0x91] sm:$0xff] }
  0x79   : > { %6754 = vmatmul.mubr.msk.f32.gmra.mrb[50].mxu0 %vm275_vm1, %v684_v47  ;;  %7034 = vmatmul.mubr.msk.f32.gmra.mrb[14].mxu1 %vm275_vm1, %v7961_v48  ;;  %v1117_v47 = vld [vmem:[%s7614_s10 + $0x99] sm:$0xff] }
  0x7a   : > { %6756 = vmatprep.mubr.msk.f32.mxu0 %vm275_vm1, %v685_v49  ;;  %7036 = vmatprep.mubr.msk.f32.mxu1 %vm275_vm1, %v7965_v50 }
  0x7d   : > { %6757 = vmatmul.mubr.msk.f32.gmra.mrb[52].mxu0 %vm275_vm1, %v686_v51  ;;  %7037 = vmatmul.mubr.msk.f32.gmra.mrb[16].mxu1 %vm275_vm1, %v7975_v52 }
  0x7e   : > { %6759 = vmatprep.mubr.msk.f32.mxu0 %vm275_vm1, %v687_v53  ;;  %7039 = vmatprep.mubr.msk.f32.mxu1 %vm275_vm1, %v7979_v54 }
  0x81   : > { %6760 = vmatmul.mubr.msk.f32.gmra.mrb[54].mxu0 %vm275_vm1, %v688_v55  ;;  %7040 = vmatmul.mubr.msk.f32.gmra.mrb[18].mxu1 %vm275_vm1, %v7989_v56  ;;  %v1122_v55 = vld [vmem:[%s7614_s10 + $0xc1] sm:$0xff] }
  0x82   : > { %6762 = vmatprep.mubr.msk.f32.mxu0 %vm275_vm1, %v689_v57  ;;  %7042 = vmatprep.mubr.msk.f32.mxu1 %vm275_vm1, %v7993_v58 }
  0x85   : > { %6763 = vmatmul.mubr.msk.f32.gmra.mrb[56].mxu0 %vm275_vm1, %v690_v59  ;;  %7043 = vmatmul.mubr.msk.f32.gmra.mrb[20].mxu1 %vm275_vm1, %v8003_v60  ;;  %v1124_v59 = vld [vmem:[%s7614_s10 + $0xd1] sm:$0xff] }
  0x86   : > { %6765 = vmatprep.mubr.msk.f32.mxu0 %vm275_vm1, %v691_v61  ;;  %7045 = vmatprep.mubr.msk.f32.mxu1 %vm275_vm1, %v8007_v62 }
  0x89   : > { %6766 = vmatmul.mubr.msk.f32.gmra.mrb[58].mxu0 %vm275_vm1, %v692_v63  ;;  %7046 = vmatmul.mubr.msk.f32.gmra.mrb[22].mxu1 %vm275_vm1, %v8017_v0 }
  0x8a   : > { %6768 = vmatprep.mubr.msk.f32.mxu0 %vm275_vm1, %v693_v1  ;;  %7048 = vmatprep.mubr.msk.f32.mxu1 %vm275_vm1, %v8021_v2  ;;  %v1128_v1 = vld [vmem:[%s7614_s10 + $0xf1] sm:$0xff] }
  0x8d   : > { %6769 = vmatmul.mubr.msk.f32.gmra.mrb[60].mxu0 %vm275_vm1, %v694_v3  ;;  %7049 = vmatmul.mubr.msk.f32.gmra.mrb[24].mxu1 %vm275_vm1, %v8031_v4 }
  0x8e   : > { %6771 = vmatprep.mubr.msk.f32.mxu0 %vm275_vm1, %v695_v5  ;;  %7051 = vmatprep.mubr.msk.f32.mxu1 %vm275_vm1, %v8035_v6  ;;  %v1130_v5 = vld [vmem:[%s7614_s10 + $0x101] sm:$0xff] }
  0x91   : > { %6772 = vmatmul.mubr.msk.f32.gmra.mrb[62].mxu0 %vm275_vm1, %v696_v7  ;;  %7052 = vmatmul.mubr.msk.f32.gmra.mrb[26].mxu1 %vm275_vm1, %v8045_v8  ;;  %v8204_v49 = vpop.permute.xlu0 %5296 }
  0x92   : > { %6774 = vmatprep.mubr.msk.f32.mxu0 %vm275_vm1, %v697_v9  ;;  %7054 = vmatprep.mubr.msk.f32.mxu1 %vm275_vm1, %v8049_v12  ;;  %v3642_v9 = vld [vmem:[%s7614_s10 + $0x134] sm:$0xff] }
  0x95   : > { %6775 = vmatmul.mubr.msk.f32.gmra.mrb[64].mxu0 %vm275_vm1, %v698_v13  ;;  %7055 = vmatmul.mubr.msk.f32.gmra.mrb[28].mxu1 %vm275_vm1, %v8059_v14  ;;  %v1133_v13 = vld [vmem:[%s7614_s10 + $0x119] sm:$0xff] }
  0x96   : > { %6777 = vmatprep.mubr.msk.f32.mxu0 %vm275_vm1, %v699_v15  ;;  %7057 = vmatprep.mubr.msk.f32.mxu1 %vm275_vm1, %v8063_v16  ;;  %v1600_v15 = vld [vmem:[%s7614_s10 + $0x2] sm:$0xff] }
  0x99   : > { %6778 = vmatmul.mubr.msk.f32.gmra.mrb[66].mxu0 %vm275_vm1, %v700_v17  ;;  %7058 = vmatmul.mubr.msk.f32.gmra.mrb[30].mxu1 %vm275_vm1, %v8073_v18 }
  0x9a   : > { %6780 = vmatprep.mubr.msk.f32.mxu0 %vm275_vm1, %v701_v19  ;;  %7060 = vmatprep.mubr.msk.f32.mxu1 %vm275_vm1, %v8077_v20  ;;  %v8219_v53 = vpop.permute.xlu0 %5301 }
  0x9d   : > { %6781 = vmatmul.mubr.msk.f32.gmra.mrb[68].mxu0 %vm275_vm1, %v702_v21  ;;  %7061 = vmatmul.mubr.msk.f32.gmra.mrb[32].mxu1 %vm275_vm1, %v8087_v25 }
  0x9e   : > { %6783 = vmatprep.mubr.msk.f32.mxu0 %vm275_vm1, %v703_v27  ;;  %7063 = vmatprep.mubr.msk.f32.mxu1 %vm275_vm1, %v8091_v10  ;;  %v8231_v57 = vpop.permute.xlu0 %5316  ;;  %v1601_v27 = vld [vmem:[%s7614_s10 + $0xa] sm:$0xff] }
  0xa1   : > { %6784 = vmatmul.mubr.msk.f32.gmra.mrb[70].mxu0 %vm275_vm1, %v704_v29  ;;  %7064 = vmatmul.mubr.msk.f32.gmra.mrb[34].mxu1 %vm275_vm1, %v8101_v31 }
  0xa2   : > { %6788 = vmatprep.mubr.msk.f32.mxu0 %vm275_vm1, %v1098_v33  ;;  %7068 = vmatprep.mubr.msk.f32.mxu1 %vm275_vm1, %v7850_v22  ;;  %v1101_v22 = vld [vmem:[%s7614_s10 + $0x19] sm:$0xff]  ;;  %v8248_v63 = vpop.permute.xlu0 %5326 }
  0xa5   : > { %6789 = vmatmul.mubr.msk.f32.vlgmr.msra.gmra.mrb[36].mxu0 %vm275_vm1, %v1099_v35  ;;  %7069 = vmatmul.mubr.msk.f32.vlgmr.msra.gmra.mrb[0].mxu1 %vm275_vm1, %v7870_v26  ;;  %v1102_v26 = vld [vmem:[%s7614_s10 + $0x21] sm:$0xff] }
  0xa6   : > { %6843 = vmatpush3.msk.msra.mxu0 %vm384_vm0, %v7857_v23  ;;  %7123 = vmatpush3.msk.msra.mxu1 %vm384_vm0, %v7862_v24  ;;  %v1103_v23 = vld [vmem:[%s7614_s10 + $0x29] sm:$0xff]  ;;  %v1104_v24 = vld [vmem:[%s7614_s10 + $0x31] sm:$0xff]  ;;  %v8263_v3 = vpop.permute.xlu0 %5336 }
  0xa7   : > { %6791 = vmatprep.mubr.msk.f32.mxu0 %vm275_vm1, %v1100_v37  ;;  %7071 = vmatprep.mubr.msk.f32.mxu1 %vm275_vm1, %v7877_v28  ;;  %v1105_v28 = vld [vmem:[%s7614_s10 + $0x39] sm:$0xff] }
  0xa8   : > { %6898 = vmatprep.subr.msk.mxu0 %vm384_vm0, %v8118_v39  ;;  %7178 = vmatprep.subr.msk.mxu1 %vm384_vm0, %v8123_v41  ;;  %v8313_v37 = vld [vmem:[%s7614_s10 + $0x12] sm:$0xff] }
  0xa9   : > { %6792 = vmatmul.mubr.msk.f32.gmra.mrb[38].mxu0 %vm275_vm1, %v1101_v22  ;;  %7072 = vmatmul.mubr.msk.f32.gmra.mrb[2].mxu1 %vm275_vm1, %v7891_v11  ;;  %v1106_v11 = vld [vmem:[%s7614_s10 + $0x41] sm:$0xff]  ;;  %v4112_v22 = vld [vmem:[%s7614_s10 + $0x35] sm:$0xff] }
  0xaa   : > { %6794 = vmatprep.mubr.msk.f32.mxu0 %vm275_vm1, %v1102_v26  ;;  %7074 = vmatprep.mubr.msk.f32.mxu1 %vm275_vm1, %v7895_v30  ;;  %v1107_v30 = vld [vmem:[%s7614_s10 + $0x49] sm:$0xff] }
  0xad   : > { %6795 = vmatmul.mubr.msk.f32.gmra.mrb[40].mxu0 %vm275_vm1, %v1103_v23  ;;  %7075 = vmatmul.mubr.msk.f32.gmra.mrb[4].mxu1 %vm275_vm1, %v7905_v32  ;;  %v1108_v32 = vld [vmem:[%s7614_s10 + $0x51] sm:$0xff] }
  0xae   : > { %6797 = vmatprep.mubr.msk.f32.mxu0 %vm275_vm1, %v1104_v24  ;;  %7077 = vmatprep.mubr.msk.f32.mxu1 %vm275_vm1, %v7909_v34  ;;  %v1109_v34 = vld [vmem:[%s7614_s10 + $0x59] sm:$0xff] }
  0xb1   : > { %6798 = vmatmul.mubr.msk.f32.gmra.mrb[42].mxu0 %vm275_vm1, %v1105_v28  ;;  %7078 = vmatmul.mubr.msk.f32.gmra.mrb[6].mxu1 %vm275_vm1, %v7919_v36  ;;  %v1110_v36 = vld [vmem:[%s7614_s10 + $0x61] sm:$0xff] }
  0xb2   : > { %6800 = vmatprep.mubr.msk.f32.mxu0 %vm275_vm1, %v1106_v11  ;;  %7080 = vmatprep.mubr.msk.f32.mxu1 %vm275_vm1, %v7923_v38  ;;  %v1111_v38 = vld [vmem:[%s7614_s10 + $0x69] sm:$0xff]  ;;  %v8327_v11 = vld [vmem:[%s7614_s10 + $0x1a] sm:$0xff] }
  0xb5   : > { %6801 = vmatmul.mubr.msk.f32.gmra.mrb[44].mxu0 %vm275_vm1, %v1107_v30  ;;  %7081 = vmatmul.mubr.msk.f32.gmra.mrb[8].mxu1 %vm275_vm1, %v7933_v40  ;;  %v1112_v40 = vld [vmem:[%s7614_s10 + $0x71] sm:$0xff]  ;;  %v4113_v30 = vld [vmem:[%s7614_s10 + $0x3d] sm:$0xff] }
  0xb6   : > { %6803 = vmatprep.mubr.msk.f32.mxu0 %vm275_vm1, %v1108_v32  ;;  %7083 = vmatprep.mubr.msk.f32.mxu1 %vm275_vm1, %v7937_v42  ;;  %v1113_v42 = vld [vmem:[%s7614_s10 + $0x79] sm:$0xff] }
  0xb9   : > { %6804 = vmatmul.mubr.msk.f32.gmra.mrb[46].mxu0 %vm275_vm1, %v1109_v34  ;;  %7084 = vmatmul.mubr.msk.f32.gmra.mrb[10].mxu1 %vm275_vm1, %v7947_v44  ;;  %v1115_v44 = vld [vmem:[%s7614_s10 + $0x89] sm:$0xff] }
  0xba   : > { %6806 = vmatprep.mubr.msk.f32.mxu0 %vm275_vm1, %v1110_v36  ;;  %7086 = vmatprep.mubr.msk.f32.mxu1 %vm275_vm1, %v7951_v46  ;;  %v8194_v46 = vpop.permute.xlu1 %5306  ;;  %v8336_v34 = vld [vmem:[%s7614_s10 + $0x22] sm:$0xff] }
  0xbb   : > { %v4114_v36 = vld [vmem:[%s7614_s10 + $0x45] sm:$0xff] }
  0xbd   : > { %6807 = vmatmul.mubr.msk.f32.gmra.mrb[48].mxu0 %vm275_vm1, %v1111_v38  ;;  %7087 = vmatmul.mubr.msk.f32.gmra.mrb[12].mxu1 %vm275_vm1, %v7961_v48  ;;  %v1118_v48 = vld [vmem:[%s7614_s10 + $0xa1] sm:$0xff] }
  0xbe   : > { %6809 = vmatprep.mubr.msk.f32.mxu0 %vm275_vm1, %v1112_v40  ;;  %7089 = vmatprep.mubr.msk.f32.mxu1 %vm275_vm1, %v7965_v50  ;;  %v1119_v50 = vld [vmem:[%s7614_s10 + $0xa9] sm:$0xff]  ;;  %v8213_v51 = vpop.permute.xlu1 %5311 }
  0xc1   : > { %6810 = vmatmul.mubr.msk.f32.gmra.mrb[50].mxu0 %vm275_vm1, %v1113_v42  ;;  %7090 = vmatmul.mubr.msk.f32.gmra.mrb[14].mxu1 %vm275_vm1, %v7975_v52  ;;  %v1120_v52 = vld [vmem:[%s7614_s10 + $0xb1] sm:$0xff] }
  0xc2   : > { %6812 = vmatprep.mubr.msk.f32.mxu0 %vm275_vm1, %v1114_v43  ;;  %7092 = vmatprep.mubr.msk.f32.mxu1 %vm275_vm1, %v7979_v54  ;;  %v1121_v54 = vld [vmem:[%s7614_s10 + $0xb9] sm:$0xff] }
  0xc5   : > { %6813 = vmatmul.mubr.msk.f32.gmra.mrb[52].mxu0 %vm275_vm1, %v1115_v44  ;;  %7093 = vmatmul.mubr.msk.f32.gmra.mrb[16].mxu1 %vm275_vm1, %v7989_v56  ;;  %v8226_v56 = vpop.permute.xlu1 %5321 }
  0xc6   : > { %6815 = vmatprep.mubr.msk.f32.mxu0 %vm275_vm1, %v1116_v45  ;;  %7095 = vmatprep.mubr.msk.f32.mxu1 %vm275_vm1, %v7993_v58  ;;  %v1123_v58 = vld [vmem:[%s7614_s10 + $0xc9] sm:$0xff] }
  0xc9   : > { %6816 = vmatmul.mubr.msk.f32.gmra.mrb[54].mxu0 %vm275_vm1, %v1117_v47  ;;  %7096 = vmatmul.mubr.msk.f32.gmra.mrb[18].mxu1 %vm275_vm1, %v8003_v60  ;;  %v1125_v60 = vld [vmem:[%s7614_s10 + $0xd9] sm:$0xff]  ;;  %v8245_v61 = vpop.permute.xlu1 %5331 }
  0xca   : > { %6818 = vmatprep.mubr.msk.f32.mxu0 %vm275_vm1, %v1118_v48  ;;  %7098 = vmatprep.mubr.msk.f32.mxu1 %vm275_vm1, %v8007_v62  ;;  %v1126_v62 = vld [vmem:[%s7614_s10 + $0xe1] sm:$0xff] }
  0xcd   : > { %6819 = vmatmul.mubr.msk.f32.gmra.mrb[56].mxu0 %vm275_vm1, %v1119_v50  ;;  %7099 = vmatmul.mubr.msk.f32.gmra.mrb[20].mxu1 %vm275_vm1, %v8017_v0  ;;  %v1127_v0 = vld [vmem:[%s7614_s10 + $0xe9] sm:$0xff] }
  0xce   : > { %6821 = vmatprep.mubr.msk.f32.mxu0 %vm275_vm1, %v1120_v52  ;;  %7101 = vmatprep.mubr.msk.f32.mxu1 %vm275_vm1, %v8021_v2  ;;  %v8258_v2 = vpop.permute.xlu1 %5341  ;;  %v8352_v50 = vld [vmem:[%s7614_s10 + $0x2a] sm:$0xff] }
  0xcf   : > { %v4115_v52 = vld [vmem:[%s7614_s10 + $0x4d] sm:$0xff] }
  0xd1   : > { %6822 = vmatmul.mubr.msk.f32.gmra.mrb[58].mxu0 %vm275_vm1, %v1121_v54  ;;  %7102 = vmatmul.mubr.msk.f32.gmra.mrb[22].mxu1 %vm275_vm1, %v8031_v4  ;;  %v1129_v4 = vld [vmem:[%s7614_s10 + $0xf9] sm:$0xff] }
  0xd2   : > { %6824 = vmatprep.mubr.msk.f32.mxu0 %vm275_vm1, %v1122_v55  ;;  %7104 = vmatprep.mubr.msk.f32.mxu1 %vm275_vm1, %v8035_v6  ;;  %v1131_v6 = vld [vmem:[%s7614_s10 + $0x109] sm:$0xff]  ;;  %v8278_v7 = vpop.permute.xlu1 %5351  ;;  %v8356_v54 = vld [vmem:[%s7614_s10 + $0x32] sm:$0xff] }
  0xd3   : > { %v4116_v55 = vld [vmem:[%s7614_s10 + $0x55] sm:$0xff] }
  0xd5   : > { %6825 = vmatmul.mubr.msk.f32.gmra.mrb[60].mxu0 %vm275_vm1, %v1123_v58  ;;  %7105 = vmatmul.mubr.msk.f32.gmra.mrb[24].mxu1 %vm275_vm1, %v8045_v8  ;;  %v1132_v8 = vld [vmem:[%s7614_s10 + $0x111] sm:$0xff] }
  0xd6   : > { %6827 = vmatprep.mubr.msk.f32.mxu0 %vm275_vm1, %v1124_v59  ;;  %7107 = vmatprep.mubr.msk.f32.mxu1 %vm275_vm1, %v8049_v12  ;;  %v8282_v12 = vpop.permute.xlu0 %5346 }
  0xd7   : > { %8928 = vst [vmem:[#allocation3_spill] sm:$0xff] %v8282_v12 }
  0xd9   : > { %6828 = vmatmul.mubr.msk.f32.gmra.mrb[62].mxu0 %vm275_vm1, %v1125_v60  ;;  %7108 = vmatmul.mubr.msk.f32.gmra.mrb[26].mxu1 %vm275_vm1, %v8059_v14  ;;  %v3643_v14 = vld [vmem:[%s7614_s10 + $0x13c] sm:$0xff] }
  0xda   : > { %6830 = vmatprep.mubr.msk.f32.mxu0 %vm275_vm1, %v1126_v62  ;;  %7110 = vmatprep.mubr.msk.f32.mxu1 %vm275_vm1, %v8063_v16  ;;  %v4110_v16 = vld [vmem:[%s7614_s10 + $0x25] sm:$0xff]  ;;  %v8304_v21 = vpop.permute.xlu0 %5356 }
  0xdb   : > { %8930 = vst [vmem:[#allocation5_spill] sm:$0xff] %v8304_v21 }
  0xdd   : > { %6831 = vmatmul.mubr.msk.f32.gmra.mrb[64].mxu0 %vm275_vm1, %v1127_v0  ;;  %7111 = vmatmul.mubr.msk.f32.gmra.mrb[28].mxu1 %vm275_vm1, %v8073_v18  ;;  %v8298_v18 = vpop.permute.xlu1 %5361 }
  0xde   : > { %6833 = vmatprep.mubr.msk.f32.mxu0 %vm275_vm1, %v1128_v1  ;;  %7113 = vmatprep.mubr.msk.f32.mxu1 %vm275_vm1, %v8077_v20  ;;  %8929 = vst [vmem:[#allocation4_spill] sm:$0xff] %v8298_v18  ;;  %v8339_v38 = vpop.permute.xlu0 %5366 }
  0xdf   : > { %8932 = vst [vmem:[#allocation7_spill] sm:$0xff] %v8339_v38 }
  0xe1   : > { %6834 = vmatmul.mubr.msk.f32.gmra.mrb[66].mxu0 %vm275_vm1, %v1129_v4  ;;  %7114 = vmatmul.mubr.msk.f32.gmra.mrb[30].mxu1 %vm275_vm1, %v8087_v25  ;;  %v8330_v32 = vpop.permute.xlu1 %5371 }
  0xe2   : > { %6836 = vmatprep.mubr.msk.f32.mxu0 %vm275_vm1, %v1130_v5  ;;  %7116 = vmatprep.mubr.msk.f32.mxu1 %vm275_vm1, %v8091_v10  ;;  %v4111_v10 = vld [vmem:[%s7614_s10 + $0x2d] sm:$0xff]  ;;  %8931 = vst [vmem:[#allocation6_spill] sm:$0xff] %v8330_v32 }
  0xe5   : > { %6837 = vmatmul.mubr.msk.f32.gmra.mrb[68].mxu0 %vm275_vm1, %v1131_v6  ;;  %7117 = vmatmul.mubr.msk.f32.gmra.mrb[32].mxu1 %vm275_vm1, %v8101_v31  ;;  %v8359_v0 = vpop.permute.xlu1 %5381  ;;  %v8366_v6 = vpop.permute.xlu0 %5376 }
  0xe6   : > { %6839 = vmatprep.mubr.msk.f32.mxu0 %vm275_vm1, %v1132_v8  ;;  %7119 = vmatprep.mubr.msk.f32.mxu1 %vm275_vm1, %v3642_v9  ;;  %8933 = vst [vmem:[#allocation8_spill] sm:$0xff] %v8359_v0  ;;  %8934 = vst [vmem:[#allocation9_spill] sm:$0xff] %v8366_v6 }
  0xe8   : > { %v6678_v17 = vpop.f32.mrb[0].mxu0 }
  0xe9   : > { %5188 = vst [vmem:[%s8290_s30 + $0x10] sm:$0xff] %v6678_v17  ;;  %v5476_v19 = vmul.f32 %v6678_v17, %v8219_v53  ;;  %v454_v20 = vpop.f32.mrb[1].mxu0  ;;  %6840 = vmatmul.mubr.msk.f32.gmra.mrb[70].mxu0 %vm275_vm1, %v1133_v13  ;;  %7120 = vmatmul.mubr.msk.f32.gmra.mrb[34].mxu1 %vm275_vm1, %v3643_v14  ;;  %v8374_v14 = vld [vmem:[%s7614_s10 + $0x3a] sm:$0xff] }
  0xea   : > { %5186 = vst [vmem:[%s8290_s30] sm:$0xff] %v454_v20  ;;  %v5474_v25 = vmul.f32 %v8204_v49, %v454_v20  ;;  %6844 = vmatprep.mubr.msk.f32.mxu0 %vm275_vm1, %v1600_v15  ;;  %7124 = vmatprep.mubr.msk.f32.mxu1 %vm275_vm1, %v4110_v16  ;;  %v4117_v15 = vld [vmem:[%s7614_s10 + $0x5d] sm:$0xff] }
  0xeb   : > { %v5653_v29 = vmul.f32 %v6678_v17, %v5476_v19  ;;  %v8378_v16 = vld [vmem:[%s7614_s10 + $0x42] sm:$0xff] }
  0xec   : > { %v5546_v31 = vadd.f32 %v5476_v19, %v5474_v25  ;;  %v5651_v33 = vmul.f32 %v5474_v25, %v454_v20  ;;  %v6681_v35 = vpop.f32.mrb[2].mxu0  ;;  %v4118_v17 = vld [vmem:[%s7614_s10 + $0x65] sm:$0xff] }
  0xed   : > { %5192 = vst [vmem:[%s8290_s30 + $0x30] sm:$0xff] %v6681_v35  ;;  %v5480_v26 = vmul.f32 %v6681_v35, %v8213_v51  ;;  %v464_v23 = vpop.f32.mrb[3].mxu0  ;;  %6845 = vmatmul.mubr.msk.f32.vlgmr.msra.gmra.mrb[36].mxu0 %vm275_vm1, %v1601_v27  ;;  %7125 = vmatmul.mubr.msk.f32.vlgmr.msra.gmra.mrb[0].mxu1 %vm275_vm1, %v4111_v10 }
  0xee   : > { %v5723_v24 = vadd.f32 %v5653_v29, %v5651_v33  ;;  %5190 = vst [vmem:[%s8290_s30 + $0x20] sm:$0xff] %v464_v23  ;;  %v5478_v28 = vmul.f32 %v8194_v46, %v464_v23  ;;  %6899 = vmatpush3.msk.msra.mxu0 %vm384_vm0, %v8118_v39  ;;  %7179 = vmatpush3.msk.msra.mxu1 %vm384_vm0, %v8123_v41 }
  0xef   : > { %6847 = vmatprep.mubr.msk.f32.mxu0 %vm275_vm1, %v8313_v37  ;;  %7127 = vmatprep.mubr.msk.f32.mxu1 %vm275_vm1, %v4112_v22  ;;  %v5657_v42 = vmul.f32 %v6681_v35, %v5480_v26 }
  0xf0   : > { %v5547_v39 = vadd.f32 %v5546_v31, %v5478_v28  ;;  %v5655_v41 = vmul.f32 %v5478_v28, %v464_v23  ;;  %v6684_v40 = vpop.f32.mrb[4].mxu0  ;;  %v4119_v23 = vld [vmem:[%s7614_s10 + $0x6d] sm:$0xff] }
  0xf1   : > { %5196 = vst [vmem:[%s8290_s30 + $0x50] sm:$0xff] %v6684_v40  ;;  %v5484_v43 = vmul.f32 %v6684_v40, %v8226_v56  ;;  %v474_v44 = vpop.f32.mrb[5].mxu0  ;;  %6848 = vmatmul.mubr.msk.f32.gmra.mrb[38].mxu0 %vm275_vm1, %v8327_v11  ;;  %7128 = vmatmul.mubr.msk.f32.gmra.mrb[2].mxu1 %vm275_vm1, %v4113_v30  ;;  %v8398_v28 = vld [vmem:[%s7614_s10 + $0x52] sm:$0xff] }
  0xf2   : > { %v5724_v45 = vadd.f32 %v5723_v24, %v5655_v41  ;;  %5194 = vst [vmem:[%s8290_s30 + $0x40] sm:$0xff] %v474_v44  ;;  %v5482_v47 = vmul.f32 %v8231_v57, %v474_v44  ;;  %v5548_v48 = vadd.f32 %v5547_v39, %v5480_v26  ;;  %6850 = vmatprep.mubr.msk.f32.mxu0 %vm275_vm1, %v8336_v34  ;;  %v8392_v26 = vld [vmem:[%s7614_s10 + $0x4a] sm:$0xff]  ;;  %v8395_v24 = vpop.permute.xlu1 %5391  ;;  %v4120_v30 = vld [vmem:[%s7614_s10 + $0x75] sm:$0xff] }
  0xf3   : > { %7130 = vmatprep.mubr.msk.f32.mxu1 %vm275_vm1, %v4114_v36  ;;  %v5661_v1 = vmul.f32 %v6684_v40, %v5484_v43  ;;  %8935 = vst [vmem:[#allocation10_spill] sm:$0xff] %v8395_v24  ;;  %v8401_v36 = vpop.permute.xlu0 %5386 }
  0xf4   : > { %v5549_v58 = vadd.f32 %v5548_v48, %v5482_v47  ;;  %v5659_v59 = vmul.f32 %v5482_v47, %v474_v44  ;;  %v5725_v60 = vadd.f32 %v5724_v45, %v5657_v42  ;;  %v6687_v62 = vpop.f32.mrb[6].mxu0  ;;  %8936 = vst [vmem:[#allocation11_spill] sm:$0xff] %v8401_v36 }
  0xf5   : > { %5200 = vst [vmem:[%s8290_s30 + $0x70] sm:$0xff] %v6687_v62  ;;  %v5488_v4 = vmul.f32 %v6687_v62, %v8245_v61  ;;  %v484_v5 = vpop.f32.mrb[7].mxu0  ;;  %6851 = vmatmul.mubr.msk.f32.gmra.mrb[40].mxu0 %vm275_vm1, %v8352_v50  ;;  %7131 = vmatmul.mubr.msk.f32.gmra.mrb[4].mxu1 %vm275_vm1, %v4115_v52 }
  0xf6   : > { %v5726_v8 = vadd.f32 %v5725_v60, %v5659_v59  ;;  %5198 = vst [vmem:[%s8290_s30 + $0x60] sm:$0xff] %v484_v5  ;;  %v5486_v9 = vmul.f32 %v8248_v63, %v484_v5  ;;  %v5550_v13 = vadd.f32 %v5549_v58, %v5484_v43  ;;  %6853 = vmatprep.mubr.msk.f32.mxu0 %vm275_vm1, %v8356_v54  ;;  %v4121_v58 = vld [vmem:[%s7614_s10 + $0x7d] sm:$0xff]  ;;  %v4122_v60 = vld [vmem:[%s7614_s10 + $0x85] sm:$0xff] }
  0xf7   : > { %7133 = vmatprep.mubr.msk.f32.mxu1 %vm275_vm1, %v4116_v55  ;;  %v5665_v10 = vmul.f32 %v6687_v62, %v5488_v4  ;;  %v8414_v55 = vld [vmem:[%s7614_s10 + $0x5a] sm:$0xff]  ;;  %v8418_v59 = vld [vmem:[%s7614_s10 + $0x62] sm:$0xff] }
  0xf8   : > { %v5551_v19 = vadd.f32 %v5550_v13, %v5486_v9  ;;  %v5663_v20 = vmul.f32 %v5486_v9, %v484_v5  ;;  %v5727_v25 = vadd.f32 %v5726_v8, %v5661_v1  ;;  %v6690_v27 = vpop.f32.mrb[8].mxu0  ;;  %v8421_v8 = vpop.permute.xlu1 %5401 }
  0xf9   : > { %5204 = vst [vmem:[%s8290_s30 + $0x90] sm:$0xff] %v6690_v27  ;;  %v5492_v29 = vmul.f32 %v6690_v27, %v8258_v2  ;;  %v494_v31 = vpop.f32.mrb[9].mxu0  ;;  %6854 = vmatmul.mubr.msk.f32.gmra.mrb[42].mxu0 %vm275_vm1, %v8374_v14  ;;  %7134 = vmatmul.mubr.msk.f32.gmra.mrb[6].mxu1 %vm275_vm1, %v4117_v15  ;;  %8937 = vst [vmem:[#allocation12_spill] sm:$0xff] %v8421_v8 }
  0xfa   : > { %v5728_v33 = vadd.f32 %v5727_v25, %v5663_v20  ;;  %5202 = vst [vmem:[%s8290_s30 + $0x80] sm:$0xff] %v494_v31  ;;  %v5490_v35 = vmul.f32 %v8263_v3, %v494_v31  ;;  %v5552_v22 = vadd.f32 %v5551_v19, %v5488_v4  ;;  %6856 = vmatprep.mubr.msk.f32.mxu0 %vm275_vm1, %v8378_v16 }
  0xfb   : > { %7136 = vmatprep.mubr.msk.f32.mxu1 %vm275_vm1, %v4118_v17  ;;  %v5669_v43 = vmul.f32 %v6690_v27, %v5492_v29  ;;  %v8428_v17 = vpop.permute.xlu0 %5396  ;;  %v8436_v27 = vld [vmem:[%s7614_s10 + $0x6a] sm:$0xff] }
  0xfc   : > { %v5553_v39 = vadd.f32 %v5552_v22, %v5490_v35  ;;  %v5667_v41 = vmul.f32 %v5490_v35, %v494_v31  ;;  %v5729_v40 = vadd.f32 %v5728_v33, %v5665_v10  ;;  %v6693_v42 = vpop.f32.mrb[10].mxu0  ;;  %8938 = vst [vmem:[#allocation13_spill] sm:$0xff] %v8428_v17  ;;  %v4123_v10 = vld [vmem:[%s7614_s10 + $0x8d] sm:$0xff]  ;;  %v4124_v31 = vld [vmem:[%s7614_s10 + $0x95] sm:$0xff] }
  0xfd   : > { %5208 = vst [vmem:[%s8290_s30 + $0xb0] sm:$0xff] %v6693_v42  ;;  %v5496_v44 = vmul.f32 %v6693_v42, %v8278_v7  ;;  %v504_v45 = vpop.f32.mrb[11].mxu0  ;;  %6857 = vmatmul.mubr.msk.f32.gmra.mrb[44].mxu0 %vm275_vm1, %v8392_v26  ;;  %7137 = vmatmul.mubr.msk.f32.gmra.mrb[8].mxu1 %vm275_vm1, %v4119_v23 }
  0xfe   : > { %v5730_v47 = vadd.f32 %v5729_v40, %v5667_v41  ;;  %5206 = vst [vmem:[%s8290_s30 + $0xa0] sm:$0xff] %v504_v45  ;;  %v5494_v48 = vmul.f32 %v8282_v12, %v504_v45  ;;  %v5554_v52 = vadd.f32 %v5553_v39, %v5492_v29  ;;  %6859 = vmatprep.mubr.msk.f32.mxu0 %vm275_vm1, %v8398_v28  ;;  %v8440_v29 = vld [vmem:[%s7614_s10 + $0x72] sm:$0xff] }
  0xff   : > { %7139 = vmatprep.mubr.msk.f32.mxu1 %vm275_vm1, %v4120_v30  ;;  %v5673_v9 = vmul.f32 %v6693_v42, %v5496_v44 }
 0x100   : > { %v5555_v62 = vadd.f32 %v5554_v52, %v5494_v48  ;;  %v5671_v1 = vmul.f32 %v5494_v48, %v504_v45  ;;  %v5731_v4 = vadd.f32 %v5730_v47, %v5669_v43  ;;  %v6696_v5 = vpop.f32.mrb[12].mxu0  ;;  %v4125_v45 = vld [vmem:[%s7614_s10 + $0x9d] sm:$0xff]  ;;  %v8457_v47 = vpop.permute.xlu1 %5411  ;;  %v4126_v52 = vld [vmem:[%s7614_s10 + $0xa5] sm:$0xff] }
 0x101   : > { %5212 = vst [vmem:[%s8290_s30 + $0xd0] sm:$0xff] %v6696_v5  ;;  %v5500_v13 = vmul.f32 %v6696_v5, %v8298_v18  ;;  %v514_v15 = vpop.f32.mrb[13].mxu0  ;;  %6860 = vmatmul.mubr.msk.f32.gmra.mrb[46].mxu0 %vm275_vm1, %v8414_v55  ;;  %7140 = vmatmul.mubr.msk.f32.gmra.mrb[10].mxu1 %vm275_vm1, %v4121_v58  ;;  %8939 = vst [vmem:[#allocation14_spill] sm:$0xff] %v8457_v47  ;;  %v8460_v48 = vld [vmem:[%s7614_s10 + $0x82] sm:$0xff]  ;;  %v8463_v58 = vpop.permute.xlu0 %5406 }
 0x102   : > { %v5732_v19 = vadd.f32 %v5731_v4, %v5671_v1  ;;  %5210 = vst [vmem:[%s8290_s30 + $0xc0] sm:$0xff] %v514_v15  ;;  %v5498_v20 = vmul.f32 %v8304_v21, %v514_v15  ;;  %v5556_v25 = vadd.f32 %v5555_v62, %v5496_v44  ;;  %6862 = vmatprep.mubr.msk.f32.mxu0 %vm275_vm1, %v8418_v59  ;;  %v8454_v44 = vld [vmem:[%s7614_s10 + $0x7a] sm:$0xff]  ;;  %8940 = vst [vmem:[#allocation15_spill] sm:$0xff] %v8463_v58 }
 0x103   : > { %7142 = vmatprep.mubr.msk.f32.mxu1 %vm275_vm1, %v4122_v60  ;;  %v5677_v30 = vmul.f32 %v6696_v5, %v5500_v13 }
 0x104   : > { %v5557_v33 = vadd.f32 %v5556_v25, %v5498_v20  ;;  %v5675_v35 = vmul.f32 %v5498_v20, %v514_v15  ;;  %v5733_v22 = vadd.f32 %v5732_v19, %v5673_v9  ;;  %v6699_v23 = vpop.f32.mrb[14].mxu0  ;;  %v8476_v25 = vld [vmem:[%s7614_s10 + $0x8a] sm:$0xff] }
 0x105   : > { %5216 = vst [vmem:[%s8290_s30 + $0xf0] sm:$0xff] %v6699_v23  ;;  %v5504_v39 = vmul.f32 %v6699_v23, %v8330_v32  ;;  %v524_v41 = vpop.f32.mrb[15].mxu0  ;;  %6863 = vmatmul.mubr.msk.f32.gmra.mrb[48].mxu0 %vm275_vm1, %v8436_v27  ;;  %7143 = vmatmul.mubr.msk.f32.gmra.mrb[12].mxu1 %vm275_vm1, %v4123_v10  ;;  %v4127_v10 = vld [vmem:[%s7614_s10 + $0xad] sm:$0xff] }
 0x106   : > { %v5734_v40 = vadd.f32 %v5733_v22, %v5675_v35  ;;  %5214 = vst [vmem:[%s8290_s30 + $0xe0] sm:$0xff] %v524_v41  ;;  %v5502_v42 = vmul.f32 %v8339_v38, %v524_v41  ;;  %v5558_v43 = vadd.f32 %v5557_v33, %v5500_v13  ;;  %6865 = vmatprep.mubr.msk.f32.mxu0 %vm275_vm1, %v8440_v29  ;;  %v4128_v33 = vld [vmem:[%s7614_s10 + $0xb5] sm:$0xff] }
 0x107   : > { %7145 = vmatprep.mubr.msk.f32.mxu1 %vm275_vm1, %v4124_v31  ;;  %v5681_v5 = vmul.f32 %v6699_v23, %v5504_v39  ;;  %v8480_v31 = vld [vmem:[%s7614_s10 + $0x92] sm:$0xff] }
 0x108   : > { %v5559_v60 = vadd.f32 %v5558_v43, %v5502_v42  ;;  %v5679_v62 = vmul.f32 %v5502_v42, %v524_v41  ;;  %v5735_v1 = vadd.f32 %v5734_v40, %v5677_v30  ;;  %v6702_v4 = vpop.f32.mrb[16].mxu0  ;;  %v8483_v41 = vpop.permute.xlu1 %5421 }
 0x109   : > { %5220 = vst [vmem:[%s8290_s30 + $0x110] sm:$0xff] %v6702_v4  ;;  %v5508_v9 = vmul.f32 %v6702_v4, %v8359_v0  ;;  %v534_v13 = vpop.f32.mrb[17].mxu0  ;;  %6866 = vmatmul.mubr.msk.f32.gmra.mrb[50].mxu0 %vm275_vm1, %v8454_v44  ;;  %7146 = vmatmul.mubr.msk.f32.gmra.mrb[14].mxu1 %vm275_vm1, %v4125_v45  ;;  %8941 = vst [vmem:[#allocation16_spill] sm:$0xff] %v8483_v41  ;;  %v8490_v43 = vpop.permute.xlu0 %5416 }
 0x10a   : > { %v5736_v15 = vadd.f32 %v5735_v1, %v5679_v62  ;;  %5218 = vst [vmem:[%s8290_s30 + $0x100] sm:$0xff] %v534_v13  ;;  %v5506_v19 = vmul.f32 %v8366_v6, %v534_v13  ;;  %v5560_v20 = vadd.f32 %v5559_v60, %v5504_v39  ;;  %6868 = vmatprep.mubr.msk.f32.mxu0 %vm275_vm1, %v8460_v48  ;;  %8942 = vst [vmem:[#allocation17_spill] sm:$0xff] %v8490_v43  ;;  %v8498_v62 = vld [vmem:[%s7614_s10 + $0x9a] sm:$0xff] }
 0x10b   : > { %7148 = vmatprep.mubr.msk.f32.mxu1 %vm275_vm1, %v4126_v52  ;;  %v5685_v39 = vmul.f32 %v6702_v4, %v5508_v9  ;;  %v4129_v1 = vld [vmem:[%s7614_s10 + $0xbd] sm:$0xff] }
 0x10c   : > { %v5561_v35 = vadd.f32 %v5560_v20, %v5506_v19  ;;  %v5683_v22 = vmul.f32 %v5506_v19, %v534_v13  ;;  %v5737_v23 = vadd.f32 %v5736_v15, %v5681_v5  ;;  %v6705_v30 = vpop.f32.mrb[18].mxu0  ;;  %v8502_v4 = vld [vmem:[%s7614_s10 + $0xa2] sm:$0xff] }
 0x10d   : > { %5224 = vst [vmem:[%s8290_s30 + $0x130] sm:$0xff] %v6705_v30  ;;  %v5512_v40 = vmul.f32 %v6705_v30, %v8395_v24  ;;  %v544_v42 = vpop.f32.mrb[19].mxu0  ;;  %6869 = vmatmul.mubr.msk.f32.gmra.mrb[52].mxu0 %vm275_vm1, %v8476_v25  ;;  %7149 = vmatmul.mubr.msk.f32.gmra.mrb[16].mxu1 %vm275_vm1, %v4127_v10  ;;  %v4130_v5 = vld [vmem:[%s7614_s10 + $0xc5] sm:$0xff] }
 0x10e   : > { %v5738_v45 = vadd.f32 %v5737_v23, %v5683_v22  ;;  %5222 = vst [vmem:[%s8290_s30 + $0x120] sm:$0xff] %v544_v42  ;;  %v5510_v52 = vmul.f32 %v8401_v36, %v544_v42  ;;  %v5562_v60 = vadd.f32 %v5561_v35, %v5508_v9  ;;  %6871 = vmatprep.mubr.msk.f32.mxu0 %vm275_vm1, %v8480_v31 }
 0x10f   : > { %7151 = vmatprep.mubr.msk.f32.mxu1 %vm275_vm1, %v4128_v33  ;;  %v5689_v9 = vmul.f32 %v6705_v30, %v5512_v40  ;;  %v8516_v30 = vld [vmem:[%s7614_s10 + $0xaa] sm:$0xff] }
 0x110   : > { %v5563_v13 = vadd.f32 %v5562_v60, %v5510_v52  ;;  %v5687_v15 = vmul.f32 %v5510_v52, %v544_v42  ;;  %v5739_v19 = vadd.f32 %v5738_v45, %v5685_v39  ;;  %v6708_v20 = vpop.f32.mrb[20].mxu0  ;;  %v4131_v39 = vld [vmem:[%s7614_s10 + $0xcd] sm:$0xff]  ;;  %v8519_v42 = vpop.permute.xlu1 %5431  ;;  %v4132_v52 = vld [vmem:[%s7614_s10 + $0xd5] sm:$0xff] }
 0x111   : > { %5228 = vst [vmem:[%s8290_s30 + $0x150] sm:$0xff] %v6708_v20  ;;  %v5516_v10 = vmul.f32 %v6708_v20, %v8421_v8  ;;  %v554_v33 = vpop.f32.mrb[21].mxu0  ;;  %6872 = vmatmul.mubr.msk.f32.gmra.mrb[54].mxu0 %vm275_vm1, %v8498_v62  ;;  %7152 = vmatmul.mubr.msk.f32.gmra.mrb[18].mxu1 %vm275_vm1, %v4129_v1  ;;  %8943 = vst [vmem:[#allocation18_spill] sm:$0xff] %v8519_v42  ;;  %v8522_v45 = vld [vmem:[%s7614_s10 + $0xb2] sm:$0xff]  ;;  %v8525_v60 = vpop.permute.xlu0 %5426 }
 0x112   : > { %v5740_v35 = vadd.f32 %v5739_v19, %v5687_v15  ;;  %5226 = vst [vmem:[%s8290_s30 + $0x140] sm:$0xff] %v554_v33  ;;  %v5514_v22 = vmul.f32 %v8428_v17, %v554_v33  ;;  %v5564_v23 = vadd.f32 %v5563_v13, %v5512_v40  ;;  %6874 = vmatprep.mubr.msk.f32.mxu0 %vm275_vm1, %v8502_v4  ;;  %8944 = vst [vmem:[#allocation19_spill] sm:$0xff] %v8525_v60 }
 0x113   : > { %7154 = vmatprep.mubr.msk.f32.mxu1 %vm275_vm1, %v4130_v5  ;;  %v5693_v5 = vmul.f32 %v6708_v20, %v5516_v10  ;;  %v8538_v20 = vld [vmem:[%s7614_s10 + $0xba] sm:$0xff] }
 0x114   : > { %v5565_v1 = vadd.f32 %v5564_v23, %v5514_v22  ;;  %v5691_v15 = vmul.f32 %v5514_v22, %v554_v33  ;;  %v5741_v40 = vadd.f32 %v5740_v35, %v5689_v9  ;;  %v6711_v13 = vpop.f32.mrb[22].mxu0  ;;  %v4133_v9 = vld [vmem:[%s7614_s10 + $0xdd] sm:$0xff]  ;;  %v4134_v23 = vld [vmem:[%s7614_s10 + $0xe5] sm:$0xff] }
 0x115   : > { %5232 = vst [vmem:[%s8290_s30 + $0x170] sm:$0xff] %v6711_v13  ;;  %v5520_v19 = vmul.f32 %v6711_v13, %v8457_v47  ;;  %v564_v17 = vpop.f32.mrb[23].mxu0  ;;  %6875 = vmatmul.mubr.msk.f32.gmra.mrb[56].mxu0 %vm275_vm1, %v8516_v30  ;;  %7155 = vmatmul.mubr.msk.f32.gmra.mrb[20].mxu1 %vm275_vm1, %v4131_v39  ;;  %v8542_v35 = vld [vmem:[%s7614_s10 + $0xc2] sm:$0xff] }
 0x116   : > { %v5742_v8 = vadd.f32 %v5741_v40, %v5691_v15  ;;  %5230 = vst [vmem:[%s8290_s30 + $0x160] sm:$0xff] %v564_v17  ;;  %v5518_v33 = vmul.f32 %v8463_v58, %v564_v17  ;;  %v5566_v22 = vadd.f32 %v5565_v1, %v5516_v10  ;;  %6877 = vmatprep.mubr.msk.f32.mxu0 %vm275_vm1, %v8522_v45  ;;  %v8545_v58 = vpop.permute.xlu1 %5441 }
 0x117   : > { %7157 = vmatprep.mubr.msk.f32.mxu1 %vm275_vm1, %v4132_v52  ;;  %8945 = vst [vmem:[#allocation20_spill] sm:$0xff] %v8545_v58  ;;  %v5697_v10 = vmul.f32 %v6711_v13, %v5520_v19  ;;  %v8560_v13 = vld [vmem:[%s7614_s10 + $0xca] sm:$0xff] }
 0x118   : > { %v5567_v47 = vadd.f32 %v5566_v22, %v5518_v33  ;;  %v5695_v39 = vmul.f32 %v5518_v33, %v564_v17  ;;  %v5743_v15 = vadd.f32 %v5742_v8, %v5693_v5  ;;  %v6714_v40 = vpop.f32.mrb[24].mxu0  ;;  %v8552_v22 = vpop.permute.xlu0 %5436  ;;  %v4135_v33 = vld [vmem:[%s7614_s10 + $0xed] sm:$0xff] }
 0x119   : > { %5236 = vst [vmem:[%s8290_s30 + $0x190] sm:$0xff] %v6714_v40  ;;  %v5524_v52 = vmul.f32 %v6714_v40, %v8483_v41  ;;  %v574_v1 = vpop.f32.mrb[25].mxu0  ;;  %6878 = vmatmul.mubr.msk.f32.gmra.mrb[58].mxu0 %vm275_vm1, %v8538_v20  ;;  %7158 = vmatmul.mubr.msk.f32.gmra.mrb[22].mxu1 %vm275_vm1, %v4133_v9  ;;  %8946 = vst [vmem:[#allocation21_spill] sm:$0xff] %v8552_v22  ;;  %v8564_v41 = vld [vmem:[%s7614_s10 + $0xd2] sm:$0xff] }
 0x11a   : > { %v5744_v8 = vadd.f32 %v5743_v15, %v5695_v39  ;;  %5234 = vst [vmem:[%s8290_s30 + $0x180] sm:$0xff] %v574_v1  ;;  %v5522_v17 = vmul.f32 %v8490_v43, %v574_v1  ;;  %v5568_v5 = vadd.f32 %v5567_v47, %v5520_v19  ;;  %6880 = vmatprep.mubr.msk.f32.mxu0 %vm275_vm1, %v8542_v35  ;;  %v4136_v9 = vld [vmem:[%s7614_s10 + $0xf5] sm:$0xff] }
 0x11b   : > { %7160 = vmatprep.mubr.msk.f32.mxu1 %vm275_vm1, %v4134_v23  ;;  %v5701_v47 = vmul.f32 %v6714_v40, %v5524_v52  ;;  %v8578_v40 = vld [vmem:[%s7614_s10 + $0xda] sm:$0xff] }
 0x11c   : > { %v5569_v36 = vadd.f32 %v5568_v5, %v5522_v17  ;;  %v5699_v24 = vmul.f32 %v5522_v17, %v574_v1  ;;  %v5745_v39 = vadd.f32 %v5744_v8, %v5697_v10  ;;  %v6717_v15 = vpop.f32.mrb[26].mxu0  ;;  %v4137_v10 = vld [vmem:[%s7614_s10 + $0xfd] sm:$0xff]  ;;  %v8581_v8 = vpop.permute.xlu1 %5451 }
 0x11d   : > { %5240 = vst [vmem:[%s8290_s30 + $0x1b0] sm:$0xff] %v6717_v15  ;;  %v5528_v19 = vmul.f32 %v6717_v15, %v8519_v42  ;;  %v584_v23 = vpop.f32.mrb[27].mxu0  ;;  %6881 = vmatmul.mubr.msk.f32.gmra.mrb[60].mxu0 %vm275_vm1, %v8560_v13  ;;  %7161 = vmatmul.mubr.msk.f32.gmra.mrb[24].mxu1 %vm275_vm1, %v4135_v33  ;;  %8947 = vst [vmem:[#allocation22_spill] sm:$0xff] %v8581_v8  ;;  %v8584_v5 = vld [vmem:[%s7614_s10 + $0xe2] sm:$0xff] }
 0x11e   : > { %v5746_v43 = vadd.f32 %v5745_v39, %v5699_v24  ;;  %5238 = vst [vmem:[%s8290_s30 + $0x1a0] sm:$0xff] %v584_v23  ;;  %v5526_v1 = vmul.f32 %v8525_v60, %v584_v23  ;;  %v5570_v17 = vadd.f32 %v5569_v36, %v5524_v52  ;;  %6883 = vmatprep.mubr.msk.f32.mxu0 %vm275_vm1, %v8564_v41  ;;  %v4138_v33 = vld [vmem:[%s7614_s10 + $0x105] sm:$0xff]  ;;  %v8587_v24 = vpop.permute.xlu0 %5446 }
 0x11f   : > { %7163 = vmatprep.mubr.msk.f32.mxu1 %vm275_vm1, %v4136_v9  ;;  %8948 = vst [vmem:[#allocation23_spill] sm:$0xff] %v8587_v24  ;;  %v5705_v9 = vmul.f32 %v6717_v15, %v5528_v19  ;;  %v4139_v15 = vld [vmem:[%s7614_s10 + $0x10d] sm:$0xff] }
 0x120   : > { %v5571_v39 = vadd.f32 %v5570_v17, %v5526_v1  ;;  %v5703_v60 = vmul.f32 %v5526_v1, %v584_v23  ;;  %v5747_v36 = vadd.f32 %v5746_v43, %v5701_v47  ;;  %v6720_v52 = vpop.f32.mrb[28].mxu0  ;;  %v8600_v43 = vld [vmem:[%s7614_s10 + $0xea] sm:$0xff]  ;;  %v8604_v47 = vld [vmem:[%s7614_s10 + $0xf2] sm:$0xff] }
 0x121   : > { %5244 = vst [vmem:[%s8290_s30 + $0x1d0] sm:$0xff] %v6720_v52  ;;  %v5532_v42 = vmul.f32 %v6720_v52, %v8545_v58  ;;  %v594_v6 = vpop.f32.mrb[29].mxu0  ;;  %6884 = vmatmul.mubr.msk.f32.gmra.mrb[62].mxu0 %vm275_vm1, %v8578_v40  ;;  %7164 = vmatmul.mubr.msk.f32.gmra.mrb[26].mxu1 %vm275_vm1, %v4137_v10  ;;  %v4140_v17 = vld [vmem:[%s7614_s10 + $0x115] sm:$0xff] }
 0x122   : > { %v5748_v0 = vadd.f32 %v5747_v36, %v5703_v60  ;;  %5242 = vst [vmem:[%s8290_s30 + $0x1c0] sm:$0xff] %v594_v6  ;;  %v5530_v23 = vmul.f32 %v8552_v22, %v594_v6  ;;  %v5572_v1 = vadd.f32 %v5571_v39, %v5528_v19  ;;  %6886 = vmatprep.mubr.msk.f32.mxu0 %vm275_vm1, %v8584_v5  ;;  %v8607_v22 = vpop.permute.xlu1 %5461 }
 0x123   : > { %7166 = vmatprep.mubr.msk.f32.mxu1 %vm275_vm1, %v4138_v33  ;;  %8949 = vst [vmem:[#allocation24_spill] sm:$0xff] %v8607_v22  ;;  %v5709_v19 = vmul.f32 %v6720_v52, %v5532_v42  ;;  %v8622_v52 = vld [vmem:[%s7614_s10 + $0xfa] sm:$0xff] }
 0x124   : > { %v5573_v58 = vadd.f32 %v5572_v1, %v5530_v23  ;;  %v5707_v10 = vmul.f32 %v5530_v23, %v594_v6  ;;  %v5749_v60 = vadd.f32 %v5748_v0, %v5705_v9  ;;  %v6723_v36 = vpop.f32.mrb[30].mxu0  ;;  %v8614_v1 = vpop.permute.xlu0 %5456  ;;  %v4141_v23 = vld [vmem:[%s7614_s10 + $0x11d] sm:$0xff] }
 0x125   : > { %5248 = vst [vmem:[%s8290_s30 + $0x1f0] sm:$0xff] %v6723_v36  ;;  %v5536_v33 = vmul.f32 %v6723_v36, %v8581_v8  ;;  %v604_v39 = vpop.f32.mrb[31].mxu0  ;;  %6887 = vmatmul.mubr.msk.f32.gmra.mrb[64].mxu0 %vm275_vm1, %v8600_v43  ;;  %7167 = vmatmul.mubr.msk.f32.gmra.mrb[28].mxu1 %vm275_vm1, %v4139_v15  ;;  %8950 = vst [vmem:[#allocation25_spill] sm:$0xff] %v8614_v1  ;;  %v8626_v8 = vld [vmem:[%s7614_s10 + $0x102] sm:$0xff] }
 0x126   : > { %v5750_v0 = vadd.f32 %v5749_v60, %v5707_v10  ;;  %5246 = vst [vmem:[%s8290_s30 + $0x1e0] sm:$0xff] %v604_v39  ;;  %v5534_v6 = vmul.f32 %v8587_v24, %v604_v39  ;;  %v5574_v9 = vadd.f32 %v5573_v58, %v5532_v42  ;;  %6889 = vmatprep.mubr.msk.f32.mxu0 %vm275_vm1, %v8604_v47  ;;  %v4142_v15 = vld [vmem:[%s7614_s10 + $0x125] sm:$0xff] }
 0x127   : > { %7169 = vmatprep.mubr.msk.f32.mxu1 %vm275_vm1, %v4140_v17  ;;  %v5713_v24 = vmul.f32 %v6723_v36, %v5536_v33  ;;  %v8642_v36 = vld [vmem:[%s7614_s10 + $0x10a] sm:$0xff] }
 0x128   : > { %v5575_v38 = vadd.f32 %v5574_v9, %v5534_v6  ;;  %v5711_v32 = vmul.f32 %v5534_v6, %v604_v39  ;;  %v5751_v10 = vadd.f32 %v5750_v0, %v5709_v19  ;;  %v6726_v60 = vpop.f32.mrb[32].mxu0  ;;  %v8636_v0 = vpop.permute.xlu1 %5471  ;;  %v4143_v6 = vld [vmem:[%s7614_s10 + $0x12d] sm:$0xff] }
 0x129   : > { %5252 = vst [vmem:[%s8290_s30 + $0x210] sm:$0xff] %v6726_v60  ;;  %v5540_v58 = vmul.f32 %v6726_v60, %v8607_v22  ;;  %v614_v42 = vpop.f32.mrb[33].mxu0  ;;  %6890 = vmatmul.mubr.msk.f32.gmra.mrb[66].mxu0 %vm275_vm1, %v8622_v52  ;;  %7170 = vmatmul.mubr.msk.f32.gmra.mrb[30].mxu1 %vm275_vm1, %v4141_v23  ;;  %v8645_v9 = vpop.permute.xlu0 %5466  ;;  %v8648_v23 = vld [vmem:[%s7614_s10 + $0x112] sm:$0xff] }
 0x12a   : > { %v5752_v17 = vadd.f32 %v5751_v10, %v5711_v32  ;;  %5250 = vst [vmem:[%s8290_s30 + $0x200] sm:$0xff] %v614_v42  ;;  %v5538_v39 = vmul.f32 %v8614_v1, %v614_v42  ;;  %v5576_v19 = vadd.f32 %v5575_v38, %v5536_v33  ;;  %6892 = vmatprep.mubr.msk.f32.mxu0 %vm275_vm1, %v8626_v8  ;;  %v4144_v32 = vld [vmem:[%s7614_s10 + $0x135] sm:$0xff] }
 0x12b   : > { %7172 = vmatprep.mubr.msk.f32.mxu1 %vm275_vm1, %v4142_v15  ;;  %v5717_v22 = vmul.f32 %v6726_v60, %v5540_v58  ;;  %v4145_v60 = vld [vmem:[%s7614_s10 + $0x13d] sm:$0xff] }
 0x12c   : > { %v5577_v10 = vadd.f32 %v5576_v19, %v5538_v39  ;;  %v5715_v1 = vmul.f32 %v5538_v39, %v614_v42  ;;  %v5753_v38 = vadd.f32 %v5752_v17, %v5713_v24  ;;  %v6729_v33 = vpop.f32.mrb[34].mxu0  ;;  %v8662_v24 = vld [vmem:[%s7614_s10 + $0x11a] sm:$0xff]  ;;  %v4612_v42 = vld [vmem:[%s7614_s10 + $0x26] sm:$0xff] }
 0x12d   : > { %5256 = vst [vmem:[%s8290_s30 + $0x230] sm:$0xff] %v6729_v33  ;;  %v5544_v15 = vmul.f32 %v6729_v33, %v8636_v0  ;;  %v624_v21 = vpop.f32.mrb[35].mxu0  ;;  %6893 = vmatmul.mubr.msk.f32.gmra.mrb[68].mxu0 %vm275_vm1, %v8642_v36  ;;  %7173 = vmatmul.mubr.msk.f32.gmra.mrb[32].mxu1 %vm275_vm1, %v4143_v6 }
 0x12e   : > { %v5754_v18 = vadd.f32 %v5753_v38, %v5715_v1  ;;  %5254 = vst [vmem:[%s8290_s30 + $0x220] sm:$0xff] %v624_v21  ;;  %v5542_v19 = vmul.f32 %v8645_v9, %v624_v21  ;;  %v5578_v12 = vadd.f32 %v5577_v10, %v5540_v58  ;;  %6895 = vmatprep.mubr.msk.f32.mxu0 %vm275_vm1, %v8648_v23  ;;  %v4646_v38 = vld [vmem:[%s7614_s10 + $0x136] sm:$0xff] }
 0x12f   : > { %7175 = vmatprep.mubr.msk.f32.mxu1 %vm275_vm1, %v4144_v32  ;;  %v5721_v1 = vmul.f32 %v6729_v33, %v5544_v15  ;;  %v4618_v32 = vld [vmem:[%s7614_s10 + $0x56] sm:$0xff] }
 0x130   : > { %v5579_v17 = vadd.f32 %v5578_v12, %v5542_v19  ;;  %v5719_v39 = vmul.f32 %v5542_v19, %v624_v21  ;;  %v5755_v6 = vadd.f32 %v5754_v18, %v5717_v22  ;;  %v4613_v12 = vld [vmem:[%s7614_s10 + $0x2e] sm:$0xff]  ;;  %v4614_v21 = vld [vmem:[%s7614_s10 + $0x36] sm:$0xff]  ;;  %v4616_v22 = vld [vmem:[%s7614_s10 + $0x46] sm:$0xff] }
 0x131   : > { %6896 = vmatmul.mubr.msk.f32.gmra.mrb[70].mxu0 %vm275_vm1, %v8662_v24  ;;  %7176 = vmatmul.mubr.msk.f32.gmra.mrb[34].mxu1 %vm275_vm1, %v4145_v60 }
 0x132   : > { %v8669_v58 = vadd.f32 %v5579_v17, %v5544_v15  ;;  %v5756_v10 = vadd.f32 %v5755_v6, %v5719_v39  ;;  %6900 = vmatprep.mubr.msk.f32.mxu0 %vm275_vm1, %v8313_v37  ;;  %7180 = vmatprep.mubr.msk.f32.mxu1 %vm275_vm1, %v4612_v42  ;;  %v4615_v37 = vld [vmem:[%s7614_s10 + $0x3e] sm:$0xff] }
 0x134   : > { %v8676_v18 = vadd.f32 %v5756_v10, %v5721_v1 }
 0x135   : > { %6901 = vmatmul.mubr.msk.f32.vlgmr.msra.gmra.mrb[36].mxu0 %vm275_vm1, %v8327_v11  ;;  %7181 = vmatmul.mubr.msk.f32.vlgmr.msra.gmra.mrb[0].mxu1 %vm275_vm1, %v4613_v12  ;;  %v4617_v11 = vld [vmem:[%s7614_s10 + $0x4e] sm:$0xff] }
 0x136   : > { %6903 = vmatprep.mubr.msk.f32.mxu0 %vm275_vm1, %v8336_v34  ;;  %7183 = vmatprep.mubr.msk.f32.mxu1 %vm275_vm1, %v4614_v21  ;;  %v4619_v34 = vld [vmem:[%s7614_s10 + $0x5e] sm:$0xff] }
 0x139   : > { %6904 = vmatmul.mubr.msk.f32.gmra.mrb[38].mxu0 %vm275_vm1, %v8352_v50  ;;  %7184 = vmatmul.mubr.msk.f32.gmra.mrb[2].mxu1 %vm275_vm1, %v4615_v37  ;;  %v4620_v50 = vld [vmem:[%s7614_s10 + $0x66] sm:$0xff] }
 0x13a   : > { %6906 = vmatprep.mubr.msk.f32.mxu0 %vm275_vm1, %v8356_v54  ;;  %7186 = vmatprep.mubr.msk.f32.mxu1 %vm275_vm1, %v4616_v22  ;;  %v4621_v54 = vld [vmem:[%s7614_s10 + $0x6e] sm:$0xff] }
 0x13d   : > { %6907 = vmatmul.mubr.msk.f32.gmra.mrb[40].mxu0 %vm275_vm1, %v8374_v14  ;;  %7187 = vmatmul.mubr.msk.f32.gmra.mrb[4].mxu1 %vm275_vm1, %v4617_v11  ;;  %v4622_v14 = vld [vmem:[%s7614_s10 + $0x76] sm:$0xff] }
 0x13e   : > { %6909 = vmatprep.mubr.msk.f32.mxu0 %vm275_vm1, %v8378_v16  ;;  %7189 = vmatprep.mubr.msk.f32.mxu1 %vm275_vm1, %v4618_v32  ;;  %v4623_v16 = vld [vmem:[%s7614_s10 + $0x7e] sm:$0xff] }
 0x141   : > { %6910 = vmatmul.mubr.msk.f32.gmra.mrb[42].mxu0 %vm275_vm1, %v8392_v26  ;;  %7190 = vmatmul.mubr.msk.f32.gmra.mrb[6].mxu1 %vm275_vm1, %v4619_v34  ;;  %v4624_v26 = vld [vmem:[%s7614_s10 + $0x86] sm:$0xff] }
 0x142   : > { %6912 = vmatprep.mubr.msk.f32.mxu0 %vm275_vm1, %v8398_v28  ;;  %7192 = vmatprep.mubr.msk.f32.mxu1 %vm275_vm1, %v4620_v50  ;;  %v4625_v28 = vld [vmem:[%s7614_s10 + $0x8e] sm:$0xff] }
 0x145   : > { %6913 = vmatmul.mubr.msk.f32.gmra.mrb[44].mxu0 %vm275_vm1, %v8414_v55  ;;  %7193 = vmatmul.mubr.msk.f32.gmra.mrb[8].mxu1 %vm275_vm1, %v4621_v54  ;;  %v4626_v55 = vld [vmem:[%s7614_s10 + $0x96] sm:$0xff] }
 0x146   : > { %6915 = vmatprep.mubr.msk.f32.mxu0 %vm275_vm1, %v8418_v59  ;;  %7195 = vmatprep.mubr.msk.f32.mxu1 %vm275_vm1, %v4622_v14  ;;  %v4627_v59 = vld [vmem:[%s7614_s10 + $0x9e] sm:$0xff] }
 0x149   : > { %6916 = vmatmul.mubr.msk.f32.gmra.mrb[46].mxu0 %vm275_vm1, %v8436_v27  ;;  %7196 = vmatmul.mubr.msk.f32.gmra.mrb[10].mxu1 %vm275_vm1, %v4623_v16  ;;  %v4628_v27 = vld [vmem:[%s7614_s10 + $0xa6] sm:$0xff] }
 0x14a   : > { %6918 = vmatprep.mubr.msk.f32.mxu0 %vm275_vm1, %v8440_v29  ;;  %7198 = vmatprep.mubr.msk.f32.mxu1 %vm275_vm1, %v4624_v26  ;;  %v4629_v29 = vld [vmem:[%s7614_s10 + $0xae] sm:$0xff] }
 0x14d   : > { %6919 = vmatmul.mubr.msk.f32.gmra.mrb[48].mxu0 %vm275_vm1, %v8454_v44  ;;  %7199 = vmatmul.mubr.msk.f32.gmra.mrb[12].mxu1 %vm275_vm1, %v4625_v28  ;;  %v4630_v44 = vld [vmem:[%s7614_s10 + $0xb6] sm:$0xff] }
 0x14e   : > { %6921 = vmatprep.mubr.msk.f32.mxu0 %vm275_vm1, %v8460_v48  ;;  %7201 = vmatprep.mubr.msk.f32.mxu1 %vm275_vm1, %v4626_v55  ;;  %v4631_v48 = vld [vmem:[%s7614_s10 + $0xbe] sm:$0xff] }
 0x151   : > { %6922 = vmatmul.mubr.msk.f32.gmra.mrb[50].mxu0 %vm275_vm1, %v8476_v25  ;;  %7202 = vmatmul.mubr.msk.f32.gmra.mrb[14].mxu1 %vm275_vm1, %v4627_v59  ;;  %v4632_v25 = vld [vmem:[%s7614_s10 + $0xc6] sm:$0xff] }
 0x152   : > { %6924 = vmatprep.mubr.msk.f32.mxu0 %vm275_vm1, %v8480_v31  ;;  %7204 = vmatprep.mubr.msk.f32.mxu1 %vm275_vm1, %v4628_v27  ;;  %v4633_v31 = vld [vmem:[%s7614_s10 + $0xce] sm:$0xff] }
 0x155   : > { %6925 = vmatmul.mubr.msk.f32.gmra.mrb[52].mxu0 %vm275_vm1, %v8498_v62  ;;  %7205 = vmatmul.mubr.msk.f32.gmra.mrb[16].mxu1 %vm275_vm1, %v4629_v29  ;;  %v4634_v62 = vld [vmem:[%s7614_s10 + $0xd6] sm:$0xff] }
 0x156   : > { %6927 = vmatprep.mubr.msk.f32.mxu0 %vm275_vm1, %v8502_v4  ;;  %7207 = vmatprep.mubr.msk.f32.mxu1 %vm275_vm1, %v4630_v44  ;;  %v4635_v4 = vld [vmem:[%s7614_s10 + $0xde] sm:$0xff] }
 0x159   : > { %6928 = vmatmul.mubr.msk.f32.gmra.mrb[54].mxu0 %vm275_vm1, %v8516_v30  ;;  %7208 = vmatmul.mubr.msk.f32.gmra.mrb[18].mxu1 %vm275_vm1, %v4631_v48  ;;  %v4636_v30 = vld [vmem:[%s7614_s10 + $0xe6] sm:$0xff] }
 0x15a   : > { %6930 = vmatprep.mubr.msk.f32.mxu0 %vm275_vm1, %v8522_v45  ;;  %7210 = vmatprep.mubr.msk.f32.mxu1 %vm275_vm1, %v4632_v25  ;;  %v4637_v45 = vld [vmem:[%s7614_s10 + $0xee] sm:$0xff] }
 0x15d   : > { %6931 = vmatmul.mubr.msk.f32.gmra.mrb[56].mxu0 %vm275_vm1, %v8538_v20  ;;  %7211 = vmatmul.mubr.msk.f32.gmra.mrb[20].mxu1 %vm275_vm1, %v4633_v31  ;;  %v4638_v20 = vld [vmem:[%s7614_s10 + $0xf6] sm:$0xff] }
 0x15e   : > { %6933 = vmatprep.mubr.msk.f32.mxu0 %vm275_vm1, %v8542_v35  ;;  %7213 = vmatprep.mubr.msk.f32.mxu1 %vm275_vm1, %v4634_v62  ;;  %v4639_v35 = vld [vmem:[%s7614_s10 + $0xfe] sm:$0xff] }
 0x161   : > { %6934 = vmatmul.mubr.msk.f32.gmra.mrb[58].mxu0 %vm275_vm1, %v8560_v13  ;;  %7214 = vmatmul.mubr.msk.f32.gmra.mrb[22].mxu1 %vm275_vm1, %v4635_v4  ;;  %v4640_v13 = vld [vmem:[%s7614_s10 + $0x106] sm:$0xff] }
 0x162   : > { %6936 = vmatprep.mubr.msk.f32.mxu0 %vm275_vm1, %v8564_v41  ;;  %7216 = vmatprep.mubr.msk.f32.mxu1 %vm275_vm1, %v4636_v30  ;;  %v4641_v41 = vld [vmem:[%s7614_s10 + $0x10e] sm:$0xff] }
 0x165   : > { %6937 = vmatmul.mubr.msk.f32.gmra.mrb[60].mxu0 %vm275_vm1, %v8578_v40  ;;  %7217 = vmatmul.mubr.msk.f32.gmra.mrb[24].mxu1 %vm275_vm1, %v4637_v45  ;;  %v4642_v40 = vld [vmem:[%s7614_s10 + $0x116] sm:$0xff] }
 0x166   : > { %6939 = vmatprep.mubr.msk.f32.mxu0 %vm275_vm1, %v8584_v5  ;;  %7219 = vmatprep.mubr.msk.f32.mxu1 %vm275_vm1, %v4638_v20  ;;  %v4643_v5 = vld [vmem:[%s7614_s10 + $0x11e] sm:$0xff] }
 0x169   : > { %6940 = vmatmul.mubr.msk.f32.gmra.mrb[62].mxu0 %vm275_vm1, %v8600_v43  ;;  %7220 = vmatmul.mubr.msk.f32.gmra.mrb[26].mxu1 %vm275_vm1, %v4639_v35  ;;  %v4644_v43 = vld [vmem:[%s7614_s10 + $0x126] sm:$0xff] }
 0x16a   : > { %6942 = vmatprep.mubr.msk.f32.mxu0 %vm275_vm1, %v8604_v47  ;;  %7222 = vmatprep.mubr.msk.f32.mxu1 %vm275_vm1, %v4640_v13  ;;  %v4645_v47 = vld [vmem:[%s7614_s10 + $0x12e] sm:$0xff] }
 0x16d   : > { %6943 = vmatmul.mubr.msk.f32.gmra.mrb[64].mxu0 %vm275_vm1, %v8622_v52  ;;  %7223 = vmatmul.mubr.msk.f32.gmra.mrb[28].mxu1 %vm275_vm1, %v4641_v41  ;;  %v2136_v52 = vld [vmem:[%s7614_s10 + $0x122] sm:$0xff] }
 0x16e   : > { %6945 = vmatprep.mubr.msk.f32.mxu0 %vm275_vm1, %v8626_v8  ;;  %7225 = vmatprep.mubr.msk.f32.mxu1 %vm275_vm1, %v4642_v40  ;;  %v2137_v8 = vld [vmem:[%s7614_s10 + $0x12a] sm:$0xff] }
 0x171   : > { %6946 = vmatmul.mubr.msk.f32.gmra.mrb[66].mxu0 %vm275_vm1, %v8642_v36  ;;  %7226 = vmatmul.mubr.msk.f32.gmra.mrb[30].mxu1 %vm275_vm1, %v4643_v5  ;;  %v4647_v36 = vld [vmem:[%s7614_s10 + $0x13e] sm:$0xff]  ;;  %s6303_s10 = sshll.u32 %s8975_s19, 2 }
 0x172   : > { %6948 = vmatprep.mubr.msk.f32.mxu0 %vm275_vm1, %v8648_v23  ;;  %7228 = vmatprep.mubr.msk.f32.mxu1 %vm275_vm1, %v4644_v43  ;;  %s237_s8 = scalar_lea.vmem %s8904_s5, %s6303_s10 }
 0x175   : > { %6949 = vmatmul.mubr.msk.f32.gmra.mrb[68].mxu0 %vm275_vm1, %v8662_v24  ;;  %7229 = vmatmul.mubr.msk.f32.gmra.mrb[32].mxu1 %vm275_vm1, %v4645_v47 }
 0x176   : > { %6951 = vmatprep.mubr.msk.f32.mxu0 %vm275_vm1, %v2136_v52  ;;  %7231 = vmatprep.mubr.msk.f32.mxu1 %vm275_vm1, %v4646_v38 }
 0x179   : > { %6952 = vmatmul.mubr.msk.f32.gmra.mrb[70].mxu0 %vm275_vm1, %v2137_v8  ;;  %7232 = vmatmul.mubr.msk.f32.gmra.mrb[34].mxu1 %vm275_vm1, %v4647_v36 }
 0x208   : > { %v6902_v23 = vpop.f32.mrb[36].mxu0  ;;  %v7182_v33 = vpop.f32.mrb[0].mxu1 }
 0x209   : > { %v7234_v15 = vadd.f32 %v7182_v33, %v6902_v23  ;;  %v2317_v19 = vpop.f32.mrb[37].mxu0  ;;  %v4827_v60 = vpop.f32.mrb[1].mxu1 }
 0x20a   : > { %v7235_v24 = vadd.f32 %v4827_v60, %v2317_v19 }
 0x20b   : > { %5189 = vst [vmem:[%s8290_s30 + $0x18] sm:$0xff] %v7234_v15  ;;  %v5477_v42 = vmul.f32 %v7234_v15, %v8219_v53 }
 0x20c   : > { %5187 = vst [vmem:[%s8290_s30 + $0x8] sm:$0xff] %v7235_v24  ;;  %v5475_v17 = vmul.f32 %v7235_v24, %v8204_v49  ;;  %v6905_v39 = vpop.f32.mrb[38].mxu0  ;;  %v7185_v6 = vpop.f32.mrb[2].mxu1 }
 0x20d   : > { %v5654_v1 = vmul.f32 %v7234_v15, %v5477_v42  ;;  %v7236_v10 = vadd.f32 %v7185_v6, %v6905_v39  ;;  %v2327_v12 = vpop.f32.mrb[39].mxu0  ;;  %v4837_v21 = vpop.f32.mrb[3].mxu1 }
 0x20e   : > { %v5587_v37 = vadd.f32 %v5477_v42, %v5475_v17  ;;  %v5652_v22 = vmul.f32 %v7235_v24, %v5475_v17  ;;  %v7237_v11 = vadd.f32 %v4837_v21, %v2327_v12 }
 0x20f   : > { %5193 = vst [vmem:[%s8290_s30 + $0x38] sm:$0xff] %v7236_v10  ;;  %v5481_v34 = vmul.f32 %v7236_v10, %v8213_v51 }
 0x210   : > { %v5764_v32 = vadd.f32 %v5654_v1, %v5652_v22  ;;  %5191 = vst [vmem:[%s8290_s30 + $0x28] sm:$0xff] %v7237_v11  ;;  %v5479_v53 = vmul.f32 %v7237_v11, %v8194_v46  ;;  %v6908_v50 = vpop.f32.mrb[40].mxu0  ;;  %v7188_v49 = vpop.f32.mrb[4].mxu1  ;;  %v8951_v22 = vld [vmem:[#allocation3_spill] sm:$0xff] }
 0x211   : > { %v7238_v54 = vadd.f32 %v7188_v49, %v6908_v50  ;;  %v2337_v14 = vpop.f32.mrb[41].mxu0  ;;  %v4847_v16 = vpop.f32.mrb[5].mxu1  ;;  %v5658_v27 = vmul.f32 %v7236_v10, %v5481_v34 }
 0x212   : > { %v5588_v26 = vadd.f32 %v5587_v37, %v5479_v53  ;;  %v5656_v28 = vmul.f32 %v7237_v11, %v5479_v53  ;;  %v7239_v55 = vadd.f32 %v4847_v16, %v2337_v14 }
 0x213   : > { %5197 = vst [vmem:[%s8290_s30 + $0x58] sm:$0xff] %v7238_v54  ;;  %v5485_v59 = vmul.f32 %v7238_v54, %v8226_v56 }
 0x214   : > { %v5765_v29 = vadd.f32 %v5764_v32, %v5656_v28  ;;  %5195 = vst [vmem:[%s8290_s30 + $0x48] sm:$0xff] %v7239_v55  ;;  %v5483_v51 = vmul.f32 %v7239_v55, %v8231_v57  ;;  %v5589_v44 = vadd.f32 %v5588_v26, %v5481_v34  ;;  %v6911_v46 = vpop.f32.mrb[42].mxu0  ;;  %v7191_v48 = vpop.f32.mrb[6].mxu1  ;;  %v8952_v28 = vld [vmem:[#allocation4_spill] sm:$0xff] }
 0x215   : > { %v7240_v25 = vadd.f32 %v7191_v48, %v6911_v46  ;;  %v2347_v31 = vpop.f32.mrb[43].mxu0  ;;  %v4857_v62 = vpop.f32.mrb[7].mxu1  ;;  %v5662_v35 = vmul.f32 %v7238_v54, %v5485_v59 }
 0x216   : > { %v5590_v4 = vadd.f32 %v5589_v44, %v5483_v51  ;;  %v5660_v30 = vmul.f32 %v7239_v55, %v5483_v51  ;;  %v5766_v45 = vadd.f32 %v5765_v29, %v5658_v27  ;;  %v7241_v20 = vadd.f32 %v4857_v62, %v2347_v31  ;;  %v8953_v27 = vld [vmem:[#allocation5_spill] sm:$0xff] }
 0x217   : > { %5201 = vst [vmem:[%s8290_s30 + $0x78] sm:$0xff] %v7240_v25  ;;  %v5489_v13 = vmul.f32 %v7240_v25, %v8245_v61 }
 0x218   : > { %v5767_v56 = vadd.f32 %v5766_v45, %v5660_v30  ;;  %5199 = vst [vmem:[%s8290_s30 + $0x68] sm:$0xff] %v7241_v20  ;;  %v5487_v57 = vmul.f32 %v7241_v20, %v8248_v63  ;;  %v5591_v41 = vadd.f32 %v5590_v4, %v5485_v59  ;;  %v6914_v40 = vpop.f32.mrb[44].mxu0  ;;  %v7194_v5 = vpop.f32.mrb[8].mxu1 }
 0x219   : > { %v7242_v43 = vadd.f32 %v7194_v5, %v6914_v40  ;;  %v2357_v47 = vpop.f32.mrb[45].mxu0  ;;  %v4867_v52 = vpop.f32.mrb[9].mxu1  ;;  %v5666_v15 = vmul.f32 %v7240_v25, %v5489_v13 }
 0x21a   : > { %v5592_v38 = vadd.f32 %v5591_v41, %v5487_v57  ;;  %v5664_v8 = vmul.f32 %v7241_v20, %v5487_v57  ;;  %v5768_v36 = vadd.f32 %v5767_v56, %v5662_v35  ;;  %v7243_v23 = vadd.f32 %v4867_v52, %v2357_v47  ;;  %v8954_v56 = vld [vmem:[#allocation6_spill] sm:$0xff]  ;;  %v8955_v57 = vld [vmem:[#allocation7_spill] sm:$0xff] }
 0x21b   : > { %5205 = vst [vmem:[%s8290_s30 + $0x98] sm:$0xff] %v7242_v43  ;;  %v5493_v33 = vmul.f32 %v7242_v43, %v8258_v2 }
 0x21c   : > { %v5769_v61 = vadd.f32 %v5768_v36, %v5664_v8  ;;  %5203 = vst [vmem:[%s8290_s30 + $0x88] sm:$0xff] %v7243_v23  ;;  %v5491_v63 = vmul.f32 %v7243_v23, %v8263_v3  ;;  %v5593_v19 = vadd.f32 %v5592_v38, %v5489_v13  ;;  %v6917_v60 = vpop.f32.mrb[46].mxu0  ;;  %v7197_v24 = vpop.f32.mrb[10].mxu1 }
 0x21d   : > { %v7244_v42 = vadd.f32 %v7197_v24, %v6917_v60  ;;  %v2367_v17 = vpop.f32.mrb[47].mxu0  ;;  %v4877_v39 = vpop.f32.mrb[11].mxu1  ;;  %v5670_v21 = vmul.f32 %v7242_v43, %v5493_v33  ;;  %v8957_v60 = vld [vmem:[#allocation9_spill] sm:$0xff] }
 0x21e   : > { %v5594_v6 = vadd.f32 %v5593_v19, %v5491_v63  ;;  %v5668_v1 = vmul.f32 %v7243_v23, %v5491_v63  ;;  %v5770_v10 = vadd.f32 %v5769_v61, %v5666_v15  ;;  %v7245_v12 = vadd.f32 %v4877_v39, %v2367_v17  ;;  %v8956_v15 = vld [vmem:[#allocation8_spill] sm:$0xff] }
 0x21f   : > { %5209 = vst [vmem:[%s8290_s30 + $0xb8] sm:$0xff] %v7244_v42  ;;  %v5497_v37 = vmul.f32 %v7244_v42, %v8278_v7 }
 0x220   : > { %v5771_v2 = vadd.f32 %v5770_v10, %v5668_v1  ;;  %5207 = vst [vmem:[%s8290_s30 + $0xa8] sm:$0xff] %v7245_v12  ;;  %v5495_v3 = vmul.f32 %v7245_v12, %v8951_v22  ;;  %v5595_v11 = vadd.f32 %v5594_v6, %v5493_v33  ;;  %v6920_v32 = vpop.f32.mrb[48].mxu0  ;;  %v7200_v34 = vpop.f32.mrb[12].mxu1 }
 0x221   : > { %v7246_v53 = vadd.f32 %v7200_v34, %v6920_v32  ;;  %v2377_v50 = vpop.f32.mrb[49].mxu0  ;;  %v4887_v49 = vpop.f32.mrb[13].mxu1  ;;  %v5674_v59 = vmul.f32 %v7244_v42, %v5497_v37  ;;  %v8959_v34 = vld [vmem:[#allocation11_spill] sm:$0xff] }
 0x222   : > { %v5596_v54 = vadd.f32 %v5595_v11, %v5495_v3  ;;  %v5672_v14 = vmul.f32 %v7245_v12, %v5495_v3  ;;  %v5772_v16 = vadd.f32 %v5771_v2, %v5670_v21  ;;  %v7247_v26 = vadd.f32 %v4887_v49, %v2377_v50  ;;  %v8958_v11 = vld [vmem:[#allocation10_spill] sm:$0xff] }
 0x223   : > { %5213 = vst [vmem:[%s8290_s30 + $0xd8] sm:$0xff] %v7246_v53  ;;  %v5501_v55 = vmul.f32 %v7246_v53, %v8952_v28 }
 0x224   : > { %v5773_v7 = vadd.f32 %v5772_v16, %v5672_v14  ;;  %5211 = vst [vmem:[%s8290_s30 + $0xc8] sm:$0xff] %v7247_v26  ;;  %v5499_v29 = vmul.f32 %v7247_v26, %v8953_v27  ;;  %v5597_v51 = vadd.f32 %v5596_v54, %v5497_v37  ;;  %v6923_v44 = vpop.f32.mrb[50].mxu0  ;;  %v7203_v46 = vpop.f32.mrb[14].mxu1  ;;  %v8960_v27 = vld [vmem:[#allocation12_spill] sm:$0xff] }
 0x225   : > { %v7248_v48 = vadd.f32 %v7203_v46, %v6923_v44  ;;  %v2387_v25 = vpop.f32.mrb[51].mxu0  ;;  %v4897_v31 = vpop.f32.mrb[15].mxu1  ;;  %v5678_v20 = vmul.f32 %v7246_v53, %v5501_v55  ;;  %v8961_v46 = vld [vmem:[#allocation13_spill] sm:$0xff] }
 0x226   : > { %v5598_v62 = vadd.f32 %v5597_v51, %v5499_v29  ;;  %v5676_v4 = vmul.f32 %v7247_v26, %v5499_v29  ;;  %v5774_v30 = vadd.f32 %v5773_v7, %v5674_v59  ;;  %v7249_v45 = vadd.f32 %v4897_v31, %v2387_v25 }
 0x227   : > { %5217 = vst [vmem:[%s8290_s30 + $0xf8] sm:$0xff] %v7248_v48  ;;  %v5505_v13 = vmul.f32 %v7248_v48, %v8954_v56 }
 0x228   : > { %v5775_v35 = vadd.f32 %v5774_v30, %v5676_v4  ;;  %5215 = vst [vmem:[%s8290_s30 + $0xe8] sm:$0xff] %v7249_v45  ;;  %v5503_v41 = vmul.f32 %v7249_v45, %v8955_v57  ;;  %v5599_v40 = vadd.f32 %v5598_v62, %v5501_v55  ;;  %v6926_v5 = vpop.f32.mrb[52].mxu0  ;;  %v7206_v43 = vpop.f32.mrb[16].mxu1 }
 0x229   : > { %v7250_v47 = vadd.f32 %v7206_v43, %v6926_v5  ;;  %v2397_v52 = vpop.f32.mrb[53].mxu0  ;;  %v4907_v38 = vpop.f32.mrb[17].mxu1  ;;  %v5682_v63 = vmul.f32 %v7248_v48, %v5505_v13  ;;  %v8963_v43 = vld [vmem:[#allocation15_spill] sm:$0xff] }
 0x22a   : > { %v5600_v8 = vadd.f32 %v5599_v40, %v5503_v41  ;;  %v5680_v36 = vmul.f32 %v7249_v45, %v5503_v41  ;;  %v5776_v23 = vadd.f32 %v5775_v35, %v5678_v20  ;;  %v7251_v33 = vadd.f32 %v4907_v38, %v2397_v52  ;;  %v8962_v40 = vld [vmem:[#allocation14_spill] sm:$0xff] }
 0x22b   : > { %5221 = vst [vmem:[%s8290_s30 + $0x118] sm:$0xff] %v7250_v47  ;;  %v5509_v61 = vmul.f32 %v7250_v47, %v8956_v15 }
 0x22c   : > { %v5777_v19 = vadd.f32 %v5776_v23, %v5680_v36  ;;  %5219 = vst [vmem:[%s8290_s30 + $0x108] sm:$0xff] %v7251_v33  ;;  %v5507_v24 = vmul.f32 %v7251_v33, %v8957_v60  ;;  %v5601_v42 = vadd.f32 %v5600_v8, %v5505_v13  ;;  %v6929_v17 = vpop.f32.mrb[54].mxu0  ;;  %v7209_v39 = vpop.f32.mrb[18].mxu1  ;;  %v8964_v60 = vld [vmem:[#allocation16_spill] sm:$0xff] }
 0x22d   : > { %v7252_v6 = vadd.f32 %v7209_v39, %v6929_v17  ;;  %v2407_v1 = vpop.f32.mrb[55].mxu0  ;;  %v4917_v10 = vpop.f32.mrb[19].mxu1  ;;  %v5686_v22 = vmul.f32 %v7250_v47, %v5509_v61  ;;  %v8965_v39 = vld [vmem:[#allocation17_spill] sm:$0xff] }
 0x22e   : > { %v5602_v12 = vadd.f32 %v5601_v42, %v5507_v24  ;;  %v5684_v21 = vmul.f32 %v7251_v33, %v5507_v24  ;;  %v5778_v2 = vadd.f32 %v5777_v19, %v5682_v63  ;;  %v7253_v37 = vadd.f32 %v4917_v10, %v2407_v1 }
 0x22f   : > { %5225 = vst [vmem:[%s8290_s30 + $0x138] sm:$0xff] %v7252_v6  ;;  %v5513_v32 = vmul.f32 %v7252_v6, %v8958_v11 }
 0x230   : > { %v5779_v3 = vadd.f32 %v5778_v2, %v5684_v21  ;;  %5223 = vst [vmem:[%s8290_s30 + $0x128] sm:$0xff] %v7253_v37  ;;  %v5511_v53 = vmul.f32 %v7253_v37, %v8959_v34  ;;  %v5603_v50 = vadd.f32 %v5602_v12, %v5509_v61  ;;  %v6932_v49 = vpop.f32.mrb[56].mxu0  ;;  %v7212_v54 = vpop.f32.mrb[20].mxu1 }
 0x231   : > { %v7254_v14 = vadd.f32 %v7212_v54, %v6932_v49  ;;  %v2417_v16 = vpop.f32.mrb[57].mxu0  ;;  %v4927_v26 = vpop.f32.mrb[21].mxu1  ;;  %v5690_v51 = vmul.f32 %v7252_v6, %v5513_v32  ;;  %v8967_v54 = vld [vmem:[#allocation19_spill] sm:$0xff] }
 0x232   : > { %v5604_v28 = vadd.f32 %v5603_v50, %v5511_v53  ;;  %v5688_v55 = vmul.f32 %v7253_v37, %v5511_v53  ;;  %v5780_v59 = vadd.f32 %v5779_v3, %v5686_v22  ;;  %v7255_v7 = vadd.f32 %v4927_v26, %v2417_v16  ;;  %v8966_v50 = vld [vmem:[#allocation18_spill] sm:$0xff] }
 0x233   : > { %5229 = vst [vmem:[%s8290_s30 + $0x158] sm:$0xff] %v7254_v14  ;;  %v5517_v29 = vmul.f32 %v7254_v14, %v8960_v27 }
 0x234   : > { %v5781_v44 = vadd.f32 %v5780_v59, %v5688_v55  ;;  %5227 = vst [vmem:[%s8290_s30 + $0x148] sm:$0xff] %v7255_v7  ;;  %v5515_v48 = vmul.f32 %v7255_v7, %v8961_v46  ;;  %v5605_v25 = vadd.f32 %v5604_v28, %v5513_v32  ;;  %v6935_v31 = vpop.f32.mrb[58].mxu0  ;;  %v7215_v62 = vpop.f32.mrb[22].mxu1  ;;  %v8968_v46 = vld [vmem:[#allocation20_spill] sm:$0xff] }
 0x235   : > { %v7256_v4 = vadd.f32 %v7215_v62, %v6935_v31  ;;  %v2427_v30 = vpop.f32.mrb[59].mxu0  ;;  %v4937_v45 = vpop.f32.mrb[23].mxu1  ;;  %v5694_v57 = vmul.f32 %v7254_v14, %v5517_v29  ;;  %v8969_v62 = vld [vmem:[#allocation21_spill] sm:$0xff] }
 0x236   : > { %v5606_v20 = vadd.f32 %v5605_v25, %v5515_v48  ;;  %v5692_v35 = vmul.f32 %v7255_v7, %v5515_v48  ;;  %v5782_v56 = vadd.f32 %v5781_v44, %v5690_v51  ;;  %v7257_v13 = vadd.f32 %v4937_v45, %v2427_v30 }
 0x237   : > { %5233 = vst [vmem:[%s8290_s30 + $0x178] sm:$0xff] %v7256_v4  ;;  %v5521_v5 = vmul.f32 %v7256_v4, %v8962_v40 }
 0x238   : > { %v5783_v41 = vadd.f32 %v5782_v56, %v5692_v35  ;;  %5231 = vst [vmem:[%s8290_s30 + $0x168] sm:$0xff] %v7257_v13  ;;  %v5519_v47 = vmul.f32 %v7257_v13, %v8963_v43  ;;  %v5607_v52 = vadd.f32 %v5606_v20, %v5517_v29  ;;  %v6938_v38 = vpop.f32.mrb[60].mxu0  ;;  %v7218_v8 = vpop.f32.mrb[24].mxu1 }
 0x239   : > { %v7258_v36 = vadd.f32 %v7218_v8, %v6938_v38  ;;  %v2437_v23 = vpop.f32.mrb[61].mxu0  ;;  %v4947_v33 = vpop.f32.mrb[25].mxu1  ;;  %v5698_v42 = vmul.f32 %v7256_v4, %v5521_v5  ;;  %v8971_v8 = vld [vmem:[#allocation23_spill] sm:$0xff] }
 0x23a   : > { %v5608_v15 = vadd.f32 %v5607_v52, %v5519_v47  ;;  %v5696_v61 = vmul.f32 %v7257_v13, %v5519_v47  ;;  %v5784_v63 = vadd.f32 %v5783_v41, %v5694_v57  ;;  %v7259_v19 = vadd.f32 %v4947_v33, %v2437_v23  ;;  %v8970_v52 = vld [vmem:[#allocation22_spill] sm:$0xff] }
 0x23b   : > { %5237 = vst [vmem:[%s8290_s30 + $0x198] sm:$0xff] %v7258_v36  ;;  %v5525_v24 = vmul.f32 %v7258_v36, %v8964_v60 }
 0x23c   : > { %v5785_v17 = vadd.f32 %v5784_v63, %v5696_v61  ;;  %5235 = vst [vmem:[%s8290_s30 + $0x188] sm:$0xff] %v7259_v19  ;;  %v5523_v6 = vmul.f32 %v7259_v19, %v8965_v39  ;;  %v5609_v1 = vadd.f32 %v5608_v15, %v5521_v5  ;;  %v6941_v10 = vpop.f32.mrb[62].mxu0  ;;  %v7221_v12 = vpop.f32.mrb[26].mxu1  ;;  %v5581_v39 = vrot.slane %v8669_v58, 4 }
 0x23d   : > { %v7260_v21 = vadd.f32 %v7221_v12, %v6941_v10  ;;  %v2447_v2 = vpop.f32.mrb[63].mxu0  ;;  %v4957_v37 = vpop.f32.mrb[27].mxu1  ;;  %v5702_v34 = vmul.f32 %v7258_v36, %v5525_v24 }
 0x23e   : > { %v5610_v22 = vadd.f32 %v5609_v1, %v5523_v6  ;;  %v5700_v3 = vmul.f32 %v7259_v19, %v5523_v6  ;;  %v5786_v11 = vadd.f32 %v5785_v17, %v5698_v42  ;;  %v7261_v32 = vadd.f32 %v4957_v37, %v2447_v2  ;;  %v8972_v6 = vld [vmem:[#allocation24_spill] sm:$0xff] }
 0x23f   : > { %5241 = vst [vmem:[%s8290_s30 + $0x1b8] sm:$0xff] %v7260_v21  ;;  %v5529_v49 = vmul.f32 %v7260_v21, %v8966_v50 }
 0x240   : > { %v5787_v53 = vadd.f32 %v5786_v11, %v5700_v3  ;;  %5239 = vst [vmem:[%s8290_s30 + $0x1a8] sm:$0xff] %v7261_v32  ;;  %v5527_v14 = vmul.f32 %v7261_v32, %v8967_v54  ;;  %v5611_v16 = vadd.f32 %v5610_v22, %v5525_v24  ;;  %v6944_v26 = vpop.f32.mrb[64].mxu0  ;;  %v7224_v28 = vpop.f32.mrb[28].mxu1  ;;  %v5758_v11 = vrot.slane %v8676_v18, 4 }
 0x241   : > { %v7262_v55 = vadd.f32 %v7224_v28, %v6944_v26  ;;  %v2457_v59 = vpop.f32.mrb[65].mxu0  ;;  %v4967_v7 = vpop.f32.mrb[29].mxu1  ;;  %v5706_v25 = vmul.f32 %v7260_v21, %v5529_v49  ;;  %v8973_v21 = vld [vmem:[#allocation25_spill] sm:$0xff] }
 0x242   : > { %v5612_v27 = vadd.f32 %v5611_v16, %v5527_v14  ;;  %v5704_v29 = vmul.f32 %v7261_v32, %v5527_v14  ;;  %v5788_v51 = vadd.f32 %v5787_v53, %v5702_v34  ;;  %v7263_v44 = vadd.f32 %v4967_v7, %v2457_v59 }
 0x243   : > { %5245 = vst [vmem:[%s8290_s30 + $0x1d8] sm:$0xff] %v7262_v55  ;;  %v5533_v48 = vmul.f32 %v7262_v55, %v8968_v46  ;;  %v5582_v16 = vadd.f32 %v5581_v39, %v8669_v58 }
 0x244   : > { %v5789_v31 = vadd.f32 %v5788_v51, %v5704_v29  ;;  %5243 = vst [vmem:[%s8290_s30 + $0x1c8] sm:$0xff] %v7263_v44  ;;  %v5531_v4 = vmul.f32 %v7263_v44, %v8969_v62  ;;  %v5613_v30 = vadd.f32 %v5612_v27, %v5529_v49  ;;  %v6947_v45 = vpop.f32.mrb[66].mxu0  ;;  %v7227_v20 = vpop.f32.mrb[30].mxu1  ;;  %v5759_v27 = vadd.f32 %v5758_v11, %v8676_v18 }
 0x245   : > { %v7264_v35 = vadd.f32 %v7227_v20, %v6947_v45  ;;  %v2467_v56 = vpop.f32.mrb[67].mxu0  ;;  %v4977_v13 = vpop.f32.mrb[31].mxu1  ;;  %v5710_v43 = vmul.f32 %v7262_v55, %v5533_v48  ;;  %v5583_v46 = vrot.slane %v5582_v16, 2  ;;  %v7545_v20 = vmov 1966171168  }
 0x246   : > { %v5614_v57 = vadd.f32 %v5613_v30, %v5531_v4  ;;  %v5708_v41 = vmul.f32 %v7263_v44, %v5531_v4  ;;  %v5790_v40 = vadd.f32 %v5789_v31, %v5706_v25  ;;  %v7265_v5 = vadd.f32 %v4977_v13, %v2467_v56 }
 0x247   : > { %5249 = vst [vmem:[%s8290_s30 + $0x1f8] sm:$0xff] %v7264_v35  ;;  %v5537_v38 = vmul.f32 %v7264_v35, %v8970_v52  ;;  %v5760_v62 = vrot.slane %v5759_v27, 2  ;;  %v5584_v30 = vadd.f32 %v5583_v46, %v5582_v16 }
 0x248   : > { %v5791_v47 = vadd.f32 %v5790_v40, %v5708_v41  ;;  %5247 = vst [vmem:[%s8290_s30 + $0x1e8] sm:$0xff] %v7265_v5  ;;  %v5535_v36 = vmul.f32 %v7265_v5, %v8971_v8  ;;  %v5615_v23 = vadd.f32 %v5614_v57, %v5533_v48  ;;  %v6950_v33 = vpop.f32.mrb[68].mxu0  ;;  %v7230_v15 = vpop.f32.mrb[32].mxu1 }
 0x249   : > { %v7266_v61 = vadd.f32 %v7230_v15, %v6950_v33  ;;  %v2477_v63 = vpop.f32.mrb[69].mxu0  ;;  %v4987_v19 = vpop.f32.mrb[33].mxu1  ;;  %v5714_v10 = vmul.f32 %v7264_v35, %v5537_v38  ;;  %v5634_v35 = vlaneseq  ;;  %v5585_v57 = vrot.slane %v5584_v30, 1 }
 0x24a   : > { %v5616_v60 = vadd.f32 %v5615_v23, %v5535_v36  ;;  %v5712_v24 = vmul.f32 %v7265_v5, %v5535_v36  ;;  %v5792_v42 = vadd.f32 %v5791_v47, %v5710_v43  ;;  %v7267_v17 = vadd.f32 %v4987_v19, %v2477_v63 }
 0x24b   : > { %5253 = vst [vmem:[%s8290_s30 + $0x218] sm:$0xff] %v7266_v61  ;;  %v5541_v1 = vmul.f32 %v7266_v61, %v8972_v6  ;;  %v5635_v5 = vshrl.u32 %v5634_v35, 7  ;;  %v5586_v8 = vadd.f32 %v5585_v57, %v5584_v30  ;;  %vm5648_vm2 = vcmp.lt.s32.totalorder %v5634_v35, 256 }
 0x24c   : > { %v5793_v12 = vadd.f32 %v5792_v42, %v5712_v24  ;;  %5251 = vst [vmem:[%s8290_s30 + $0x208] sm:$0xff] %v7267_v17  ;;  %v5539_v2 = vmul.f32 %v7267_v17, %v8973_v21  ;;  %v5617_v37 = vadd.f32 %v5616_v60, %v5537_v38  ;;  %v6953_v22 = vpop.f32.mrb[70].mxu0  ;;  %v7233_v3 = vpop.f32.mrb[34].mxu1 }
 0x24d   : > { %v7268_v32 = vadd.f32 %v7233_v3, %v6953_v22  ;;  %v2487_v34 = vpop.f32.mrb[71].mxu0  ;;  %v4997_v53 = vpop.f32.mrb[35].mxu1  ;;  %v5718_v26 = vmul.f32 %v7266_v61, %v5541_v1 }
 0x24e   : > { %v5618_v50 = vadd.f32 %v5617_v37, %v5539_v2  ;;  %v5716_v49 = vmul.f32 %v7267_v17, %v5539_v2  ;;  %v5794_v54 = vadd.f32 %v5793_v12, %v5714_v10  ;;  %v7269_v14 = vadd.f32 %v4997_v53, %v2487_v34 }
 0x24f   : > { %5257 = vst [vmem:[%s8290_s30 + $0x238] sm:$0xff] %v7268_v32  ;;  %v5545_v55 = vmul.f32 %v7268_v32, %v8636_v0  ;;  %v5632_v0 = vunpack.c.l.s4 %v7545_v20 }
 0x250   : > { %v5795_v28 = vadd.f32 %v5794_v54, %v5716_v49  ;;  %5255 = vst [vmem:[%s8290_s30 + $0x228] sm:$0xff] %v7269_v14  ;;  %v5543_v59 = vmul.f32 %v7269_v14, %v8645_v9  ;;  %v5619_v7 = vadd.f32 %v5618_v50, %v5541_v1  ;;  %v5761_v9 = vadd.f32 %v5760_v62, %v5759_v27 }
 0x251   : > { %v5722_v48 = vmul.f32 %v7268_v32, %v5545_v55  ;;  %v5633_v40 = vunpack.c.0.s8 %v5632_v0 }
 0x252   : > { %v5620_v29 = vadd.f32 %v5619_v7, %v5543_v59  ;;  %v5720_v51 = vmul.f32 %v7269_v14, %v5543_v59  ;;  %v5796_v44 = vadd.f32 %v5795_v28, %v5718_v26  ;;  %v5762_v47 = vrot.slane %v5761_v9, 1 }
 0x253   : > { %v5636_v23 = vsub.s32 %v5633_v40, %v5635_v5 }
 0x254   : > { %v5621_v25 = vadd.f32 %v5620_v29, %v5545_v55  ;;  %v5797_v31 = vadd.f32 %v5796_v44, %v5720_v51  ;;  %v5763_v15 = vadd.f32 %v5762_v47, %v5761_v9 }
 0x256   : > { %v5622_v58 = vrot.slane %v5621_v25, 4  ;;  %v5798_v4 = vadd.f32 %v5797_v31, %v5722_v48 }
 0x258   : > { %v5623_v45 = vadd.f32 %v5622_v58, %v5621_v25  ;;  %v5799_v56 = vrot.slane %v5798_v4, 4 }
 0x25a   : > { %v5624_v13 = vrot.slane %v5623_v45, 2  ;;  %v5800_v18 = vadd.f32 %v5799_v56, %v5798_v4 }
 0x25c   : > { %v5625_v41 = vadd.f32 %v5624_v13, %v5623_v45  ;;  %v5801_v43 = vrot.slane %v5800_v18, 2 }
 0x25e   : > { %v5626_v52 = vrot.slane %v5625_v41, 1  ;;  %v5802_v38 = vadd.f32 %v5801_v43, %v5800_v18 }
 0x260   : > { %v5627_v36 = vadd.f32 %v5626_v52, %v5625_v41  ;;  %v5803_v33 = vrot.slane %v5802_v38, 1 }
 0x262   : > { %v5630_v61 = vcombine.low %v5586_v8, %v5627_v36  ;;  %v5804_v63 = vadd.f32 %v5803_v33, %v5802_v38 }
 0x264   : > { %v5637_v19 = vrot.slane %v5630_v61, %v5636_v23  ;;  %v5807_v60 = vcombine.low %v5763_v15, %v5804_v63 }
 0x266   : > { %v5644_v24 = vrot.slane %v5637_v19, %v5636_v23  ;;  %v5814_v42 = vrot.slane %v5807_v60, %v5636_v23 }
 0x268   : > { %5650 = vst.msk [vmem:[%s237_s8] ss:$2 sm:$0x3] %vm5648_vm2, %v5644_v24  ;;  %v5821_v17 = vrot.slane %v5814_v42, %v5636_v23 }
 0x26a   : > { %6300 = vst.msk [vmem:[%s237_s8 + $0x1] ss:$2 sm:$0x3] %vm5648_vm2, %v5821_v17 }
 0x26b PF: > { %s16_s18 = sadd.s32 1, %s7542_s18  }
 0x26c   : > { %p13_p4 = scmp.ge.s32.totalorder %s16_s18, 4  }
 0x26e   :  { %15 = sbr.rel (!%p13_p4) target bundleno = 1 (0x1), region = 87 }

</bundles_post_ra>
